<compile_context>
chip_gen: v7x
topology: tpu7x:2x2x1
jax: 0.10.0
libtpu: 0.0.40
codegen_flags: <defaults>
</compile_context>

<pallas_src>
import math
import functools

import jax
import jax.numpy as jnp
from jax import lax
from jax.experimental import pallas as pl
from jax.experimental.pallas import tpu as pltpu


# ----------------------------- in-kernel helpers -----------------------------

def _layernorm(x, w, b, eps=1e-5):
    mu = jnp.mean(x, axis=-1, keepdims=True)
    var = jnp.mean(jnp.square(x - mu), axis=-1, keepdims=True)
    return (x - mu) * lax.rsqrt(var + eps) * w + b


def _gelu(x):
    # exact (erf) GELU, matching torch.nn.GELU default; evaluated in f32
    return 0.5 * x * (1.0 + lax.erf(x * (1.0 / math.sqrt(2.0))))


def _softmax_lastdim(s):
    m = jnp.max(s, axis=-1, keepdims=True)
    e = jnp.exp(s - m)
    denom = jnp.sum(e, axis=-1, keepdims=True)
    # approx reciprocal -> EUP slot (otherwise idle here), per perf review
    return e * pl.reciprocal(denom, approx=True)


# ------------------------------- Pallas kernel --------------------------------

def block_kernel(x_ref,
                 ln1w_ref, ln1b_ref,
                 wv_ref, bv_ref, wp_ref, bp_ref,
                 ln2w_ref, ln2b_ref,
                 w1_ref, b1_ref, w2_ref, b2_ref,
                 *rest,
                 n_head, batch, seqlen, with_des):
    """Whole Block forward in one invocation. x arrives folded as (B*T, C)."""
    if with_des:
        (ln3w_ref, ln3b_ref,
         wd1_ref, bd1_ref, wd2_ref, bd2_ref, wd3_ref, bd3_ref,
         des_ref,
         x_out_ref, des_out_ref) = rest
    else:
        (x_out_ref,) = rest

    B, T, H = batch, seqlen, n_head
    x = x_ref[...]                                   # (B*T, C) f32
    BT, C = x.shape
    D = C // H
    scale = 1.0 / math.sqrt(D)
    neg = jnp.float32(-1e30)                         # finite mask value (no inf-inf NaN risk)
    bf16 = jnp.bfloat16

    # ---------------- attention branch: x + proj(attn(ln1(x))) ----------------
    h1 = _layernorm(x, ln1w_ref[...], ln1b_ref[...])           # f32
    h1b = h1.astype(bf16)

    # Per-head value projection over the full folded (B*T) row axis.
    # (q = k = v = value(ln1(x)) — the PyTorch forward uses self.value for all three.)
    v_heads = []
    for h in range(H):                                          # static, small
        vh = jnp.dot(h1b, wv_ref[h],                            # (B*T, C)@(C, D)
                     preferred_element_type=jnp.float32) + bv_ref[h]
        v_heads.append(vh)                                      # (B*T, D) f32

    row = lax.broadcasted_iota(jnp.int32, (T, T), 0)
    col = lax.broadcasted_iota(jnp.int32, (T, T), 1)
    causal = col <= row                                         # tril, diag kept

    attn_rows = []
    for b in range(B):                                          # static batch loop
        acc = jnp.zeros((T, C), jnp.float32)                    # projected attn for batch b
        for h in range(H):
            vb = v_heads[h][b * T:(b + 1) * T, :]               # (T, D) f32, sublane slice
            vb16 = vb.astype(bf16)
            # scores: contract D directly (no explicit transpose)
            s = lax.dot_general(vb16, vb16,
                                (((1,), (1,)), ((), ())),
                                preferred_element_type=jnp.float32) * scale
            s = jnp.where(causal, s, neg)
            p = _softmax_lastdim(s)                             # f32
            y = jnp.dot(p.astype(bf16), vb16,                   # (T, T)@(T, D)
                        preferred_element_type=jnp.float32)
            # accumulate this head's slice of the output projection: no concat over heads
            acc = acc + jnp.dot(y.astype(bf16), wp_ref[h],      # (T, D)@(D, C)
                                preferred_element_type=jnp.float32)
        attn_rows.append(acc)
    attn = jnp.concatenate(attn_rows, axis=0) + bp_ref[...]     # (B*T, C) f32

    x1 = x + attn                                               # residual 1

    # ------------------------------ MLP branch --------------------------------
    h2 = _layernorm(x1, ln2w_ref[...], ln2b_ref[...]).astype(bf16)
    m = _gelu(jnp.dot(h2, w1_ref[...],
                      preferred_element_type=jnp.float32) + b1_ref[...])
    m = jnp.dot(m.astype(bf16), w2_ref[...],
                preferred_element_type=jnp.float32) + b2_ref[...]
    x2 = x1 + m                                                 # residual 2

    x_out_ref[...] = x2.astype(x_out_ref.dtype)

    # --------------------- fused des path (state == True) ---------------------
    if with_des:
        # Global average pool over T per batch element, expressed as a tiny
        # (B, B*T) @ (B*T, C) matmul on the already-resident result
        # (no second pallas_call / HBM re-read of x_out).
        cols = lax.broadcasted_iota(jnp.int32, (B, BT), 1)
        bidx = lax.broadcasted_iota(jnp.int32, (B, BT), 0)
        start = bidx * T
        in_seg = jnp.logical_and(cols >= start, cols < start + T)
        pool = jnp.where(in_seg, jnp.float32(1.0 / T), jnp.float32(0.0))
        pooled = jnp.dot(pool, x2, preferred_element_type=jnp.float32)   # (B, C)

        h3 = _layernorm(pooled, ln3w_ref[...], ln3b_ref[...]).astype(bf16)
        d = _gelu(jnp.dot(h3, wd1_ref[...],
                          preferred_element_type=jnp.float32) + bd1_ref[...])
        d = _gelu(jnp.dot(d.astype(bf16), wd2_ref[...],
                          preferred_element_type=jnp.float32) + bd2_ref[...])
        d = jnp.dot(d.astype(bf16), wd3_ref[...],
                    preferred_element_type=jnp.float32) + bd3_ref[...]   # (B, A)

        des_out_ref[...] = des_ref[...] + d


# --------------------------------- wrapper -------------------------------------

def _prepare_main_operands(params, n_head):
    """Wrapper-side (free) layout plumbing: bf16 weights + head-split weight tensors."""
    bf16 = jnp.bfloat16
    C = params["ln1w"].shape[-1]
    H = n_head
    D = C // H
    wv = params["wv"]                                           # (C, C)  (in, out)
    bv = params["bv"]                                           # (1, C)
    wp = params["wp"]                                           # (C, C)  (in, out)
    wv_h = wv.reshape(C, H, D).transpose(1, 0, 2).astype(bf16)  # (H, C, D)
    bv_h = bv.reshape(1, H, D).transpose(1, 0, 2)               # (H, 1, D) f32
    wp_h = wp.reshape(H, D, C).astype(bf16)                     # (H, D, C)
    return [
        params["ln1w"], params["ln1b"],
        wv_h, bv_h, wp_h, params["bp"],
        params["ln2w"], params["ln2b"],
        params["w1"].astype(bf16), params["b1"],
        params["w2"].astype(bf16), params["b2"],
    ]


def _prepare_des_operands(params):
    bf16 = jnp.bfloat16
    return [
        params["ln3w"], params["ln3b"],
        params["wd1"].astype(bf16), params["bd1"],
        params["wd2"].astype(bf16), params["bd2"],
        params["wd3"].astype(bf16), params["bd3"],
    ]


def block_forward(x_embedding, x_real, all_data, state, des, params, *, n_head):
    """Mirrors Block_sim_weight.forward; x_real / all_data are passed through."""
    B, T, C = x_embedding.shape
    x2d = x_embedding.reshape(B * T, C)          # fold batch into the matmul M axis
    main_ops = _prepare_main_operands(params, n_head)

    kernel = functools.partial(block_kernel, n_head=n_head, batch=B, seqlen=T,
                               with_des=bool(state))
    # Explicit scoped-VMEM budget (safe on v5e/v6e/v7x; tiny footprint at these sizes).
    cp = pltpu.CompilerParams(vmem_limit_bytes=32 * 1024 * 1024)

    if state:
        A = des.shape[-1]
        des2d = des.reshape(B, A)
        des_ops = _prepare_des_operands(params)
        x_out2d, des_out2d = pl.pallas_call(
            kernel,
            out_shape=(jax.ShapeDtypeStruct((B * T, C), x_embedding.dtype),
                       jax.ShapeDtypeStruct((B, A), des.dtype)),
            compiler_params=cp,
        )(x2d, *main_ops, *des_ops, des2d)
        des_out = des_out2d.reshape(des.shape)
    else:
        x_out2d = pl.pallas_call(
            kernel,
            out_shape=jax.ShapeDtypeStruct((B * T, C), x_embedding.dtype),
            compiler_params=cp,
        )(x2d, *main_ops)
        des_out = des

    x_out = x_out2d.reshape(B, T, C)
    return x_out, x_real, all_data, state, des_out


# ------------------------------ parameter setup --------------------------------

def init_params(key, n_embd, n_auxil):
    """Weights stored as (in, out) so the kernel computes x @ W + b (PyTorch: x @ W.T + b)."""
    C = n_embd
    std = 0.02
    keys = jax.random.split(key, 7)

    def lin(k, fan_in, fan_out):
        kw, kb = jax.random.split(k)
        w = std * jax.random.normal(kw, (fan_in, fan_out), jnp.float32)
        b = std * jax.random.normal(kb, (1, fan_out), jnp.float32)
        return w, b

    p = {}
    # LayerNorms (PyTorch default init: weight=1, bias=0)
    for name in ("ln1", "ln2", "ln3"):
        p[name + "w"] = jnp.ones((1, C), jnp.float32)
        p[name + "b"] = jnp.zeros((1, C), jnp.float32)
    # attention: the PyTorch forward only uses self.value (for q, k and v) and self.proj
    p["wv"], p["bv"] = lin(keys[0], C, C)
    p["wp"], p["bp"] = lin(keys[1], C, C)
    # mlp
    p["w1"], p["b1"] = lin(keys[2], C, 4 * C)
    p["w2"], p["b2"] = lin(keys[3], 4 * C, C)
    # mlp_des
    p["wd1"], p["bd1"] = lin(keys[4], C, 1024)
    p["wd2"], p["bd2"] = lin(keys[5], 1024, 512)
    p["wd3"], p["bd3"] = lin(keys[6], 512, n_auxil)
    return p


# ------------------------------------ main --------------------------------------

if __name__ == "__main__":
    B, T, C = 2, 8, 32          # batch, seq (== max_seqlen), n_embd
    n_head = 4
    n_auxil = 8

    key = jax.random.PRNGKey(0)
    kx, kd, kp = jax.random.split(key, 3)

    x_embedding = jax.random.normal(kx, (B, T, C), jnp.float32)
    des = jax.random.normal(kd, (B, 1, n_auxil), jnp.float32)
    x_real = None               # trajectory inputs feed the untranslated host-side path
    all_data = None
    state = True

    params = init_params(kp, C, n_auxil)

    x_out, x_real_out, all_data_out, state_out, des_out = block_forward(
        x_embedding, x_real, all_data, state, des, params, n_head=n_head)

    jax.block_until_ready(x_out)
    jax.block_until_ready(des_out)
    print("KERNEL_OK")
</pallas_src>

<mosaic_0001>
module attributes {stable_mosaic.version = 11 : i64} {
  func.func @block_kernel(%arg0: memref<16x32xf32, #tpu.memory_space<vmem>>, %arg1: memref<1x32xf32, #tpu.memory_space<vmem>>, %arg2: memref<1x32xf32, #tpu.memory_space<vmem>>, %arg3: memref<4x32x8xbf16, #tpu.memory_space<vmem>>, %arg4: memref<4x1x8xf32, #tpu.memory_space<vmem>>, %arg5: memref<4x8x32xbf16, #tpu.memory_space<vmem>>, %arg6: memref<1x32xf32, #tpu.memory_space<vmem>>, %arg7: memref<1x32xf32, #tpu.memory_space<vmem>>, %arg8: memref<1x32xf32, #tpu.memory_space<vmem>>, %arg9: memref<32x128xbf16, #tpu.memory_space<vmem>>, %arg10: memref<1x128xf32, #tpu.memory_space<vmem>>, %arg11: memref<128x32xbf16, #tpu.memory_space<vmem>>, %arg12: memref<1x32xf32, #tpu.memory_space<vmem>>, %arg13: memref<1x32xf32, #tpu.memory_space<vmem>>, %arg14: memref<1x32xf32, #tpu.memory_space<vmem>>, %arg15: memref<32x1024xbf16, #tpu.memory_space<vmem>>, %arg16: memref<1x1024xf32, #tpu.memory_space<vmem>>, %arg17: memref<1024x512xbf16, #tpu.memory_space<vmem>>, %arg18: memref<1x512xf32, #tpu.memory_space<vmem>>, %arg19: memref<512x8xbf16, #tpu.memory_space<vmem>>, %arg20: memref<1x8xf32, #tpu.memory_space<vmem>>, %arg21: memref<2x8xf32, #tpu.memory_space<vmem>>, %arg22: memref<16x32xf32, #tpu.memory_space<vmem>>, %arg23: memref<2x8xf32, #tpu.memory_space<vmem>>) attributes {dimension_semantics = [], scalar_prefetch = 0 : i64, scratch_operands = 0 : i64, tpu.core_type = #tpu.core_type<tc>} {
    %c0 = arith.constant 0 : index
    %c0_0 = arith.constant 0 : index
    %0 = vector.load %arg0[%c0, %c0_0] : memref<16x32xf32, #tpu.memory_space<vmem>>, vector<16x32xf32>
    %c0_1 = arith.constant 0 : index
    %c0_2 = arith.constant 0 : index
    %1 = vector.load %arg1[%c0_1, %c0_2] : memref<1x32xf32, #tpu.memory_space<vmem>>, vector<1x32xf32>
    %c0_3 = arith.constant 0 : index
    %c0_4 = arith.constant 0 : index
    %2 = vector.load %arg2[%c0_3, %c0_4] : memref<1x32xf32, #tpu.memory_space<vmem>>, vector<1x32xf32>
    %cst = arith.constant dense<0.000000e+00> : vector<16xf32>
    %3 = vector.multi_reduction <add>, %0, %cst [1] : vector<16x32xf32> to vector<16xf32>
    %4 = vector.shape_cast %3 : vector<16xf32> to vector<16x1xf32>
    %cst_5 = arith.constant 3.200000e+01 : f32
    %5 = vector.broadcast %cst_5 : f32 to vector<16x1xf32>
    %6 = arith.divf %4, %5 : vector<16x1xf32>
    %7 = vector.broadcast %6 : vector<16x1xf32> to vector<16x32xf32>
    %8 = arith.subf %0, %7 : vector<16x32xf32>
    %9 = arith.mulf %8, %8 : vector<16x32xf32>
    %cst_6 = arith.constant dense<0.000000e+00> : vector<16xf32>
    %10 = vector.multi_reduction <add>, %9, %cst_6 [1] : vector<16x32xf32> to vector<16xf32>
    %11 = vector.shape_cast %10 : vector<16xf32> to vector<16x1xf32>
    %cst_7 = arith.constant 3.200000e+01 : f32
    %12 = vector.broadcast %cst_7 : f32 to vector<16x1xf32>
    %13 = arith.divf %11, %12 : vector<16x1xf32>
    %14 = vector.broadcast %6 : vector<16x1xf32> to vector<16x32xf32>
    %15 = arith.subf %0, %14 : vector<16x32xf32>
    %cst_8 = arith.constant 9.99999974E-6 : f32
    %16 = vector.broadcast %cst_8 : f32 to vector<16x1xf32>
    %17 = arith.addf %13, %16 : vector<16x1xf32>
    %18 = math.rsqrt %17 : vector<16x1xf32>
    %19 = vector.broadcast %18 : vector<16x1xf32> to vector<16x32xf32>
    %20 = arith.mulf %15, %19 : vector<16x32xf32>
    %21 = vector.broadcast %1 : vector<1x32xf32> to vector<16x32xf32>
    %22 = arith.mulf %20, %21 : vector<16x32xf32>
    %23 = vector.broadcast %2 : vector<1x32xf32> to vector<16x32xf32>
    %24 = arith.addf %22, %23 : vector<16x32xf32>
    %25 = arith.truncf %24 : vector<16x32xf32> to vector<16x32xbf16>
    %c0_9 = arith.constant 0 : index
    %c0_10 = arith.constant 0 : index
    %c0_11 = arith.constant 0 : index
    %26 = vector.load %arg3[%c0_9, %c0_10, %c0_11] : memref<4x32x8xbf16, #tpu.memory_space<vmem>>, vector<1x32x8xbf16>
    %27 = vector.shape_cast %26 : vector<1x32x8xbf16> to vector<32x8xbf16>
    %cst_12 = arith.constant dense<0.000000e+00> : vector<16x8xf32>
    %28 = tpu.matmul %25, %27, %cst_12 {dimension_numbers = #tpu.dot_dimension_numbers<[1], [0], [0], [1], [0, 0, 1, 1], [], []>} : vector<16x32xbf16>, vector<32x8xbf16>, vector<16x8xf32> -> vector<16x8xf32>
    %c0_13 = arith.constant 0 : index
    %c0_14 = arith.constant 0 : index
    %c0_15 = arith.constant 0 : index
    %29 = vector.load %arg4[%c0_13, %c0_14, %c0_15] : memref<4x1x8xf32, #tpu.memory_space<vmem>>, vector<1x1x8xf32>
    %30 = vector.shape_cast %29 : vector<1x1x8xf32> to vector<1x8xf32>
    %31 = vector.broadcast %30 : vector<1x8xf32> to vector<16x8xf32>
    %32 = arith.addf %28, %31 : vector<16x8xf32>
    %c1 = arith.constant 1 : index
    %c0_16 = arith.constant 0 : index
    %c0_17 = arith.constant 0 : index
    %33 = vector.load %arg3[%c1, %c0_16, %c0_17] : memref<4x32x8xbf16, #tpu.memory_space<vmem>>, vector<1x32x8xbf16>
    %34 = vector.shape_cast %33 : vector<1x32x8xbf16> to vector<32x8xbf16>
    %cst_18 = arith.constant dense<0.000000e+00> : vector<16x8xf32>
    %35 = tpu.matmul %25, %34, %cst_18 {dimension_numbers = #tpu.dot_dimension_numbers<[1], [0], [0], [1], [0, 0, 1, 1], [], []>} : vector<16x32xbf16>, vector<32x8xbf16>, vector<16x8xf32> -> vector<16x8xf32>
    %c1_19 = arith.constant 1 : index
    %c0_20 = arith.constant 0 : index
    %c0_21 = arith.constant 0 : index
    %36 = vector.load %arg4[%c1_19, %c0_20, %c0_21] : memref<4x1x8xf32, #tpu.memory_space<vmem>>, vector<1x1x8xf32>
    %37 = vector.shape_cast %36 : vector<1x1x8xf32> to vector<1x8xf32>
    %38 = vector.broadcast %37 : vector<1x8xf32> to vector<16x8xf32>
    %39 = arith.addf %35, %38 : vector<16x8xf32>
    %c2 = arith.constant 2 : index
    %c0_22 = arith.constant 0 : index
    %c0_23 = arith.constant 0 : index
    %40 = vector.load %arg3[%c2, %c0_22, %c0_23] : memref<4x32x8xbf16, #tpu.memory_space<vmem>>, vector<1x32x8xbf16>
    %41 = vector.shape_cast %40 : vector<1x32x8xbf16> to vector<32x8xbf16>
    %cst_24 = arith.constant dense<0.000000e+00> : vector<16x8xf32>
    %42 = tpu.matmul %25, %41, %cst_24 {dimension_numbers = #tpu.dot_dimension_numbers<[1], [0], [0], [1], [0, 0, 1, 1], [], []>} : vector<16x32xbf16>, vector<32x8xbf16>, vector<16x8xf32> -> vector<16x8xf32>
    %c2_25 = arith.constant 2 : index
    %c0_26 = arith.constant 0 : index
    %c0_27 = arith.constant 0 : index
    %43 = vector.load %arg4[%c2_25, %c0_26, %c0_27] : memref<4x1x8xf32, #tpu.memory_space<vmem>>, vector<1x1x8xf32>
    %44 = vector.shape_cast %43 : vector<1x1x8xf32> to vector<1x8xf32>
    %45 = vector.broadcast %44 : vector<1x8xf32> to vector<16x8xf32>
    %46 = arith.addf %42, %45 : vector<16x8xf32>
    %c3 = arith.constant 3 : index
    %c0_28 = arith.constant 0 : index
    %c0_29 = arith.constant 0 : index
    %47 = vector.load %arg3[%c3, %c0_28, %c0_29] : memref<4x32x8xbf16, #tpu.memory_space<vmem>>, vector<1x32x8xbf16>
    %48 = vector.shape_cast %47 : vector<1x32x8xbf16> to vector<32x8xbf16>
    %cst_30 = arith.constant dense<0.000000e+00> : vector<16x8xf32>
    %49 = tpu.matmul %25, %48, %cst_30 {dimension_numbers = #tpu.dot_dimension_numbers<[1], [0], [0], [1], [0, 0, 1, 1], [], []>} : vector<16x32xbf16>, vector<32x8xbf16>, vector<16x8xf32> -> vector<16x8xf32>
    %c3_31 = arith.constant 3 : index
    %c0_32 = arith.constant 0 : index
    %c0_33 = arith.constant 0 : index
    %50 = vector.load %arg4[%c3_31, %c0_32, %c0_33] : memref<4x1x8xf32, #tpu.memory_space<vmem>>, vector<1x1x8xf32>
    %51 = vector.shape_cast %50 : vector<1x1x8xf32> to vector<1x8xf32>
    %52 = vector.broadcast %51 : vector<1x8xf32> to vector<16x8xf32>
    %53 = arith.addf %49, %52 : vector<16x8xf32>
    %54 = tpu.iota {dimensions = array<i32: 0>} : vector<8x8xi32>
    %55 = tpu.iota {dimensions = array<i32: 1>} : vector<8x8xi32>
    %56 = arith.cmpi sle, %55, %54 : vector<8x8xi32>
    %cst_34 = arith.constant 0.000000e+00 : f32
    %57 = vector.broadcast %cst_34 : f32 to vector<8x32xf32>
    %58 = vector.extract_strided_slice %32 {offsets = [0, 0], sizes = [8, 8], strides = [1, 1]} : vector<16x8xf32> to vector<8x8xf32>
    %59 = arith.truncf %58 : vector<8x8xf32> to vector<8x8xbf16>
    %cst_35 = arith.constant dense<0.000000e+00> : vector<8x8xf32>
    %60 = tpu.matmul %59, %59, %cst_35 {dimension_numbers = #tpu.dot_dimension_numbers<[1], [1], [0], [0], [0, 0, 1, 0], [], []>} : vector<8x8xbf16>, vector<8x8xbf16>, vector<8x8xf32> -> vector<8x8xf32>
    %cst_36 = arith.constant 0.353553385 : f32
    %61 = vector.broadcast %cst_36 : f32 to vector<8x8xf32>
    %62 = arith.mulf %60, %61 : vector<8x8xf32>
    %cst_37 = arith.constant -1.000000e+30 : f32
    %63 = vector.broadcast %cst_37 : f32 to vector<8x8xf32>
    %64 = arith.select %56, %62, %63 : vector<8x8xi1>, vector<8x8xf32>
    %cst_38 = arith.constant dense<0xFF800000> : vector<8xf32>
    %65 = vector.multi_reduction <maximumf>, %64, %cst_38 [1] : vector<8x8xf32> to vector<8xf32>
    %66 = vector.shape_cast %65 : vector<8xf32> to vector<8x1xf32>
    %67 = vector.broadcast %66 : vector<8x1xf32> to vector<8x8xf32>
    %68 = arith.subf %64, %67 : vector<8x8xf32>
    %69 = math.exp %68 : vector<8x8xf32>
    %cst_39 = arith.constant dense<0.000000e+00> : vector<8xf32>
    %70 = vector.multi_reduction <add>, %69, %cst_39 [1] : vector<8x8xf32> to vector<8xf32>
    %71 = vector.shape_cast %70 : vector<8xf32> to vector<8x1xf32>
    %72 = tpu.reciprocal %71 {approx = true} : vector<8x1xf32> -> vector<8x1xf32>
    %73 = vector.broadcast %72 : vector<8x1xf32> to vector<8x8xf32>
    %74 = arith.mulf %69, %73 : vector<8x8xf32>
    %75 = arith.truncf %74 : vector<8x8xf32> to vector<8x8xbf16>
    %cst_40 = arith.constant dense<0.000000e+00> : vector<8x8xf32>
    %76 = tpu.matmul %75, %59, %cst_40 {dimension_numbers = #tpu.dot_dimension_numbers<[1], [0], [0], [1], [0, 0, 1, 1], [], []>} : vector<8x8xbf16>, vector<8x8xbf16>, vector<8x8xf32> -> vector<8x8xf32>
    %77 = arith.truncf %76 : vector<8x8xf32> to vector<8x8xbf16>
    %c0_41 = arith.constant 0 : index
    %c0_42 = arith.constant 0 : index
    %c0_43 = arith.constant 0 : index
    %78 = vector.load %arg5[%c0_41, %c0_42, %c0_43] : memref<4x8x32xbf16, #tpu.memory_space<vmem>>, vector<1x8x32xbf16>
    %79 = vector.shape_cast %78 : vector<1x8x32xbf16> to vector<8x32xbf16>
    %cst_44 = arith.constant dense<0.000000e+00> : vector<8x32xf32>
    %80 = tpu.matmul %77, %79, %cst_44 {dimension_numbers = #tpu.dot_dimension_numbers<[1], [0], [0], [1], [0, 0, 1, 1], [], []>} : vector<8x8xbf16>, vector<8x32xbf16>, vector<8x32xf32> -> vector<8x32xf32>
    %81 = arith.addf %57, %80 : vector<8x32xf32>
    %82 = vector.extract_strided_slice %39 {offsets = [0, 0], sizes = [8, 8], strides = [1, 1]} : vector<16x8xf32> to vector<8x8xf32>
    %83 = arith.truncf %82 : vector<8x8xf32> to vector<8x8xbf16>
    %cst_45 = arith.constant dense<0.000000e+00> : vector<8x8xf32>
    %84 = tpu.matmul %83, %83, %cst_45 {dimension_numbers = #tpu.dot_dimension_numbers<[1], [1], [0], [0], [0, 0, 1, 0], [], []>} : vector<8x8xbf16>, vector<8x8xbf16>, vector<8x8xf32> -> vector<8x8xf32>
    %cst_46 = arith.constant 0.353553385 : f32
    %85 = vector.broadcast %cst_46 : f32 to vector<8x8xf32>
    %86 = arith.mulf %84, %85 : vector<8x8xf32>
    %cst_47 = arith.constant -1.000000e+30 : f32
    %87 = vector.broadcast %cst_47 : f32 to vector<8x8xf32>
    %88 = arith.select %56, %86, %87 : vector<8x8xi1>, vector<8x8xf32>
    %cst_48 = arith.constant dense<0xFF800000> : vector<8xf32>
    %89 = vector.multi_reduction <maximumf>, %88, %cst_48 [1] : vector<8x8xf32> to vector<8xf32>
    %90 = vector.shape_cast %89 : vector<8xf32> to vector<8x1xf32>
    %91 = vector.broadcast %90 : vector<8x1xf32> to vector<8x8xf32>
    %92 = arith.subf %88, %91 : vector<8x8xf32>
    %93 = math.exp %92 : vector<8x8xf32>
    %cst_49 = arith.constant dense<0.000000e+00> : vector<8xf32>
    %94 = vector.multi_reduction <add>, %93, %cst_49 [1] : vector<8x8xf32> to vector<8xf32>
    %95 = vector.shape_cast %94 : vector<8xf32> to vector<8x1xf32>
    %96 = tpu.reciprocal %95 {approx = true} : vector<8x1xf32> -> vector<8x1xf32>
    %97 = vector.broadcast %96 : vector<8x1xf32> to vector<8x8xf32>
    %98 = arith.mulf %93, %97 : vector<8x8xf32>
    %99 = arith.truncf %98 : vector<8x8xf32> to vector<8x8xbf16>
    %cst_50 = arith.constant dense<0.000000e+00> : vector<8x8xf32>
    %100 = tpu.matmul %99, %83, %cst_50 {dimension_numbers = #tpu.dot_dimension_numbers<[1], [0], [0], [1], [0, 0, 1, 1], [], []>} : vector<8x8xbf16>, vector<8x8xbf16>, vector<8x8xf32> -> vector<8x8xf32>
    %101 = arith.truncf %100 : vector<8x8xf32> to vector<8x8xbf16>
    %c1_51 = arith.constant 1 : index
    %c0_52 = arith.constant 0 : index
    %c0_53 = arith.constant 0 : index
    %102 = vector.load %arg5[%c1_51, %c0_52, %c0_53] : memref<4x8x32xbf16, #tpu.memory_space<vmem>>, vector<1x8x32xbf16>
    %103 = vector.shape_cast %102 : vector<1x8x32xbf16> to vector<8x32xbf16>
    %cst_54 = arith.constant dense<0.000000e+00> : vector<8x32xf32>
    %104 = tpu.matmul %101, %103, %cst_54 {dimension_numbers = #tpu.dot_dimension_numbers<[1], [0], [0], [1], [0, 0, 1, 1], [], []>} : vector<8x8xbf16>, vector<8x32xbf16>, vector<8x32xf32> -> vector<8x32xf32>
    %105 = arith.addf %81, %104 : vector<8x32xf32>
    %106 = vector.extract_strided_slice %46 {offsets = [0, 0], sizes = [8, 8], strides = [1, 1]} : vector<16x8xf32> to vector<8x8xf32>
    %107 = arith.truncf %106 : vector<8x8xf32> to vector<8x8xbf16>
    %cst_55 = arith.constant dense<0.000000e+00> : vector<8x8xf32>
    %108 = tpu.matmul %107, %107, %cst_55 {dimension_numbers = #tpu.dot_dimension_numbers<[1], [1], [0], [0], [0, 0, 1, 0], [], []>} : vector<8x8xbf16>, vector<8x8xbf16>, vector<8x8xf32> -> vector<8x8xf32>
    %cst_56 = arith.constant 0.353553385 : f32
    %109 = vector.broadcast %cst_56 : f32 to vector<8x8xf32>
    %110 = arith.mulf %108, %109 : vector<8x8xf32>
    %cst_57 = arith.constant -1.000000e+30 : f32
    %111 = vector.broadcast %cst_57 : f32 to vector<8x8xf32>
    %112 = arith.select %56, %110, %111 : vector<8x8xi1>, vector<8x8xf32>
    %cst_58 = arith.constant dense<0xFF800000> : vector<8xf32>
    %113 = vector.multi_reduction <maximumf>, %112, %cst_58 [1] : vector<8x8xf32> to vector<8xf32>
    %114 = vector.shape_cast %113 : vector<8xf32> to vector<8x1xf32>
    %115 = vector.broadcast %114 : vector<8x1xf32> to vector<8x8xf32>
    %116 = arith.subf %112, %115 : vector<8x8xf32>
    %117 = math.exp %116 : vector<8x8xf32>
    %cst_59 = arith.constant dense<0.000000e+00> : vector<8xf32>
    %118 = vector.multi_reduction <add>, %117, %cst_59 [1] : vector<8x8xf32> to vector<8xf32>
    %119 = vector.shape_cast %118 : vector<8xf32> to vector<8x1xf32>
    %120 = tpu.reciprocal %119 {approx = true} : vector<8x1xf32> -> vector<8x1xf32>
    %121 = vector.broadcast %120 : vector<8x1xf32> to vector<8x8xf32>
    %122 = arith.mulf %117, %121 : vector<8x8xf32>
    %123 = arith.truncf %122 : vector<8x8xf32> to vector<8x8xbf16>
    %cst_60 = arith.constant dense<0.000000e+00> : vector<8x8xf32>
    %124 = tpu.matmul %123, %107, %cst_60 {dimension_numbers = #tpu.dot_dimension_numbers<[1], [0], [0], [1], [0, 0, 1, 1], [], []>} : vector<8x8xbf16>, vector<8x8xbf16>, vector<8x8xf32> -> vector<8x8xf32>
    %125 = arith.truncf %124 : vector<8x8xf32> to vector<8x8xbf16>
    %c2_61 = arith.constant 2 : index
    %c0_62 = arith.constant 0 : index
    %c0_63 = arith.constant 0 : index
    %126 = vector.load %arg5[%c2_61, %c0_62, %c0_63] : memref<4x8x32xbf16, #tpu.memory_space<vmem>>, vector<1x8x32xbf16>
    %127 = vector.shape_cast %126 : vector<1x8x32xbf16> to vector<8x32xbf16>
    %cst_64 = arith.constant dense<0.000000e+00> : vector<8x32xf32>
    %128 = tpu.matmul %125, %127, %cst_64 {dimension_numbers = #tpu.dot_dimension_numbers<[1], [0], [0], [1], [0, 0, 1, 1], [], []>} : vector<8x8xbf16>, vector<8x32xbf16>, vector<8x32xf32> -> vector<8x32xf32>
    %129 = arith.addf %105, %128 : vector<8x32xf32>
    %130 = vector.extract_strided_slice %53 {offsets = [0, 0], sizes = [8, 8], strides = [1, 1]} : vector<16x8xf32> to vector<8x8xf32>
    %131 = arith.truncf %130 : vector<8x8xf32> to vector<8x8xbf16>
    %cst_65 = arith.constant dense<0.000000e+00> : vector<8x8xf32>
    %132 = tpu.matmul %131, %131, %cst_65 {dimension_numbers = #tpu.dot_dimension_numbers<[1], [1], [0], [0], [0, 0, 1, 0], [], []>} : vector<8x8xbf16>, vector<8x8xbf16>, vector<8x8xf32> -> vector<8x8xf32>
    %cst_66 = arith.constant 0.353553385 : f32
    %133 = vector.broadcast %cst_66 : f32 to vector<8x8xf32>
    %134 = arith.mulf %132, %133 : vector<8x8xf32>
    %cst_67 = arith.constant -1.000000e+30 : f32
    %135 = vector.broadcast %cst_67 : f32 to vector<8x8xf32>
    %136 = arith.select %56, %134, %135 : vector<8x8xi1>, vector<8x8xf32>
    %cst_68 = arith.constant dense<0xFF800000> : vector<8xf32>
    %137 = vector.multi_reduction <maximumf>, %136, %cst_68 [1] : vector<8x8xf32> to vector<8xf32>
    %138 = vector.shape_cast %137 : vector<8xf32> to vector<8x1xf32>
    %139 = vector.broadcast %138 : vector<8x1xf32> to vector<8x8xf32>
    %140 = arith.subf %136, %139 : vector<8x8xf32>
    %141 = math.exp %140 : vector<8x8xf32>
    %cst_69 = arith.constant dense<0.000000e+00> : vector<8xf32>
    %142 = vector.multi_reduction <add>, %141, %cst_69 [1] : vector<8x8xf32> to vector<8xf32>
    %143 = vector.shape_cast %142 : vector<8xf32> to vector<8x1xf32>
    %144 = tpu.reciprocal %143 {approx = true} : vector<8x1xf32> -> vector<8x1xf32>
    %145 = vector.broadcast %144 : vector<8x1xf32> to vector<8x8xf32>
    %146 = arith.mulf %141, %145 : vector<8x8xf32>
    %147 = arith.truncf %146 : vector<8x8xf32> to vector<8x8xbf16>
    %cst_70 = arith.constant dense<0.000000e+00> : vector<8x8xf32>
    %148 = tpu.matmul %147, %131, %cst_70 {dimension_numbers = #tpu.dot_dimension_numbers<[1], [0], [0], [1], [0, 0, 1, 1], [], []>} : vector<8x8xbf16>, vector<8x8xbf16>, vector<8x8xf32> -> vector<8x8xf32>
    %149 = arith.truncf %148 : vector<8x8xf32> to vector<8x8xbf16>
    %c3_71 = arith.constant 3 : index
    %c0_72 = arith.constant 0 : index
    %c0_73 = arith.constant 0 : index
    %150 = vector.load %arg5[%c3_71, %c0_72, %c0_73] : memref<4x8x32xbf16, #tpu.memory_space<vmem>>, vector<1x8x32xbf16>
    %151 = vector.shape_cast %150 : vector<1x8x32xbf16> to vector<8x32xbf16>
    %cst_74 = arith.constant dense<0.000000e+00> : vector<8x32xf32>
    %152 = tpu.matmul %149, %151, %cst_74 {dimension_numbers = #tpu.dot_dimension_numbers<[1], [0], [0], [1], [0, 0, 1, 1], [], []>} : vector<8x8xbf16>, vector<8x32xbf16>, vector<8x32xf32> -> vector<8x32xf32>
    %153 = arith.addf %129, %152 : vector<8x32xf32>
    %cst_75 = arith.constant 0.000000e+00 : f32
    %154 = vector.broadcast %cst_75 : f32 to vector<8x32xf32>
    %155 = vector.extract_strided_slice %32 {offsets = [8, 0], sizes = [8, 8], strides = [1, 1]} : vector<16x8xf32> to vector<8x8xf32>
    %156 = arith.truncf %155 : vector<8x8xf32> to vector<8x8xbf16>
    %cst_76 = arith.constant dense<0.000000e+00> : vector<8x8xf32>
    %157 = tpu.matmul %156, %156, %cst_76 {dimension_numbers = #tpu.dot_dimension_numbers<[1], [1], [0], [0], [0, 0, 1, 0], [], []>} : vector<8x8xbf16>, vector<8x8xbf16>, vector<8x8xf32> -> vector<8x8xf32>
    %cst_77 = arith.constant 0.353553385 : f32
    %158 = vector.broadcast %cst_77 : f32 to vector<8x8xf32>
    %159 = arith.mulf %157, %158 : vector<8x8xf32>
    %cst_78 = arith.constant -1.000000e+30 : f32
    %160 = vector.broadcast %cst_78 : f32 to vector<8x8xf32>
    %161 = arith.select %56, %159, %160 : vector<8x8xi1>, vector<8x8xf32>
    %cst_79 = arith.constant dense<0xFF800000> : vector<8xf32>
    %162 = vector.multi_reduction <maximumf>, %161, %cst_79 [1] : vector<8x8xf32> to vector<8xf32>
    %163 = vector.shape_cast %162 : vector<8xf32> to vector<8x1xf32>
    %164 = vector.broadcast %163 : vector<8x1xf32> to vector<8x8xf32>
    %165 = arith.subf %161, %164 : vector<8x8xf32>
    %166 = math.exp %165 : vector<8x8xf32>
    %cst_80 = arith.constant dense<0.000000e+00> : vector<8xf32>
    %167 = vector.multi_reduction <add>, %166, %cst_80 [1] : vector<8x8xf32> to vector<8xf32>
    %168 = vector.shape_cast %167 : vector<8xf32> to vector<8x1xf32>
    %169 = tpu.reciprocal %168 {approx = true} : vector<8x1xf32> -> vector<8x1xf32>
    %170 = vector.broadcast %169 : vector<8x1xf32> to vector<8x8xf32>
    %171 = arith.mulf %166, %170 : vector<8x8xf32>
    %172 = arith.truncf %171 : vector<8x8xf32> to vector<8x8xbf16>
    %cst_81 = arith.constant dense<0.000000e+00> : vector<8x8xf32>
    %173 = tpu.matmul %172, %156, %cst_81 {dimension_numbers = #tpu.dot_dimension_numbers<[1], [0], [0], [1], [0, 0, 1, 1], [], []>} : vector<8x8xbf16>, vector<8x8xbf16>, vector<8x8xf32> -> vector<8x8xf32>
    %174 = arith.truncf %173 : vector<8x8xf32> to vector<8x8xbf16>
    %c0_82 = arith.constant 0 : index
    %c0_83 = arith.constant 0 : index
    %c0_84 = arith.constant 0 : index
    %175 = vector.load %arg5[%c0_82, %c0_83, %c0_84] : memref<4x8x32xbf16, #tpu.memory_space<vmem>>, vector<1x8x32xbf16>
    %176 = vector.shape_cast %175 : vector<1x8x32xbf16> to vector<8x32xbf16>
    %cst_85 = arith.constant dense<0.000000e+00> : vector<8x32xf32>
    %177 = tpu.matmul %174, %176, %cst_85 {dimension_numbers = #tpu.dot_dimension_numbers<[1], [0], [0], [1], [0, 0, 1, 1], [], []>} : vector<8x8xbf16>, vector<8x32xbf16>, vector<8x32xf32> -> vector<8x32xf32>
    %178 = arith.addf %154, %177 : vector<8x32xf32>
    %179 = vector.extract_strided_slice %39 {offsets = [8, 0], sizes = [8, 8], strides = [1, 1]} : vector<16x8xf32> to vector<8x8xf32>
    %180 = arith.truncf %179 : vector<8x8xf32> to vector<8x8xbf16>
    %cst_86 = arith.constant dense<0.000000e+00> : vector<8x8xf32>
    %181 = tpu.matmul %180, %180, %cst_86 {dimension_numbers = #tpu.dot_dimension_numbers<[1], [1], [0], [0], [0, 0, 1, 0], [], []>} : vector<8x8xbf16>, vector<8x8xbf16>, vector<8x8xf32> -> vector<8x8xf32>
    %cst_87 = arith.constant 0.353553385 : f32
    %182 = vector.broadcast %cst_87 : f32 to vector<8x8xf32>
    %183 = arith.mulf %181, %182 : vector<8x8xf32>
    %cst_88 = arith.constant -1.000000e+30 : f32
    %184 = vector.broadcast %cst_88 : f32 to vector<8x8xf32>
    %185 = arith.select %56, %183, %184 : vector<8x8xi1>, vector<8x8xf32>
    %cst_89 = arith.constant dense<0xFF800000> : vector<8xf32>
    %186 = vector.multi_reduction <maximumf>, %185, %cst_89 [1] : vector<8x8xf32> to vector<8xf32>
    %187 = vector.shape_cast %186 : vector<8xf32> to vector<8x1xf32>
    %188 = vector.broadcast %187 : vector<8x1xf32> to vector<8x8xf32>
    %189 = arith.subf %185, %188 : vector<8x8xf32>
    %190 = math.exp %189 : vector<8x8xf32>
    %cst_90 = arith.constant dense<0.000000e+00> : vector<8xf32>
    %191 = vector.multi_reduction <add>, %190, %cst_90 [1] : vector<8x8xf32> to vector<8xf32>
    %192 = vector.shape_cast %191 : vector<8xf32> to vector<8x1xf32>
    %193 = tpu.reciprocal %192 {approx = true} : vector<8x1xf32> -> vector<8x1xf32>
    %194 = vector.broadcast %193 : vector<8x1xf32> to vector<8x8xf32>
    %195 = arith.mulf %190, %194 : vector<8x8xf32>
    %196 = arith.truncf %195 : vector<8x8xf32> to vector<8x8xbf16>
    %cst_91 = arith.constant dense<0.000000e+00> : vector<8x8xf32>
    %197 = tpu.matmul %196, %180, %cst_91 {dimension_numbers = #tpu.dot_dimension_numbers<[1], [0], [0], [1], [0, 0, 1, 1], [], []>} : vector<8x8xbf16>, vector<8x8xbf16>, vector<8x8xf32> -> vector<8x8xf32>
    %198 = arith.truncf %197 : vector<8x8xf32> to vector<8x8xbf16>
    %c1_92 = arith.constant 1 : index
    %c0_93 = arith.constant 0 : index
    %c0_94 = arith.constant 0 : index
    %199 = vector.load %arg5[%c1_92, %c0_93, %c0_94] : memref<4x8x32xbf16, #tpu.memory_space<vmem>>, vector<1x8x32xbf16>
    %200 = vector.shape_cast %199 : vector<1x8x32xbf16> to vector<8x32xbf16>
    %cst_95 = arith.constant dense<0.000000e+00> : vector<8x32xf32>
    %201 = tpu.matmul %198, %200, %cst_95 {dimension_numbers = #tpu.dot_dimension_numbers<[1], [0], [0], [1], [0, 0, 1, 1], [], []>} : vector<8x8xbf16>, vector<8x32xbf16>, vector<8x32xf32> -> vector<8x32xf32>
    %202 = arith.addf %178, %201 : vector<8x32xf32>
    %203 = vector.extract_strided_slice %46 {offsets = [8, 0], sizes = [8, 8], strides = [1, 1]} : vector<16x8xf32> to vector<8x8xf32>
    %204 = arith.truncf %203 : vector<8x8xf32> to vector<8x8xbf16>
    %cst_96 = arith.constant dense<0.000000e+00> : vector<8x8xf32>
    %205 = tpu.matmul %204, %204, %cst_96 {dimension_numbers = #tpu.dot_dimension_numbers<[1], [1], [0], [0], [0, 0, 1, 0], [], []>} : vector<8x8xbf16>, vector<8x8xbf16>, vector<8x8xf32> -> vector<8x8xf32>
    %cst_97 = arith.constant 0.353553385 : f32
    %206 = vector.broadcast %cst_97 : f32 to vector<8x8xf32>
    %207 = arith.mulf %205, %206 : vector<8x8xf32>
    %cst_98 = arith.constant -1.000000e+30 : f32
    %208 = vector.broadcast %cst_98 : f32 to vector<8x8xf32>
    %209 = arith.select %56, %207, %208 : vector<8x8xi1>, vector<8x8xf32>
    %cst_99 = arith.constant dense<0xFF800000> : vector<8xf32>
    %210 = vector.multi_reduction <maximumf>, %209, %cst_99 [1] : vector<8x8xf32> to vector<8xf32>
    %211 = vector.shape_cast %210 : vector<8xf32> to vector<8x1xf32>
    %212 = vector.broadcast %211 : vector<8x1xf32> to vector<8x8xf32>
    %213 = arith.subf %209, %212 : vector<8x8xf32>
    %214 = math.exp %213 : vector<8x8xf32>
    %cst_100 = arith.constant dense<0.000000e+00> : vector<8xf32>
    %215 = vector.multi_reduction <add>, %214, %cst_100 [1] : vector<8x8xf32> to vector<8xf32>
    %216 = vector.shape_cast %215 : vector<8xf32> to vector<8x1xf32>
    %217 = tpu.reciprocal %216 {approx = true} : vector<8x1xf32> -> vector<8x1xf32>
    %218 = vector.broadcast %217 : vector<8x1xf32> to vector<8x8xf32>
    %219 = arith.mulf %214, %218 : vector<8x8xf32>
    %220 = arith.truncf %219 : vector<8x8xf32> to vector<8x8xbf16>
    %cst_101 = arith.constant dense<0.000000e+00> : vector<8x8xf32>
    %221 = tpu.matmul %220, %204, %cst_101 {dimension_numbers = #tpu.dot_dimension_numbers<[1], [0], [0], [1], [0, 0, 1, 1], [], []>} : vector<8x8xbf16>, vector<8x8xbf16>, vector<8x8xf32> -> vector<8x8xf32>
    %222 = arith.truncf %221 : vector<8x8xf32> to vector<8x8xbf16>
    %c2_102 = arith.constant 2 : index
    %c0_103 = arith.constant 0 : index
    %c0_104 = arith.constant 0 : index
    %223 = vector.load %arg5[%c2_102, %c0_103, %c0_104] : memref<4x8x32xbf16, #tpu.memory_space<vmem>>, vector<1x8x32xbf16>
    %224 = vector.shape_cast %223 : vector<1x8x32xbf16> to vector<8x32xbf16>
    %cst_105 = arith.constant dense<0.000000e+00> : vector<8x32xf32>
    %225 = tpu.matmul %222, %224, %cst_105 {dimension_numbers = #tpu.dot_dimension_numbers<[1], [0], [0], [1], [0, 0, 1, 1], [], []>} : vector<8x8xbf16>, vector<8x32xbf16>, vector<8x32xf32> -> vector<8x32xf32>
    %226 = arith.addf %202, %225 : vector<8x32xf32>
    %227 = vector.extract_strided_slice %53 {offsets = [8, 0], sizes = [8, 8], strides = [1, 1]} : vector<16x8xf32> to vector<8x8xf32>
    %228 = arith.truncf %227 : vector<8x8xf32> to vector<8x8xbf16>
    %cst_106 = arith.constant dense<0.000000e+00> : vector<8x8xf32>
    %229 = tpu.matmul %228, %228, %cst_106 {dimension_numbers = #tpu.dot_dimension_numbers<[1], [1], [0], [0], [0, 0, 1, 0], [], []>} : vector<8x8xbf16>, vector<8x8xbf16>, vector<8x8xf32> -> vector<8x8xf32>
    %cst_107 = arith.constant 0.353553385 : f32
    %230 = vector.broadcast %cst_107 : f32 to vector<8x8xf32>
    %231 = arith.mulf %229, %230 : vector<8x8xf32>
    %cst_108 = arith.constant -1.000000e+30 : f32
    %232 = vector.broadcast %cst_108 : f32 to vector<8x8xf32>
    %233 = arith.select %56, %231, %232 : vector<8x8xi1>, vector<8x8xf32>
    %cst_109 = arith.constant dense<0xFF800000> : vector<8xf32>
    %234 = vector.multi_reduction <maximumf>, %233, %cst_109 [1] : vector<8x8xf32> to vector<8xf32>
    %235 = vector.shape_cast %234 : vector<8xf32> to vector<8x1xf32>
    %236 = vector.broadcast %235 : vector<8x1xf32> to vector<8x8xf32>
    %237 = arith.subf %233, %236 : vector<8x8xf32>
    %238 = math.exp %237 : vector<8x8xf32>
    %cst_110 = arith.constant dense<0.000000e+00> : vector<8xf32>
    %239 = vector.multi_reduction <add>, %238, %cst_110 [1] : vector<8x8xf32> to vector<8xf32>
    %240 = vector.shape_cast %239 : vector<8xf32> to vector<8x1xf32>
    %241 = tpu.reciprocal %240 {approx = true} : vector<8x1xf32> -> vector<8x1xf32>
    %242 = vector.broadcast %241 : vector<8x1xf32> to vector<8x8xf32>
    %243 = arith.mulf %238, %242 : vector<8x8xf32>
    %244 = arith.truncf %243 : vector<8x8xf32> to vector<8x8xbf16>
    %cst_111 = arith.constant dense<0.000000e+00> : vector<8x8xf32>
    %245 = tpu.matmul %244, %228, %cst_111 {dimension_numbers = #tpu.dot_dimension_numbers<[1], [0], [0], [1], [0, 0, 1, 1], [], []>} : vector<8x8xbf16>, vector<8x8xbf16>, vector<8x8xf32> -> vector<8x8xf32>
    %246 = arith.truncf %245 : vector<8x8xf32> to vector<8x8xbf16>
    %c3_112 = arith.constant 3 : index
    %c0_113 = arith.constant 0 : index
    %c0_114 = arith.constant 0 : index
    %247 = vector.load %arg5[%c3_112, %c0_113, %c0_114] : memref<4x8x32xbf16, #tpu.memory_space<vmem>>, vector<1x8x32xbf16>
    %248 = vector.shape_cast %247 : vector<1x8x32xbf16> to vector<8x32xbf16>
    %cst_115 = arith.constant dense<0.000000e+00> : vector<8x32xf32>
    %249 = tpu.matmul %246, %248, %cst_115 {dimension_numbers = #tpu.dot_dimension_numbers<[1], [0], [0], [1], [0, 0, 1, 1], [], []>} : vector<8x8xbf16>, vector<8x32xbf16>, vector<8x32xf32> -> vector<8x32xf32>
    %250 = arith.addf %226, %249 : vector<8x32xf32>
    %251 = tpu.concatenate %153, %250 in 0 : vector<8x32xf32>, vector<8x32xf32> -> vector<16x32xf32>
    %c0_116 = arith.constant 0 : index
    %c0_117 = arith.constant 0 : index
    %252 = vector.load %arg6[%c0_116, %c0_117] : memref<1x32xf32, #tpu.memory_space<vmem>>, vector<1x32xf32>
    %253 = vector.broadcast %252 : vector<1x32xf32> to vector<16x32xf32>
    %254 = arith.addf %251, %253 : vector<16x32xf32>
    %255 = arith.addf %0, %254 : vector<16x32xf32>
    %c0_118 = arith.constant 0 : index
    %c0_119 = arith.constant 0 : index
    %256 = vector.load %arg7[%c0_118, %c0_119] : memref<1x32xf32, #tpu.memory_space<vmem>>, vector<1x32xf32>
    %c0_120 = arith.constant 0 : index
    %c0_121 = arith.constant 0 : index
    %257 = vector.load %arg8[%c0_120, %c0_121] : memref<1x32xf32, #tpu.memory_space<vmem>>, vector<1x32xf32>
    %cst_122 = arith.constant dense<0.000000e+00> : vector<16xf32>
    %258 = vector.multi_reduction <add>, %255, %cst_122 [1] : vector<16x32xf32> to vector<16xf32>
    %259 = vector.shape_cast %258 : vector<16xf32> to vector<16x1xf32>
    %cst_123 = arith.constant 3.200000e+01 : f32
    %260 = vector.broadcast %cst_123 : f32 to vector<16x1xf32>
    %261 = arith.divf %259, %260 : vector<16x1xf32>
    %262 = vector.broadcast %261 : vector<16x1xf32> to vector<16x32xf32>
    %263 = arith.subf %255, %262 : vector<16x32xf32>
    %264 = arith.mulf %263, %263 : vector<16x32xf32>
    %cst_124 = arith.constant dense<0.000000e+00> : vector<16xf32>
    %265 = vector.multi_reduction <add>, %264, %cst_124 [1] : vector<16x32xf32> to vector<16xf32>
    %266 = vector.shape_cast %265 : vector<16xf32> to vector<16x1xf32>
    %cst_125 = arith.constant 3.200000e+01 : f32
    %267 = vector.broadcast %cst_125 : f32 to vector<16x1xf32>
    %268 = arith.divf %266, %267 : vector<16x1xf32>
    %269 = vector.broadcast %261 : vector<16x1xf32> to vector<16x32xf32>
    %270 = arith.subf %255, %269 : vector<16x32xf32>
    %cst_126 = arith.constant 9.99999974E-6 : f32
    %271 = vector.broadcast %cst_126 : f32 to vector<16x1xf32>
    %272 = arith.addf %268, %271 : vector<16x1xf32>
    %273 = math.rsqrt %272 : vector<16x1xf32>
    %274 = vector.broadcast %273 : vector<16x1xf32> to vector<16x32xf32>
    %275 = arith.mulf %270, %274 : vector<16x32xf32>
    %276 = vector.broadcast %256 : vector<1x32xf32> to vector<16x32xf32>
    %277 = arith.mulf %275, %276 : vector<16x32xf32>
    %278 = vector.broadcast %257 : vector<1x32xf32> to vector<16x32xf32>
    %279 = arith.addf %277, %278 : vector<16x32xf32>
    %280 = arith.truncf %279 : vector<16x32xf32> to vector<16x32xbf16>
    %c0_127 = arith.constant 0 : index
    %c0_128 = arith.constant 0 : index
    %281 = vector.load %arg9[%c0_127, %c0_128] : memref<32x128xbf16, #tpu.memory_space<vmem>>, vector<32x128xbf16>
    %cst_129 = arith.constant dense<0.000000e+00> : vector<16x128xf32>
    %282 = tpu.matmul %280, %281, %cst_129 {dimension_numbers = #tpu.dot_dimension_numbers<[1], [0], [0], [1], [0, 0, 1, 1], [], []>} : vector<16x32xbf16>, vector<32x128xbf16>, vector<16x128xf32> -> vector<16x128xf32>
    %c0_130 = arith.constant 0 : index
    %c0_131 = arith.constant 0 : index
    %283 = vector.load %arg10[%c0_130, %c0_131] : memref<1x128xf32, #tpu.memory_space<vmem>>, vector<1x128xf32>
    %284 = vector.broadcast %283 : vector<1x128xf32> to vector<16x128xf32>
    %285 = arith.addf %282, %284 : vector<16x128xf32>
    %cst_132 = arith.constant 5.000000e-01 : f32
    %286 = vector.broadcast %cst_132 : f32 to vector<16x128xf32>
    %287 = arith.mulf %286, %285 : vector<16x128xf32>
    %cst_133 = arith.constant 0.707106769 : f32
    %288 = vector.broadcast %cst_133 : f32 to vector<16x128xf32>
    %289 = arith.mulf %285, %288 : vector<16x128xf32>
    %290 = math.erf %289 : vector<16x128xf32>
    %cst_134 = arith.constant 1.000000e+00 : f32
    %291 = vector.broadcast %cst_134 : f32 to vector<16x128xf32>
    %292 = arith.addf %291, %290 : vector<16x128xf32>
    %293 = arith.mulf %287, %292 : vector<16x128xf32>
    %294 = arith.truncf %293 : vector<16x128xf32> to vector<16x128xbf16>
    %c0_135 = arith.constant 0 : index
    %c0_136 = arith.constant 0 : index
    %295 = vector.load %arg11[%c0_135, %c0_136] : memref<128x32xbf16, #tpu.memory_space<vmem>>, vector<128x32xbf16>
    %cst_137 = arith.constant dense<0.000000e+00> : vector<16x32xf32>
    %296 = tpu.matmul %294, %295, %cst_137 {dimension_numbers = #tpu.dot_dimension_numbers<[1], [0], [0], [1], [0, 0, 1, 1], [], []>} : vector<16x128xbf16>, vector<128x32xbf16>, vector<16x32xf32> -> vector<16x32xf32>
    %c0_138 = arith.constant 0 : index
    %c0_139 = arith.constant 0 : index
    %297 = vector.load %arg12[%c0_138, %c0_139] : memref<1x32xf32, #tpu.memory_space<vmem>>, vector<1x32xf32>
    %298 = vector.broadcast %297 : vector<1x32xf32> to vector<16x32xf32>
    %299 = arith.addf %296, %298 : vector<16x32xf32>
    %300 = arith.addf %255, %299 : vector<16x32xf32>
    %c0_140 = arith.constant 0 : index
    %c0_141 = arith.constant 0 : index
    %301 = vector.load %arg22[%c0_140, %c0_141] : memref<16x32xf32, #tpu.memory_space<vmem>>, vector<16x32xf32>
    tpu.vector_store %arg22[%c0_140, %c0_141], %300 {strides = array<i32>} : memref<16x32xf32, #tpu.memory_space<vmem>>, vector<16x32xf32>,
    %302 = tpu.iota {dimensions = array<i32: 1>} : vector<2x16xi32>
    %303 = tpu.iota {dimensions = array<i32: 0>} : vector<2x16xi32>
    %c8_i32 = arith.constant 8 : i32
    %304 = vector.broadcast %c8_i32 : i32 to vector<2x16xi32>
    %305 = arith.muli %303, %304 : vector<2x16xi32>
    %306 = arith.cmpi sge, %302, %305 : vector<2x16xi32>
    %c8_i32_142 = arith.constant 8 : i32
    %307 = vector.broadcast %c8_i32_142 : i32 to vector<2x16xi32>
    %308 = arith.addi %305, %307 : vector<2x16xi32>
    %309 = arith.cmpi slt, %302, %308 : vector<2x16xi32>
    %310 = arith.andi %306, %309 : vector<2x16xi1>
    %cst_143 = arith.constant 1.250000e-01 : f32
    %cst_144 = arith.constant 0.000000e+00 : f32
    %311 = vector.broadcast %cst_143 : f32 to vector<2x16xf32>
    %312 = vector.broadcast %cst_144 : f32 to vector<2x16xf32>
    %313 = arith.select %310, %311, %312 : vector<2x16xi1>, vector<2x16xf32>
    %cst_145 = arith.constant dense<0.000000e+00> : vector<2x32xf32>
    %314 = tpu.matmul %313, %300, %cst_145 {dimension_numbers = #tpu.dot_dimension_numbers<[1], [0], [0], [1], [0, 0, 1, 1], [], []>} : vector<2x16xf32>, vector<16x32xf32>, vector<2x32xf32> -> vector<2x32xf32>
    %c0_146 = arith.constant 0 : index
    %c0_147 = arith.constant 0 : index
    %315 = vector.load %arg13[%c0_146, %c0_147] : memref<1x32xf32, #tpu.memory_space<vmem>>, vector<1x32xf32>
    %c0_148 = arith.constant 0 : index
    %c0_149 = arith.constant 0 : index
    %316 = vector.load %arg14[%c0_148, %c0_149] : memref<1x32xf32, #tpu.memory_space<vmem>>, vector<1x32xf32>
    %cst_150 = arith.constant dense<0.000000e+00> : vector<2xf32>
    %317 = vector.multi_reduction <add>, %314, %cst_150 [1] : vector<2x32xf32> to vector<2xf32>
    %318 = vector.shape_cast %317 : vector<2xf32> to vector<2x1xf32>
    %cst_151 = arith.constant 3.200000e+01 : f32
    %319 = vector.broadcast %cst_151 : f32 to vector<2x1xf32>
    %320 = arith.divf %318, %319 : vector<2x1xf32>
    %321 = vector.broadcast %320 : vector<2x1xf32> to vector<2x32xf32>
    %322 = arith.subf %314, %321 : vector<2x32xf32>
    %323 = arith.mulf %322, %322 : vector<2x32xf32>
    %cst_152 = arith.constant dense<0.000000e+00> : vector<2xf32>
    %324 = vector.multi_reduction <add>, %323, %cst_152 [1] : vector<2x32xf32> to vector<2xf32>
    %325 = vector.shape_cast %324 : vector<2xf32> to vector<2x1xf32>
    %cst_153 = arith.constant 3.200000e+01 : f32
    %326 = vector.broadcast %cst_153 : f32 to vector<2x1xf32>
    %327 = arith.divf %325, %326 : vector<2x1xf32>
    %328 = vector.broadcast %320 : vector<2x1xf32> to vector<2x32xf32>
    %329 = arith.subf %314, %328 : vector<2x32xf32>
    %cst_154 = arith.constant 9.99999974E-6 : f32
    %330 = vector.broadcast %cst_154 : f32 to vector<2x1xf32>
    %331 = arith.addf %327, %330 : vector<2x1xf32>
    %332 = math.rsqrt %331 : vector<2x1xf32>
    %333 = vector.broadcast %332 : vector<2x1xf32> to vector<2x32xf32>
    %334 = arith.mulf %329, %333 : vector<2x32xf32>
    %335 = vector.broadcast %315 : vector<1x32xf32> to vector<2x32xf32>
    %336 = arith.mulf %334, %335 : vector<2x32xf32>
    %337 = vector.broadcast %316 : vector<1x32xf32> to vector<2x32xf32>
    %338 = arith.addf %336, %337 : vector<2x32xf32>
    %339 = arith.truncf %338 : vector<2x32xf32> to vector<2x32xbf16>
    %c0_155 = arith.constant 0 : index
    %c0_156 = arith.constant 0 : index
    %340 = vector.load %arg15[%c0_155, %c0_156] : memref<32x1024xbf16, #tpu.memory_space<vmem>>, vector<32x1024xbf16>
    %cst_157 = arith.constant dense<0.000000e+00> : vector<2x1024xf32>
    %341 = tpu.matmul %339, %340, %cst_157 {dimension_numbers = #tpu.dot_dimension_numbers<[1], [0], [0], [1], [0, 0, 1, 1], [], []>} : vector<2x32xbf16>, vector<32x1024xbf16>, vector<2x1024xf32> -> vector<2x1024xf32>
    %c0_158 = arith.constant 0 : index
    %c0_159 = arith.constant 0 : index
    %342 = vector.load %arg16[%c0_158, %c0_159] : memref<1x1024xf32, #tpu.memory_space<vmem>>, vector<1x1024xf32>
    %343 = vector.broadcast %342 : vector<1x1024xf32> to vector<2x1024xf32>
    %344 = arith.addf %341, %343 : vector<2x1024xf32>
    %cst_160 = arith.constant 5.000000e-01 : f32
    %345 = vector.broadcast %cst_160 : f32 to vector<2x1024xf32>
    %346 = arith.mulf %345, %344 : vector<2x1024xf32>
    %cst_161 = arith.constant 0.707106769 : f32
    %347 = vector.broadcast %cst_161 : f32 to vector<2x1024xf32>
    %348 = arith.mulf %344, %347 : vector<2x1024xf32>
    %349 = math.erf %348 : vector<2x1024xf32>
    %cst_162 = arith.constant 1.000000e+00 : f32
    %350 = vector.broadcast %cst_162 : f32 to vector<2x1024xf32>
    %351 = arith.addf %350, %349 : vector<2x1024xf32>
    %352 = arith.mulf %346, %351 : vector<2x1024xf32>
    %353 = arith.truncf %352 : vector<2x1024xf32> to vector<2x1024xbf16>
    %c0_163 = arith.constant 0 : index
    %c0_164 = arith.constant 0 : index
    %354 = vector.load %arg17[%c0_163, %c0_164] : memref<1024x512xbf16, #tpu.memory_space<vmem>>, vector<1024x512xbf16>
    %cst_165 = arith.constant dense<0.000000e+00> : vector<2x512xf32>
    %355 = tpu.matmul %353, %354, %cst_165 {dimension_numbers = #tpu.dot_dimension_numbers<[1], [0], [0], [1], [0, 0, 1, 1], [], []>} : vector<2x1024xbf16>, vector<1024x512xbf16>, vector<2x512xf32> -> vector<2x512xf32>
    %c0_166 = arith.constant 0 : index
    %c0_167 = arith.constant 0 : index
    %356 = vector.load %arg18[%c0_166, %c0_167] : memref<1x512xf32, #tpu.memory_space<vmem>>, vector<1x512xf32>
    %357 = vector.broadcast %356 : vector<1x512xf32> to vector<2x512xf32>
    %358 = arith.addf %355, %357 : vector<2x512xf32>
    %cst_168 = arith.constant 5.000000e-01 : f32
    %359 = vector.broadcast %cst_168 : f32 to vector<2x512xf32>
    %360 = arith.mulf %359, %358 : vector<2x512xf32>
    %cst_169 = arith.constant 0.707106769 : f32
    %361 = vector.broadcast %cst_169 : f32 to vector<2x512xf32>
    %362 = arith.mulf %358, %361 : vector<2x512xf32>
    %363 = math.erf %362 : vector<2x512xf32>
    %cst_170 = arith.constant 1.000000e+00 : f32
    %364 = vector.broadcast %cst_170 : f32 to vector<2x512xf32>
    %365 = arith.addf %364, %363 : vector<2x512xf32>
    %366 = arith.mulf %360, %365 : vector<2x512xf32>
    %367 = arith.truncf %366 : vector<2x512xf32> to vector<2x512xbf16>
    %c0_171 = arith.constant 0 : index
    %c0_172 = arith.constant 0 : index
    %368 = vector.load %arg19[%c0_171, %c0_172] : memref<512x8xbf16, #tpu.memory_space<vmem>>, vector<512x8xbf16>
    %cst_173 = arith.constant dense<0.000000e+00> : vector<2x8xf32>
    %369 = tpu.matmul %367, %368, %cst_173 {dimension_numbers = #tpu.dot_dimension_numbers<[1], [0], [0], [1], [0, 0, 1, 1], [], []>} : vector<2x512xbf16>, vector<512x8xbf16>, vector<2x8xf32> -> vector<2x8xf32>
    %c0_174 = arith.constant 0 : index
    %c0_175 = arith.constant 0 : index
    %370 = vector.load %arg20[%c0_174, %c0_175] : memref<1x8xf32, #tpu.memory_space<vmem>>, vector<1x8xf32>
    %371 = vector.broadcast %370 : vector<1x8xf32> to vector<2x8xf32>
    %372 = arith.addf %369, %371 : vector<2x8xf32>
    %c0_176 = arith.constant 0 : index
    %c0_177 = arith.constant 0 : index
    %373 = vector.load %arg21[%c0_176, %c0_177] : memref<2x8xf32, #tpu.memory_space<vmem>>, vector<2x8xf32>
    %374 = arith.addf %373, %372 : vector<2x8xf32>
    %c0_178 = arith.constant 0 : index
    %c0_179 = arith.constant 0 : index
    %375 = vector.load %arg23[%c0_178, %c0_179] : memref<2x8xf32, #tpu.memory_space<vmem>>, vector<2x8xf32>
    tpu.vector_store %arg23[%c0_178, %c0_179], %374 {strides = array<i32>} : memref<2x8xf32, #tpu.memory_space<vmem>>, vector<2x8xf32>,
    return
  }
}

</mosaic_0001>

<bundles_post_ra>
// kernel: tpu_custom_call.1
= control target key start
LH: loop header
LB: loop body
LE: loop exit
PB: predicated region body
PF: predicated region fallthrough
CT: control target
= control target key end

     0   :  { %s6725_s0 = inlined_call_operand.vmem [shape: f32[16,32], index: 0, kind: input, shape index: {}]   ;;  %s6726_s1 = inlined_call_operand.vmem [shape: f32[1,32], index: 1, kind: input, shape index: {}]   ;;  %s6727_s2 = inlined_call_operand.vmem [shape: f32[1,32], index: 2, kind: input, shape index: {}]   ;;  %s6728_s3 = inlined_call_operand.vmem [shape: bf16[4,32,8], index: 3, kind: input, shape index: {}]   ;;  %s6729_s4 = inlined_call_operand.vmem [shape: f32[4,1,8], index: 4, kind: input, shape index: {}]   ;;  %s6730_s5 = inlined_call_operand.vmem [shape: bf16[4,8,32], index: 5, kind: input, shape index: {}]   ;;  %s6731_s6 = inlined_call_operand.vmem [shape: f32[1,32], index: 6, kind: input, shape index: {}]   ;;  %s6732_s7 = inlined_call_operand.vmem [shape: f32[1,32], index: 7, kind: input, shape index: {}]   ;;  %s6733_s8 = inlined_call_operand.vmem [shape: f32[1,32], index: 8, kind: input, shape index: {}]   ;;  %s6734_s9 = inlined_call_operand.vmem [shape: bf16[32,128], index: 9, kind: input, shape index: {}]   ;;  %s6735_s10 = inlined_call_operand.vmem [shape: f32[1,128], index: 10, kind: input, shape index: {}]   ;;  %s6736_s11 = inlined_call_operand.vmem [shape: bf16[128,32], index: 11, kind: input, shape index: {}]   ;;  %s6737_s12 = inlined_call_operand.vmem [shape: f32[1,32], index: 12, kind: input, shape index: {}]   ;;  %s6738_s13 = inlined_call_operand.vmem [shape: f32[1,32], index: 13, kind: input, shape index: {}]   ;;  %s6739_s14 = inlined_call_operand.vmem [shape: f32[1,32], index: 14, kind: input, shape index: {}]   ;;  %s6740_s15 = inlined_call_operand.vmem [shape: bf16[32,1024], index: 15, kind: input, shape index: {}]   ;;  %s6741_s16 = inlined_call_operand.vmem [shape: f32[1,1024], index: 16, kind: input, shape index: {}]   ;;  %s6742_s17 = inlined_call_operand.hbm [shape: bf16[1024,512], index: 17, kind: input, shape index: {}]   ;;  %s6743_s18 = inlined_call_operand.vmem [shape: f32[1,512], index: 18, kind: input, shape index: {}]   ;;  %s6744_s19 = inlined_call_operand.vmem [shape: bf16[512,8], index: 19, kind: input, shape index: {}]   ;;  %s6745_s20 = inlined_call_operand.vmem [shape: f32[1,8], index: 20, kind: input, shape index: {}]   ;;  %s6746_s21 = inlined_call_operand.vmem [shape: f32[2,8], index: 21, kind: input, shape index: {}]   ;;  %s6747_s22 = inlined_call_operand.hbm [shape: f32[16,32], index: 22, kind: output, shape index: {0}]   ;;  %s6748_s23 = inlined_call_operand.hbm [shape: f32[2,8], index: 23, kind: output, shape index: {1}]  }
   0x1   :  { %6753 = sst [smem:[#allocation11_spill]] %s6725_s0 }
   0x2   :  { %6754 = sst [smem:[#allocation12_spill]] %s6726_s1 }
   0x3   :  { %6755 = sst [smem:[#allocation13_spill]] %s6727_s2 }
   0x4   :  { %6756 = sst [smem:[#allocation14_spill]] %s6728_s3 }
   0x5   :  { %6757 = sst [smem:[#allocation15_spill]] %s6729_s4 }
   0x6   :  { %6758 = sst [smem:[#allocation16_spill]] %s6730_s5 }
   0x7   :  { %6759 = sst [smem:[#allocation17_spill]] %s6731_s6 }
   0x8   :  { %6760 = sst [smem:[#allocation18_spill]] %s6732_s7 }
   0x9   :  { %29 = vsyncpa [#allocation3], 0 }
   0xa   :  { %30 = vsyncpa [#allocation4], 0 }
   0xb   :  { %31 = vsyncpa [#allocation7], 0  ;;  %s5950_s4 = smov [#allocation2]   ;;  %s5878_s5 = scalar_lea.hbm %s6742_s17, 32768 }
   0xc   :  { %s71_s30 = sshll.u32 %s5950_s4, 4  ;;  %p5879_p0 = scmp.ne.s32.totalorder %s6742_s17, %s5878_s5  ;;  %s72_s30 = int_to_ptr.vmem [resolvable:$true] %s71_s30 }
   0xd   :  { %p5882_p1 = scmp.lt.u32.totalorder %s5878_s5, %s6742_s17 }
   0xf   :  { %p5884_p2 = pnand %p5882_p1, %p5879_p0 }
  0x11   :  { %5887 = shalt.err (!%p5884_p2)
}
  0x12   :  { %s5888_s27 = scalar_lea.vmem %s72_s30, 32768  ;;  %p5893_p4 = scmp.lt.s32.totalorder %s72_s30, %s72_s30 }
  0x13   :  { %p5889_p3 = scmp.ne.s32.totalorder %s72_s30, %s5888_s27  ;;  %p5894_p5 = scmp.lt.s32.totalorder %s5888_s27, %s5888_s27 }
  0x15   :  { %p5895_p6 = por %p5894_p5, %p5893_p4 }
  0x17   :  { %p5896_p7 = pnand %p5895_p6, %p5889_p3 }
  0x19   :  { %5899 = shalt.err (!%p5896_p7)
}
  0x1a   :  { %s5951_s7 = smov 256   ;;  %s5952_s28 = smov 16  }
  0x1b   :  { %77 = dma.hbm_to_vmem [thread:$0]  %s6742_s17, 32768, %s72_s30, [#allocation3], %s5951_s7, %s5951_s7, %s5952_s28  }
  0x1c   :  { %5944 = dma.done.wait [#allocation3], 32768  }
  0x1d   :  { %5945 = vsyncadd [#allocation3], 4294934528  ;;  %vm94_vm0 = vcmask 261120   ;;  %s6761_s24 = sld [smem:[#allocation11_spill]]  ;;  %s6762_s1 = sld [smem:[#allocation14_spill]]  ;;  %v5953_v16 = vmov 0.0  }
  0x1e   :  { %5119 = vmatprep.subr.bf16.mxu0 %v5953_v16  ;;  %5127 = vmatprep.subr.bf16.mxu1 %v5953_v16  ;;  %vm5954_vm1 = vmmov 0   ;;  %s6763_s0 = sld [smem:[#allocation12_spill]]  ;;  %s6764_s5 = sld [smem:[#allocation13_spill]]  ;;  %vm410_vm2 = vcmask 64512   ;;  %vm471_vm3 = vcmask 1043456   ;;  %vm1866_vm8 = vcmask 130048  }
  0x1f   :  { %5123 = vmatprep.mubr.msk.bf16.mxu0 %vm5954_vm1, %v5953_v16  ;;  %5131 = vmatprep.mubr.msk.bf16.mxu1 %vm5954_vm1, %v5953_v16  ;;  %s6765_s3 = sld [smem:[#allocation15_spill]]  ;;  %s6768_s6 = sld [smem:[#allocation16_spill]]  ;;  %vm1942_vm9 = vcmask 254976  }
  0x20   :  { %s6769_s25 = sld [smem:[#allocation17_spill]] }
  0x23   :  { %v90_v0 = vld [vmem:[%s6761_s24] sm:$0xff]  ;;  %v91_v1 = vld [vmem:[%s6761_s24 + $0x8] sm:$0xff]  ;;  %v5373_v15 = vld [vmem:[%s6762_s1 + $0x10] sm:$0xff]  }
  0x24   :  { %v95_v2 = vsel %vm94_vm0, %v90_v0, 0.0  ;;  %v98_v3 = vsel %vm94_vm0, %v91_v1, 0.0  ;;  %v5372_v14 = vld [vmem:[%s6762_s1] sm:$0xff]   ;;  %5128 = vmatpush3.bf16.msra.mxu1 %v5373_v15  ;;  %v5374_v17 = vld [vmem:[%s6762_s1 + $0x8] sm:$0xff]   ;;  %v5375_v18 = vld [vmem:[%s6762_s1 + $0x18] sm:$0xff]  }
  0x25   :  { %96 = vadd.xlane.f32.xlu0 %v95_v2  ;;  %5120 = vmatpush3.bf16.msra.mxu0 %v5372_v14  ;;  %v4612_v27 = vld [vmem:[%s6763_s0] ss:$0 sm:$0xff]  ;;  %v5377_v36 = vld [vmem:[%s6762_s1 + $0x30] sm:$0xff]   ;;  %v5378_v38 = vld [vmem:[%s6762_s1 + $0x28] sm:$0xff]   ;;  %s6770_s0 = sld [smem:[#allocation18_spill]] }
  0x26   :  { %5121 = vmatprep.subr.bf16.mxu0 %v5953_v16  ;;  %5129 = vmatprep.subr.bf16.mxu1 %v5953_v16  ;;  %v4613_v31 = vld [vmem:[%s6764_s5] ss:$0 sm:$0xff]  ;;  %v5379_v39 = vld [vmem:[%s6762_s1 + $0x38] sm:$0xff]   ;;  %v4623_v46 = vld [vmem:[%s6765_s3 + $0x1] ss:$0 sm:$0xff] }
  0x27   :  { %v5376_v35 = vld [vmem:[%s6762_s1 + $0x20] sm:$0xff]  }
  0x28   :  { %5130 = vmatpush3.bf16.msra.mxu1 %v5375_v18  ;;  %v4614_v40 = vld [vmem:[%s6765_s3] ss:$0 sm:$0xff]  ;;  %v6180_v62 = vld [vmem:[%s6765_s3 + $0x2] ss:$0 sm:$0xff]  ;;  %v6185_v63 = vld [vmem:[%s6765_s3 + $0x3] ss:$0 sm:$0xff] }
  0x29   :  { %99 = vadd.xlane.f32.xlu0 %v98_v3  ;;  %5122 = vmatpush3.bf16.msra.mxu0 %v5374_v17 }
  0x2a   :  { %5135 = vmatprep.subr.bf16.mxu0 %v5953_v16  ;;  %5143 = vmatprep.subr.bf16.mxu1 %v5953_v16 }
  0xb2   :  { %v97_v4 = vpop.xlane.xlu0 %96 }
  0xb3   :  { %v102_v5 = vmul.f32 0.03125, %v97_v4 }
  0xb5   :  { %v104_v6 = vsub.f32 %v90_v0, %v102_v5 }
  0xb6   :  { %v100_v7 = vpop.xlane.xlu0 %99 }
  0xb7   :  { %v103_v8 = vmul.f32 0.03125, %v100_v7  ;;  %v106_v9 = vmul.f32 %v104_v6, %v104_v6  ;;  %v404_v7 = vlaneseq }
  0xb9   :  { %v105_v10 = vsub.f32 %v91_v1, %v103_v8  ;;  %v108_v11 = vsel %vm94_vm0, %v106_v9, 0.0  ;;  %v6201_v8 = vshrl.u32 %v404_v7, 7  ;;  %v6203_v9 = vand.u32 127, %v404_v7 }
  0xba   :  { %109 = vadd.xlane.f32.xlu1 %v108_v11 }
  0xbb   :  { %v107_v12 = vmul.f32 %v105_v10, %v105_v10  ;;  %vm6207_vm4 = vcmp.le.s32.totalorder %v6203_v9, %v6201_v8 }
  0xbd   :  { %v111_v13 = vsel %vm94_vm0, %v107_v12, 0.0 }
  0xbe   :  { %112 = vadd.xlane.f32.xlu1 %v111_v13 }
 0x147   :  { %v110_v19 = vpop.xlane.xlu1 %109 }
 0x148   :  { %v114_v20 = vmul.f32 0.03125, %v110_v19 }
 0x14a   :  { %v116_v21 = vadd.f32 1e-05, %v114_v20 }
 0x14b   :  { %v113_v22 = vpop.xlane.xlu1 %112 }
 0x14c   :  { %5806 = vrsqrt.f32 %v116_v21  ;;  %v115_v23 = vmul.f32 0.03125, %v113_v22 }
 0x14e   :  { %v117_v24 = vadd.f32 1e-05, %v115_v23 }
 0x150   :  { %5808 = vrsqrt.f32 %v117_v24 }
 0x156   :  { %v5807_v25 = vpop.eup %5806 }
 0x157   :  { %v120_v26 = vmul.f32 %v5807_v25, %v104_v6 }
 0x159   :  { %v128_v30 = vmul.f32 %v4612_v27, %v120_v26 }
 0x15a   :  { %v5809_v28 = vpop.eup %5808 }
 0x15b   :  { %v121_v29 = vmul.f32 %v5809_v28, %v105_v10  ;;  %v136_v33 = vadd.f32 %v4613_v31, %v128_v30 }
 0x15d   :  { %v129_v32 = vmul.f32 %v4612_v27, %v121_v29 }
 0x15f   :  { %v137_v34 = vadd.f32 %v4613_v31, %v129_v32 }
 0x161   :  { %v138_v37 = vpack.c.bf16 %v137_v34, %v136_v33 }
 0x163   :  { %5124 = vmatmul.mubr.msk.bf16.vlgmr.msra.gmra.mrb[0].mxu0 %vm94_vm0, %v138_v37  ;;  %5132 = vmatmul.mubr.msk.bf16.vlgmr.msra.gmra.mrb[0].mxu1 %vm94_vm0, %v138_v37 }
 0x164   :  { %5136 = vmatpush3.bf16.msra.mxu0 %v5376_v35  ;;  %5144 = vmatpush3.bf16.msra.mxu1 %v5377_v36 }
 0x165   :  { %5137 = vmatprep.subr.bf16.mxu0 %v5953_v16  ;;  %5145 = vmatprep.subr.bf16.mxu1 %v5953_v16 }
 0x166   :  { %5139 = vmatprep.mubr.msk.bf16.mxu0 %vm5954_vm1, %v5953_v16  ;;  %5147 = vmatprep.mubr.msk.bf16.mxu1 %vm5954_vm1, %v5953_v16 }
 0x168   :  { %5138 = vmatpush3.bf16.msra.mxu0 %v5378_v38  ;;  %5146 = vmatpush3.bf16.msra.mxu1 %v5379_v39 }
 0x169   :  { %5151 = vmatprep.subr.bf16.mxu0 %v5953_v16  ;;  %5157 = vmatprep.subr.bf16.mxu1 %v5953_v16 }
 0x16b   :  { %5140 = vmatmul.mubr.msk.bf16.vlgmr.msra.gmra.mrb[4].mxu0 %vm94_vm0, %v138_v37  ;;  %5148 = vmatmul.mubr.msk.bf16.vlgmr.msra.gmra.mrb[4].mxu1 %vm94_vm0, %v138_v37 }
 0x16c   :  { %5153 = vmatprep.mubr.msk.bf16.mxu0 %vm5954_vm1, %v5953_v16  ;;  %5159 = vmatprep.mubr.msk.bf16.mxu1 %vm5954_vm1, %v5953_v16 }
 0x236   :  { %v199_v41 = vpop.f32.mrb[0].mxu0  ;;  %v265_v42 = vpop.f32.mrb[0].mxu1 }
 0x237   :  { %v200_v43 = vadd.f32 %v4614_v40, %v199_v41  ;;  %v5125_v44 = vpop.f32.mrb[1].mxu0  ;;  %v5133_v45 = vpop.f32.mrb[1].mxu1  ;;  %v266_v54 = vadd.f32 %v4623_v46, %v265_v42 }
 0x238   :  { %v202_v47 = vpop.f32.mrb[2].mxu0  ;;  %v268_v48 = vpop.f32.mrb[2].mxu1 }
 0x239   :  { %v409_v49 = vpack.c.bf16 %v200_v43, %v200_v43  ;;  %v6165_v50 = vadd.f32 %v4614_v40, %v202_v47  ;;  %v6167_v51 = vadd.f32 %v4623_v46, %v268_v48  ;;  %v5126_v52 = vpop.f32.mrb[3].mxu0  ;;  %v5134_v53 = vpop.f32.mrb[3].mxu1  ;;  %v516_v59 = vpack.c.bf16 %v266_v54, %v266_v54  ;;  %v515_v43 = vld [vmem:[%s6768_s6] sm:$0xf]  ;;  %v4649_v47 = vld [vmem:[%s6768_s6 + $0x4] sm:$0xf] }
 0x23a   :  { %v6228_v46 = vsel %vm471_vm3, %v515_v43, 0  ;;  %v6239_v48 = vsel %vm471_vm3, %v4649_v47, 0 }
 0x23b   :  { %v412_v55 = vsel %vm410_vm2, %v409_v49, 0  ;;  %v472_v56 = vsel %vm471_vm3, %v409_v49, 0  ;;  %v518_v6 = vsel %vm410_vm2, %v516_v59, 0  ;;  %v577_v41 = vsel %vm471_vm3, %v516_v59, 0 }
 0x23c   :  { %5152 = vmatpush3.bf16.xpose.msra.mxu0 %v412_v55  ;;  %5158 = vmatpush3.bf16.msra.mxu1 %v472_v56 }
 0x23d   :  { %5163 = vmatprep.subr.bf16.mxu0 %v5953_v16  ;;  %5169 = vmatprep.subr.bf16.mxu1 %v5953_v16 }
 0x23e   :  { %v6173_v57 = vpop.f32.mrb[4].mxu0  ;;  %v6175_v58 = vpop.f32.mrb[4].mxu1 }
 0x23f   :  { %v5141_v60 = vpop.f32.mrb[5].mxu0  ;;  %v5149_v61 = vpop.f32.mrb[5].mxu1 }
 0x240   :  { %v334_v0 = vpop.f32.mrb[6].mxu0  ;;  %v400_v1 = vpop.f32.mrb[6].mxu1 }
 0x241   :  { %v6188_v2 = vadd.f32 %v6180_v62, %v334_v0  ;;  %v6191_v3 = vadd.f32 %v6185_v63, %v400_v1  ;;  %v5142_v4 = vpop.f32.mrb[7].mxu0  ;;  %v5150_v5 = vpop.f32.mrb[7].mxu1 }
 0x243   :  { %5154 = vmatmul.mubr.msk.bf16.vlgmr.msra.gmra.mrb[8].mxu0 %vm410_vm2, %v409_v49  ;;  %v332_v49 = vadd.f32 %v6180_v62, %v6173_v57 }
 0x244   :  { %5164 = vmatpush3.bf16.xpose.msra.mxu0 %v518_v6  ;;  %5165 = vmatprep.mubr.msk.bf16.mxu0 %vm5954_vm1, %v5953_v16 }
 0x245   :  { %5175 = vmatprep.subr.bf16.mxu0 %v5953_v16  ;;  %v714_v52 = vpack.c.bf16 %v332_v49, %v332_v49 }
 0x247   :  { %v775_v60 = vsel %vm471_vm3, %v714_v52, 0  ;;  %v716_v4 = vsel %vm410_vm2, %v714_v52, 0 }
 0x24b   :  { %5166 = vmatmul.mubr.msk.bf16.vlgmr.msra.gmra.mrb[12].mxu0 %vm410_vm2, %v516_v59 }
 0x24c   :  { %5177 = vmatprep.mubr.msk.bf16.mxu0 %vm5954_vm1, %v5953_v16  ;;  %5176 = vmatpush3.bf16.msra.mxu0 %v6239_v48 }
 0x24d   :  { %5187 = vmatprep.subr.bf16.mxu0 %v5953_v16 }
 0x316   :  { %v448_v10 = vpop.f32.mrb[8].mxu0 }
 0x317   :  { %v454_v12 = vmul.f32 0.35355338, %v448_v10  ;;  %v5155_v13 = vpop.f32.mrb[9].mxu0 }
 0x318   :  { %v451_v14 = vpop.f32.mrb[10].mxu0 }
 0x319   :  { %v5156_v15 = vpop.f32.mrb[11].mxu0  ;;  %v455_v17 = vsel %vm6207_vm4, %v454_v12, -1e+30 }
 0x31a   :  { %v456_v18 = vsel %vm410_vm2, %v455_v17, -inf }
 0x31b   :  { %457 = vmax.xlane.f32.xlu0 %v456_v18 }
 0x31e   :  { %v554_v19 = vpop.f32.mrb[12].mxu0 }
 0x31f   :  { %v560_v20 = vmul.f32 0.35355338, %v554_v19  ;;  %v5167_v21 = vpop.f32.mrb[13].mxu0 }
 0x320   :  { %v557_v22 = vpop.f32.mrb[14].mxu0 }
 0x321   :  { %v5168_v23 = vpop.f32.mrb[15].mxu0  ;;  %v561_v24 = vsel %vm6207_vm4, %v560_v20, -1e+30 }
 0x322   :  { %v562_v25 = vsel %vm410_vm2, %v561_v24, -inf }
 0x323   :  { %563 = vmax.xlane.f32.xlu1 %v562_v25 }
 0x3a8   :  { %v458_v26 = vpop.xlane.xlu0 %457 }
 0x3a9   :  { %v459_v27 = vsub.f32 %v455_v17, %v458_v26 }
 0x3ab   :  { %v460_v28 = vmul.f32 1.442695, %v459_v27 }
 0x3ad   :  { %5810 = vpow2.f32 %v460_v28 }
 0x3b0   :  { %v564_v29 = vpop.xlane.xlu1 %563 }
 0x3b1   :  { %v565_v30 = vsub.f32 %v561_v24, %v564_v29 }
 0x3b3   :  { %v566_v31 = vmul.f32 1.442695, %v565_v30  ;;  %v4654_v30 = vld [vmem:[%s6768_s6 + $0x8] sm:$0xf] }
 0x3b5   :  { %5812 = vpow2.f32 %v566_v31  ;;  %v6268_v31 = vsel %vm471_vm3, %v4654_v30, 0 }
 0x3b7   :  { %v5811_v32 = vpop.eup %5810 }
 0x3b8   :  { %v462_v33 = vsel %vm410_vm2, %v5811_v32, 0.0 }
 0x3b9   :  { %463 = vadd.xlane.f32.xlu0 %v462_v33  ;;  %v398_v33 = vadd.f32 %v6185_v63, %v6175_v58 }
 0x3bf   :  { %v5813_v34 = vpop.eup %5812 }
 0x3c0   :  { %v568_v35 = vsel %vm410_vm2, %v5813_v34, 0.0 }
 0x3c1   :  { %569 = vadd.xlane.f32.xlu1 %v568_v35  ;;  %v867_v35 = vpack.c.bf16 %v398_v33, %v398_v33 }
 0x446   :  { %v464_v36 = vpop.xlane.xlu0 %463 }
 0x447   :  { %5814 = vrcp.f32 %v464_v36 }
 0x44e   :  { %v570_v37 = vpop.xlane.xlu1 %569 }
 0x44f   :  { %5816 = vrcp.f32 %v570_v37 }
 0x451   :  { %v5815_v38 = vpop.eup %5814 }
 0x452   :  { %v466_v39 = vmul.f32 %v5815_v38, %v5811_v32  ;;  %v869_v38 = vsel %vm410_vm2, %v867_v35, 0 }
 0x454   :  { %v467_v40 = vpack.c.bf16 %v466_v39, %v466_v39 }
 0x456   :  { %5160 = vmatmul.mubr.msk.bf16.vlgmr.msra.gmra.mrb[8].mxu1 %vm410_vm2, %v467_v40 }
 0x457   :  { %5170 = vmatpush3.bf16.msra.mxu1 %v577_v41  ;;  %5171 = vmatprep.mubr.msk.bf16.mxu1 %vm5954_vm1, %v5953_v16 }
 0x458   :  { %5181 = vmatprep.subr.bf16.mxu1 %v5953_v16 }
 0x459   :  { %v5817_v42 = vpop.eup %5816 }
 0x45a   :  { %v572_v44 = vmul.f32 %v5817_v42, %v5813_v34  ;;  %v928_v42 = vsel %vm471_vm3, %v867_v35, 0 }
 0x45c   :  { %v573_v45 = vpack.c.bf16 %v572_v44, %v572_v44 }
 0x45e   :  { %5172 = vmatmul.mubr.msk.bf16.vlgmr.msra.gmra.mrb[12].mxu1 %vm410_vm2, %v573_v45 }
 0x45f   :  { %5182 = vmatpush3.bf16.msra.mxu1 %v6228_v46  ;;  %5183 = vmatprep.mubr.msk.bf16.mxu1 %vm5954_vm1, %v5953_v16 }
 0x460   :  { %5193 = vmatprep.subr.bf16.mxu1 %v5953_v16 }
 0x529   :  { %v508_v53 = vpop.f32.mrb[8].mxu1 }
 0x52a   :  { %v514_v54 = vpack.c.bf16 %v508_v53, %v508_v53  ;;  %v5161_v55 = vpop.f32.mrb[9].mxu1 }
 0x52b   :  { %v511_v56 = vpop.f32.mrb[10].mxu1 }
 0x52c   :  { %v5162_v59 = vpop.f32.mrb[11].mxu1  ;;  %5184 = vmatmul.mubr.msk.bf16.vlgmr.msra.gmra.mrb[16].mxu1 %vm410_vm2, %v514_v54 }
 0x52d   :  { %5194 = vmatpush3.bf16.msra.mxu1 %v775_v60  ;;  %5195 = vmatprep.mubr.msk.bf16.mxu1 %vm5954_vm1, %v5953_v16 }
 0x52e   :  { %5205 = vmatprep.subr.bf16.mxu1 %v5953_v16 }
 0x531   :  { %v613_v61 = vpop.f32.mrb[12].mxu1 }
 0x532   :  { %v619_v0 = vpack.c.bf16 %v613_v61, %v613_v61  ;;  %v5173_v1 = vpop.f32.mrb[13].mxu1 }
 0x533   :  { %v616_v57 = vpop.f32.mrb[14].mxu1 }
 0x534   :  { %v5174_v62 = vpop.f32.mrb[15].mxu1  ;;  %5178 = vmatmul.mubr.msk.bf16.vlgmr.msra.gmra.mrb[16].mxu0 %vm410_vm2, %v619_v0 }
 0x535   :  { %5188 = vmatpush3.bf16.xpose.msra.mxu0 %v716_v4  ;;  %5189 = vmatprep.mubr.msk.bf16.mxu0 %vm5954_vm1, %v5953_v16  ;;  %v4658_v62 = vld [vmem:[%s6768_s6 + $0xc] sm:$0xf] }
 0x536   :  { %5199 = vmatprep.subr.bf16.mxu0 %v5953_v16 }
 0x53c   :  { %5190 = vmatmul.mubr.msk.bf16.vlgmr.msra.gmra.mrb[20].mxu0 %vm410_vm2, %v714_v52 }
 0x53d   :  { %5201 = vmatprep.mubr.msk.bf16.mxu0 %vm5954_vm1, %v5953_v16  ;;  %5200 = vmatpush3.bf16.msra.mxu0 %v6268_v31 }
 0x53e   :  { %5211 = vmatprep.subr.bf16.mxu0 %v5953_v16 }
 0x5ff   :  { %v708_v5 = vpop.f32.mrb[16].mxu1 }
 0x600   :  { %v5185_v6 = vpop.f32.mrb[17].mxu1 }
 0x601   :  { %v711_v7 = vpop.f32.mrb[18].mxu1 }
 0x602   :  { %v5186_v10 = vpop.f32.mrb[19].mxu1 }
 0x603   :  { %v1020_v10 = vpack.c.bf16 %v6165_v50, %v6165_v50 }
 0x607   :  { %v662_v12 = vpop.f32.mrb[16].mxu0 }
 0x608   :  { %v6258_v13 = vadd.f32 %v708_v5, %v662_v12  ;;  %v5179_v14 = vpop.f32.mrb[17].mxu0  ;;  %v6298_v5 = vsel %vm471_vm3, %v4658_v62, 0 }
 0x609   :  { %v665_v15 = vpop.f32.mrb[18].mxu0  ;;  %v1022_v14 = vsel %vm410_vm2, %v1020_v10, 0 }
 0x60a   :  { %v5180_v17 = vpop.f32.mrb[19].mxu0  ;;  %v6311_v15 = vpack.c.bf16 %v6167_v51, %v6167_v51 }
 0x60c   :  { %v1126_v50 = vsel %vm410_vm2, %v6311_v15, 0 }
 0x60f   :  { %v752_v18 = vpop.f32.mrb[20].mxu0 }
 0x610   :  { %v758_v19 = vmul.f32 0.35355338, %v752_v18  ;;  %v5191_v20 = vpop.f32.mrb[21].mxu0 }
 0x611   :  { %v755_v21 = vpop.f32.mrb[22].mxu0 }
 0x612   :  { %v5192_v22 = vpop.f32.mrb[23].mxu0  ;;  %v759_v23 = vsel %vm6207_vm4, %v758_v19, -1e+30  ;;  %v1081_v21 = vsel %vm471_vm3, %v1020_v10, 0 }
 0x613   :  { %v760_v24 = vsel %vm410_vm2, %v759_v23, -inf }
 0x614   :  { %761 = vmax.xlane.f32.xlu0 %v760_v24 }
 0x6a1   :  { %v762_v25 = vpop.xlane.xlu0 %761 }
 0x6a2   :  { %v763_v26 = vsub.f32 %v759_v23, %v762_v25 }
 0x6a4   :  { %v764_v27 = vmul.f32 1.442695, %v763_v26 }
 0x6a6   :  { %5818 = vpow2.f32 %v764_v27 }
 0x6b0   :  { %v5819_v28 = vpop.eup %5818 }
 0x6b1   :  { %v766_v29 = vsel %vm410_vm2, %v5819_v28, 0.0 }
 0x6b2   :  { %767 = vadd.xlane.f32.xlu1 %v766_v29 }
 0x73f   :  { %v768_v32 = vpop.xlane.xlu1 %767 }
 0x740   :  { %5820 = vrcp.f32 %v768_v32 }
 0x74a   :  { %v5821_v34 = vpop.eup %5820 }
 0x74b   :  { %v770_v36 = vmul.f32 %v5821_v34, %v5819_v28 }
 0x74d   :  { %v771_v37 = vpack.c.bf16 %v770_v36, %v770_v36 }
 0x74f   :  { %5196 = vmatmul.mubr.msk.bf16.vlgmr.msra.gmra.mrb[20].mxu1 %vm410_vm2, %v771_v37 }
 0x750   :  { %5206 = vmatpush3.bf16.xpose.msra.mxu1 %v869_v38  ;;  %5207 = vmatprep.mubr.msk.bf16.mxu1 %vm5954_vm1, %v5953_v16 }
 0x751   :  { %5217 = vmatprep.subr.bf16.mxu1 %v5953_v16 }
 0x757   :  { %5208 = vmatmul.mubr.msk.bf16.vlgmr.msra.gmra.mrb[24].mxu1 %vm410_vm2, %v867_v35 }
 0x758   :  { %5219 = vmatprep.mubr.msk.bf16.mxu1 %vm5954_vm1, %v5953_v16  ;;  %5218 = vmatpush3.bf16.msra.mxu1 %v6298_v5 }
 0x759   :  { %5229 = vmatprep.subr.bf16.mxu1 %v5953_v16 }
 0x822   :  { %v811_v58 = vpop.f32.mrb[20].mxu1 }
 0x823   :  { %v817_v63 = vpack.c.bf16 %v811_v58, %v811_v58  ;;  %v5197_v39 = vpop.f32.mrb[21].mxu1 }
 0x824   :  { %v814_v40 = vpop.f32.mrb[22].mxu1 }
 0x825   :  { %v5198_v41 = vpop.f32.mrb[23].mxu1  ;;  %5202 = vmatmul.mubr.msk.bf16.vlgmr.msra.gmra.mrb[24].mxu0 %vm410_vm2, %v817_v63 }
 0x826   :  { %5212 = vmatpush3.bf16.msra.mxu0 %v928_v42  ;;  %5213 = vmatprep.mubr.msk.bf16.mxu0 %vm5954_vm1, %v5953_v16 }
 0x827   :  { %5223 = vmatprep.subr.bf16.mxu0 %v5953_v16 }
 0x82a   :  { %v905_v43 = vpop.f32.mrb[24].mxu1 }
 0x82b   :  { %v911_v44 = vmul.f32 0.35355338, %v905_v43  ;;  %v5209_v45 = vpop.f32.mrb[25].mxu1 }
 0x82c   :  { %v908_v47 = vpop.f32.mrb[26].mxu1 }
 0x82d   :  { %v5210_v49 = vpop.f32.mrb[27].mxu1  ;;  %v912_v52 = vsel %vm6207_vm4, %v911_v44, -1e+30 }
 0x82e   :  { %v913_v53 = vsel %vm410_vm2, %v912_v52, -inf }
 0x82f   :  { %914 = vmax.xlane.f32.xlu0 %v913_v53 }
 0x8bc   :  { %v915_v54 = vpop.xlane.xlu0 %914 }
 0x8bd   :  { %v916_v55 = vsub.f32 %v912_v52, %v915_v54 }
 0x8bf   :  { %v917_v56 = vmul.f32 1.442695, %v916_v55 }
 0x8c1   :  { %5822 = vpow2.f32 %v917_v56 }
 0x8cb   :  { %v5823_v59 = vpop.eup %5822 }
 0x8cc   :  { %v919_v60 = vsel %vm410_vm2, %v5823_v59, 0.0 }
 0x8cd   :  { %920 = vadd.xlane.f32.xlu1 %v919_v60  ;;  %v1185_v60 = vsel %vm471_vm3, %v6311_v15, 0 }
 0x8f8   :  { %v860_v61 = vpop.f32.mrb[24].mxu0 }
 0x8f9   :  { %v6292_v0 = vadd.f32 %v860_v61, %v6258_v13  ;;  %v5203_v1 = vpop.f32.mrb[25].mxu0 }
 0x8fa   :  { %v863_v57 = vpop.f32.mrb[26].mxu0 }
 0x8fb   :  { %v5204_v4 = vpop.f32.mrb[27].mxu0  ;;  %v1314_v57 = vpack.c.bf16 %v6188_v2, %v6188_v2 }
 0x95a   :  { %v921_v6 = vpop.xlane.xlu1 %920 }
 0x95b   :  { %5824 = vrcp.f32 %v921_v6 }
 0x965   :  { %v5825_v7 = vpop.eup %5824 }
 0x966   :  { %v923_v12 = vmul.f32 %v5825_v7, %v5823_v59 }
 0x968   :  { %v924_v13 = vpack.c.bf16 %v923_v12, %v923_v12  ;;  %v1375_v12 = vsel %vm471_vm3, %v1314_v57, 0 }
 0x96a   :  { %5214 = vmatmul.mubr.msk.bf16.vlgmr.msra.gmra.mrb[28].mxu0 %vm410_vm2, %v924_v13 }
 0x96b   :  { %5224 = vmatpush3.bf16.xpose.msra.mxu0 %v1022_v14  ;;  %5225 = vmatprep.mubr.msk.bf16.mxu0 %vm5954_vm1, %v5953_v16 }
 0x96c   :  { %5235 = vmatprep.subr.bf16.mxu0 %v5953_v16 }
 0x972   :  { %5226 = vmatmul.mubr.msk.bf16.vlgmr.msra.gmra.mrb[32].mxu0 %vm410_vm2, %v1020_v10 }
 0x973   :  { %5236 = vmatpush3.bf16.xpose.msra.mxu0 %v1126_v50  ;;  %5237 = vmatprep.mubr.msk.bf16.mxu0 %vm5954_vm1, %v5953_v16  ;;  %v1316_v50 = vsel %vm410_vm2, %v1314_v57, 0 }
 0x974   :  { %5247 = vmatprep.subr.bf16.mxu0 %v5953_v16 }
 0x97a   :  { %5238 = vmatmul.mubr.msk.bf16.vlgmr.msra.gmra.mrb[36].mxu0 %vm410_vm2, %v6311_v15 }
 0x97b   :  { %5248 = vmatpush3.bf16.msra.mxu0 %v6239_v48  ;;  %5249 = vmatprep.mubr.msk.bf16.mxu0 %vm5954_vm1, %v5953_v16 }
 0x97c   :  { %5259 = vmatprep.subr.bf16.mxu0 %v5953_v16 }
 0xa3d   :  { %v964_v51 = vpop.f32.mrb[28].mxu0 }
 0xa3e   :  { %v970_v17 = vpack.c.bf16 %v964_v51, %v964_v51  ;;  %v5215_v18 = vpop.f32.mrb[29].mxu0 }
 0xa3f   :  { %v967_v19 = vpop.f32.mrb[30].mxu0 }
 0xa40   :  { %v5216_v20 = vpop.f32.mrb[31].mxu0  ;;  %5220 = vmatmul.mubr.msk.bf16.vlgmr.msra.gmra.mrb[28].mxu1 %vm410_vm2, %v970_v17 }
 0xa41   :  { %5230 = vmatpush3.bf16.msra.mxu1 %v1081_v21  ;;  %5231 = vmatprep.mubr.msk.bf16.mxu1 %vm5954_vm1, %v5953_v16 }
 0xa42   :  { %5241 = vmatprep.subr.bf16.mxu1 %v5953_v16 }
 0xa45   :  { %v1058_v48 = vpop.f32.mrb[32].mxu0 }
 0xa46   :  { %v1064_v22 = vmul.f32 0.35355338, %v1058_v48  ;;  %v5227_v23 = vpop.f32.mrb[33].mxu0 }
 0xa47   :  { %v1061_v24 = vpop.f32.mrb[34].mxu0 }
 0xa48   :  { %v5228_v25 = vpop.f32.mrb[35].mxu0  ;;  %v1065_v26 = vsel %vm6207_vm4, %v1064_v22, -1e+30 }
 0xa49   :  { %v1066_v27 = vsel %vm410_vm2, %v1065_v26, -inf }
 0xa4a   :  { %1067 = vmax.xlane.f32.xlu0 %v1066_v27 }
 0xa4d   :  { %v1162_v28 = vpop.f32.mrb[36].mxu0 }
 0xa4e   :  { %v1168_v29 = vmul.f32 0.35355338, %v1162_v28  ;;  %v5239_v30 = vpop.f32.mrb[37].mxu0 }
 0xa4f   :  { %v1165_v32 = vpop.f32.mrb[38].mxu0 }
 0xa50   :  { %v5240_v33 = vpop.f32.mrb[39].mxu0  ;;  %v1169_v34 = vsel %vm6207_vm4, %v1168_v29, -1e+30 }
 0xa51   :  { %v1170_v35 = vsel %vm410_vm2, %v1169_v34, -inf }
 0xa52   :  { %1171 = vmax.xlane.f32.xlu1 %v1170_v35 }
 0xad7   :  { %v1068_v36 = vpop.xlane.xlu0 %1067 }
 0xad8   :  { %v1069_v37 = vsub.f32 %v1065_v26, %v1068_v36 }
 0xada   :  { %v1070_v38 = vmul.f32 1.442695, %v1069_v37 }
 0xadc   :  { %5826 = vpow2.f32 %v1070_v38  ;;  %v1462_v38 = vpack.c.bf16 %v6191_v3, %v6191_v3 }
 0xadf   :  { %v1172_v58 = vpop.xlane.xlu1 %1171 }
 0xae0   :  { %v1173_v63 = vsub.f32 %v1169_v34, %v1172_v58 }
 0xae2   :  { %v1174_v39 = vmul.f32 1.442695, %v1173_v63 }
 0xae4   :  { %5828 = vpow2.f32 %v1174_v39  ;;  %v1464_v39 = vsel %vm410_vm2, %v1462_v38, 0 }
 0xae6   :  { %v5827_v40 = vpop.eup %5826 }
 0xae7   :  { %v1072_v41 = vsel %vm410_vm2, %v5827_v40, 0.0 }
 0xae8   :  { %1073 = vadd.xlane.f32.xlu0 %v1072_v41 }
 0xaee   :  { %v5829_v42 = vpop.eup %5828 }
 0xaef   :  { %v1176_v43 = vsel %vm410_vm2, %v5829_v42, 0.0 }
 0xaf0   :  { %1177 = vadd.xlane.f32.xlu1 %v1176_v43 }
 0xb13   :  { %v1013_v44 = vpop.f32.mrb[28].mxu1 }
 0xb14   :  { %v6339_v45 = vadd.f32 %v1013_v44, %v6292_v0  ;;  %v5221_v47 = vpop.f32.mrb[29].mxu1  ;;  %v1523_v44 = vsel %vm471_vm3, %v1462_v38, 0 }
 0xb15   :  { %v1016_v49 = vpop.f32.mrb[30].mxu1 }
 0xb16   :  { %v5222_v52 = vpop.f32.mrb[31].mxu1 }
 0xb75   :  { %v1074_v53 = vpop.xlane.xlu0 %1073 }
 0xb76   :  { %5830 = vrcp.f32 %v1074_v53 }
 0xb7d   :  { %v1178_v54 = vpop.xlane.xlu1 %1177 }
 0xb7e   :  { %5832 = vrcp.f32 %v1178_v54 }
 0xb80   :  { %v5831_v55 = vpop.eup %5830 }
 0xb81   :  { %v1076_v56 = vmul.f32 %v5831_v55, %v5827_v40 }
 0xb83   :  { %v1077_v59 = vpack.c.bf16 %v1076_v56, %v1076_v56 }
 0xb85   :  { %5232 = vmatmul.mubr.msk.bf16.vlgmr.msra.gmra.mrb[32].mxu1 %vm410_vm2, %v1077_v59  ;;  %v5876_v59 = vld [vmem:[%s6761_s24] sm:$0xff] }
 0xb86   :  { %5242 = vmatpush3.bf16.msra.mxu1 %v1185_v60  ;;  %5243 = vmatprep.mubr.msk.bf16.mxu1 %vm5954_vm1, %v5953_v16 }
 0xb87   :  { %5253 = vmatprep.subr.bf16.mxu1 %v5953_v16 }
 0xb88   :  { %v5833_v61 = vpop.eup %5832 }
 0xb89   :  { %v1180_v0 = vmul.f32 %v5833_v61, %v5829_v42 }
 0xb8b   :  { %v1181_v1 = vpack.c.bf16 %v1180_v0, %v1180_v0 }
 0xb8d   :  { %5244 = vmatmul.mubr.msk.bf16.vlgmr.msra.gmra.mrb[36].mxu1 %vm410_vm2, %v1181_v1 }
 0xb8e   :  { %5254 = vmatpush3.bf16.msra.mxu1 %v6228_v46  ;;  %5255 = vmatprep.mubr.msk.bf16.mxu1 %vm5954_vm1, %v5953_v16 }
 0xb8f   :  { %5265 = vmatprep.subr.bf16.mxu1 %v5953_v16 }
 0xc58   :  { %v1117_v62 = vpop.f32.mrb[32].mxu1 }
 0xc59   :  { %v1123_v4 = vpack.c.bf16 %v1117_v62, %v1117_v62  ;;  %v5233_v6 = vpop.f32.mrb[33].mxu1 }
 0xc5a   :  { %v1120_v7 = vpop.f32.mrb[34].mxu1 }
 0xc5b   :  { %v5234_v10 = vpop.f32.mrb[35].mxu1  ;;  %5256 = vmatmul.mubr.msk.bf16.vlgmr.msra.gmra.mrb[40].mxu1 %vm410_vm2, %v1123_v4 }
 0xc5c   :  { %5266 = vmatpush3.bf16.msra.mxu1 %v1375_v12  ;;  %5267 = vmatprep.mubr.msk.bf16.mxu1 %vm5954_vm1, %v5953_v16 }
 0xc5d   :  { %5277 = vmatprep.subr.bf16.mxu1 %v5953_v16 }
 0xc60   :  { %v1221_v46 = vpop.f32.mrb[36].mxu1 }
 0xc61   :  { %v1227_v13 = vpack.c.bf16 %v1221_v46, %v1221_v46  ;;  %v5245_v14 = vpop.f32.mrb[37].mxu1 }
 0xc62   :  { %v1224_v15 = vpop.f32.mrb[38].mxu1 }
 0xc63   :  { %v5246_v2 = vpop.f32.mrb[39].mxu1  ;;  %5250 = vmatmul.mubr.msk.bf16.vlgmr.msra.gmra.mrb[40].mxu0 %vm410_vm2, %v1227_v13 }
 0xc64   :  { %5260 = vmatpush3.bf16.xpose.msra.mxu0 %v1316_v50  ;;  %5261 = vmatprep.mubr.msk.bf16.mxu0 %vm5954_vm1, %v5953_v16 }
 0xc65   :  { %5271 = vmatprep.subr.bf16.mxu0 %v5953_v16 }
 0xc6b   :  { %5262 = vmatmul.mubr.msk.bf16.vlgmr.msra.gmra.mrb[44].mxu0 %vm410_vm2, %v1314_v57 }
 0xc6c   :  { %5272 = vmatpush3.bf16.msra.mxu0 %v6268_v31  ;;  %5273 = vmatprep.mubr.msk.bf16.mxu0 %vm5954_vm1, %v5953_v16 }
 0xc6d   :  { %5283 = vmatprep.subr.bf16.mxu0 %v5953_v16 }
 0xd2e   :  { %v1308_v51 = vpop.f32.mrb[40].mxu1 }
 0xd2f   :  { %v5257_v17 = vpop.f32.mrb[41].mxu1 }
 0xd30   :  { %v1311_v18 = vpop.f32.mrb[42].mxu1 }
 0xd31   :  { %v5258_v19 = vpop.f32.mrb[43].mxu1 }
 0xd36   :  { %v1265_v20 = vpop.f32.mrb[40].mxu0 }
 0xd37   :  { %v6369_v21 = vadd.f32 %v1308_v51, %v1265_v20  ;;  %v5251_v48 = vpop.f32.mrb[41].mxu0 }
 0xd38   :  { %v1268_v22 = vpop.f32.mrb[42].mxu0 }
 0xd39   :  { %v5252_v23 = vpop.f32.mrb[43].mxu0 }
 0xd3e   :  { %v1352_v24 = vpop.f32.mrb[44].mxu0 }
 0xd3f   :  { %v1358_v25 = vmul.f32 0.35355338, %v1352_v24  ;;  %v5263_v26 = vpop.f32.mrb[45].mxu0 }
 0xd40   :  { %v1355_v27 = vpop.f32.mrb[46].mxu0 }
 0xd41   :  { %v5264_v31 = vpop.f32.mrb[47].mxu0  ;;  %v1359_v28 = vsel %vm6207_vm4, %v1358_v25, -1e+30 }
 0xd42   :  { %v1360_v29 = vsel %vm410_vm2, %v1359_v28, -inf }
 0xd43   :  { %1361 = vmax.xlane.f32.xlu0 %v1360_v29 }
 0xdd0   :  { %v1362_v30 = vpop.xlane.xlu0 %1361 }
 0xdd1   :  { %v1363_v32 = vsub.f32 %v1359_v28, %v1362_v30  ;;  %v5877_v28 = vld [vmem:[%s6761_s24 + $0x8] sm:$0xff] }
 0xdd3   :  { %v1364_v33 = vmul.f32 1.442695, %v1363_v32 }
 0xdd5   :  { %5834 = vpow2.f32 %v1364_v33 }
 0xddf   :  { %v5835_v34 = vpop.eup %5834 }
 0xde0   :  { %v1366_v35 = vsel %vm410_vm2, %v5835_v34, 0.0 }
 0xde1   :  { %1367 = vadd.xlane.f32.xlu1 %v1366_v35 }
 0xe6e   :  { %v1368_v36 = vpop.xlane.xlu1 %1367 }
 0xe6f   :  { %5836 = vrcp.f32 %v1368_v36 }
 0xe79   :  { %v5837_v37 = vpop.eup %5836 }
 0xe7a   :  { %v1370_v58 = vmul.f32 %v5837_v37, %v5835_v34  ;;  %v5380_v37 = vld [vmem:[%s6734_s9] sm:$0xff]  }
 0xe7c   :  { %v1371_v63 = vpack.c.bf16 %v1370_v58, %v1370_v58  ;;  %v5382_v58 = vld [vmem:[%s6736_s11] sm:$0xff]  }
 0xe7e   :  { %5268 = vmatmul.mubr.msk.bf16.vlgmr.msra.gmra.mrb[44].mxu1 %vm410_vm2, %v1371_v63  ;;  %v5383_v63 = vld [vmem:[%s6736_s11 + $0x8] sm:$0xff]  }
 0xe7f   :  { %5278 = vmatpush3.bf16.xpose.msra.mxu1 %v1464_v39  ;;  %5279 = vmatprep.mubr.msk.bf16.mxu1 %vm5954_vm1, %v5953_v16 }
 0xe80   :  { %5289 = vmatprep.subr.bf16.mxu1 %v5953_v16 }
 0xe86   :  { %5280 = vmatmul.mubr.msk.bf16.vlgmr.msra.gmra.mrb[48].mxu1 %vm410_vm2, %v1462_v38  ;;  %v5381_v38 = vld [vmem:[%s6734_s9 + $0x8] sm:$0xff]  }
 0xe87   :  { %5290 = vmatpush3.bf16.msra.mxu1 %v6298_v5  ;;  %5291 = vmatprep.mubr.msk.bf16.mxu1 %vm5954_vm1, %v5953_v16  ;;  %v4672_v5 = vld [vmem:[%s6769_s25] ss:$0 sm:$0xff] }
 0xe88   :  { %5303 = vmatprep.subr.bf16.mxu1 %v5953_v16  ;;  %v1617_v47 = vadd.f32 %v4672_v5, %v6339_v45 }
 0xe8a   :  { %v6401_v60 = vadd.f32 %v5876_v59, %v1617_v47  ;;  %v4673_v47 = vld [vmem:[%s6770_s0] ss:$0 sm:$0xff] }
 0xe8c   :  { %v1623_v45 = vsel %vm94_vm0, %v6401_v60, 0.0 }
 0xf51   :  { %v1411_v3 = vpop.f32.mrb[44].mxu1 }
 0xf52   :  { %v1417_v40 = vpack.c.bf16 %v1411_v3, %v1411_v3  ;;  %v5269_v41 = vpop.f32.mrb[45].mxu1 }
 0xf53   :  { %v1414_v42 = vpop.f32.mrb[46].mxu1 }
 0xf54   :  { %v5270_v43 = vpop.f32.mrb[47].mxu1  ;;  %5274 = vmatmul.mubr.msk.bf16.vlgmr.msra.gmra.mrb[48].mxu0 %vm410_vm2, %v1417_v40 }
 0xf55   :  { %5284 = vmatpush3.bf16.msra.mxu0 %v1523_v44  ;;  %5285 = vmatprep.mubr.msk.bf16.mxu0 %vm5954_vm1, %v5953_v16 }
 0xf56   :  { %5295 = vmatprep.subr.bf16.mxu0 %v5953_v16 }
 0xf59   :  { %v1500_v49 = vpop.f32.mrb[48].mxu1 }
 0xf5a   :  { %v1506_v52 = vmul.f32 0.35355338, %v1500_v49  ;;  %v5281_v53 = vpop.f32.mrb[49].mxu1 }
 0xf5b   :  { %v1503_v54 = vpop.f32.mrb[50].mxu1 }
 0xf5c   :  { %v5282_v55 = vpop.f32.mrb[51].mxu1  ;;  %v1507_v56 = vsel %vm6207_vm4, %v1506_v52, -1e+30  ;;  %v4674_v54 = vld [vmem:[%s6733_s8] ss:$0 sm:$0xff] }
 0xf5d   :  { %v1508_v61 = vsel %vm410_vm2, %v1507_v56, -inf }
 0xf5e   :  { %1509 = vmax.xlane.f32.xlu0 %v1508_v61 }
 0xf62   :  { %1624 = vadd.xlane.f32.xlu0 %v1623_v45  ;;  %v5384_v45 = vld [vmem:[%s6736_s11 + $0x10] sm:$0xff]  }
 0xfeb   :  { %v1510_v0 = vpop.xlane.xlu0 %1509 }
 0xfec   :  { %v1511_v1 = vsub.f32 %v1507_v56, %v1510_v0  ;;  %v5385_v0 = vld [vmem:[%s6736_s11 + $0x18] sm:$0xff]  }
 0xfee   :  { %v1512_v57 = vmul.f32 1.442695, %v1511_v1  ;;  %v5386_v1 = vld [vmem:[%s6736_s11 + $0x20] sm:$0xff]  }
 0xfef   :  { %v1625_v62 = vpop.xlane.xlu0 %1624 }
 0xff0   :  { %5838 = vpow2.f32 %v1512_v57  ;;  %v1629_v11 = vmul.f32 0.03125, %v1625_v62  ;;  %v5387_v57 = vld [vmem:[%s6736_s11 + $0x28] sm:$0xff]   ;;  %v5388_v62 = vld [vmem:[%s6736_s11 + $0x30] sm:$0xff]  }
 0xff2   :  { %v1631_v4 = vsub.f32 %v6401_v60, %v1629_v11  ;;  %v5389_v11 = vld [vmem:[%s6736_s11 + $0x38] sm:$0xff]  }
 0xff4   :  { %v1633_v6 = vmul.f32 %v1631_v4, %v1631_v4 }
 0xff6   :  { %v1635_v7 = vsel %vm94_vm0, %v1633_v6, 0.0 }
 0xff7   :  { %1636 = vadd.xlane.f32.xlu0 %v1635_v7 }
 0xffa   :  { %v5839_v10 = vpop.eup %5838 }
 0xffb   :  { %v1514_v12 = vsel %vm410_vm2, %v5839_v10, 0.0 }
 0xffc   :  { %1515 = vadd.xlane.f32.xlu1 %v1514_v12 }
0x1027   :  { %v1455_v46 = vpop.f32.mrb[48].mxu0 }
0x1028   :  { %v1461_v13 = vadd.f32 %v1455_v46, %v6369_v21  ;;  %v5275_v14 = vpop.f32.mrb[49].mxu0 }
0x1029   :  { %v1458_v15 = vpop.f32.mrb[50].mxu0 }
0x102a   :  { %v5276_v2 = vpop.f32.mrb[51].mxu0 }
0x1084   :  { %v1637_v39 = vpop.xlane.xlu0 %1636 }
0x1085   :  { %v1641_v3 = vmul.f32 0.03125, %v1637_v39 }
0x1087   :  { %v1643_v40 = vadd.f32 1e-05, %v1641_v3 }
0x1089   :  { %v1516_v50 = vpop.xlane.xlu1 %1515 }
0x108a   :  { %5840 = vrcp.f32 %v1516_v50 }
0x108b   :  { %5842 = vrsqrt.f32 %v1643_v40  ;;  %v1974_v40 = vld [vmem:[%s6740_s15 + $0x18] sm:$0xff] }
0x1094   :  { %v5841_v51 = vpop.eup %5840 }
0x1095   :  { %v1518_v17 = vmul.f32 %v5841_v51, %v5839_v10  ;;  %v5843_v44 = vpop.eup %5842 }
0x1097   :  { %v1519_v18 = vpack.c.bf16 %v1518_v17, %v1518_v17 }
0x1099   :  { %5286 = vmatmul.mubr.msk.bf16.vlgmr.msra.gmra.mrb[52].mxu0 %vm410_vm2, %v1519_v18 }
0x109a   :  { %5299 = vmatprep.mubr.msk.bf16.mxu0 %vm5954_vm1, %v5953_v16  ;;  %5296 = vmatpush3.bf16.msra.mxu0 %v5380_v37 }
0x109b   :  { %5297 = vmatprep.subr.bf16.mxu0 %v5953_v16 }
0x109e   :  { %5298 = vmatpush3.bf16.msra.mxu0 %v5381_v38 }
0x116c   :  { %v1559_v19 = vpop.f32.mrb[52].mxu0 }
0x116d   :  { %v1565_v20 = vpack.c.bf16 %v1559_v19, %v1559_v19  ;;  %v5287_v48 = vpop.f32.mrb[53].mxu0 }
0x116e   :  { %v1562_v22 = vpop.f32.mrb[54].mxu0 }
0x116f   :  { %v5288_v23 = vpop.f32.mrb[55].mxu0  ;;  %5292 = vmatmul.mubr.msk.bf16.vlgmr.msra.gmra.mrb[52].mxu1 %vm410_vm2, %v1565_v20 }
0x1170   :  { %5319 = vmatprep.mubr.msk.bf16.mxu1 %vm5954_vm1, %v5953_v16  ;;  %5304 = vmatpush3.bf16.msra.mxu1 %v5382_v58  ;;  %v5955_v23 = vmov 0.0|0.0  }
0x1171   :  { %5305 = vmatprep.subr.bf16.mxu1 %v5953_v16  ;;  %5330 = vmatprep.subr.bf16.mxu0 %v5955_v23  ;;  %v5399_v23 = vld [vmem:[#allocation2 + $0x28] ss:$16 sps:$4 sm:$0xff]  }
0x1174   :  { %5306 = vmatpush3.bf16.msra.mxu1 %v5383_v63 }
0x1175   :  { %5307 = vmatprep.subr.bf16.mxu1 %v5953_v16 }
0x1178   :  { %5308 = vmatpush3.bf16.msra.mxu1 %v5384_v45  ;;  %v1972_v45 = vld [vmem:[%s6740_s15 + $0x8] sm:$0xff] }
0x1179   :  { %5309 = vmatprep.subr.bf16.mxu1 %v5953_v16 }
0x117c   :  { %5310 = vmatpush3.bf16.msra.mxu1 %v5385_v0  ;;  %v1976_v0 = vld [vmem:[%s6740_s15 + $0x28] sm:$0xff] }
0x117d   :  { %5311 = vmatprep.subr.bf16.mxu1 %v5953_v16 }
0x1180   :  { %5312 = vmatpush3.bf16.msra.mxu1 %v5386_v1  ;;  %v4694_v1 = vcombine.high %v1972_v45, %v1976_v0 }
0x1181   :  { %5313 = vmatprep.subr.bf16.mxu1 %v5953_v16 }
0x1184   :  { %5314 = vmatpush3.bf16.msra.mxu1 %v5387_v57  ;;  %v4693_v57 = vcombine.low %v1972_v45, %v1976_v0  ;;  %v5432_v45 = vld [vmem:[#allocation2 + $0xe0] ss:$16 sps:$4 sm:$0xff]   ;;  %v5440_v0 = vld [vmem:[#allocation2 + $0x104] ss:$16 sps:$4 sm:$0xff]  }
0x1185   :  { %5315 = vmatprep.subr.bf16.mxu1 %v5953_v16 }
0x1188   :  { %5316 = vmatpush3.bf16.msra.mxu1 %v5388_v62  ;;  %v5395_v62 = vld [vmem:[#allocation2 + $0xc] ss:$16 sps:$4 sm:$0xff]  }
0x1189   :  { %5317 = vmatprep.subr.bf16.mxu1 %v5953_v16 }
0x118c   :  { %5318 = vmatpush3.bf16.msra.mxu1 %v5389_v11 }
0x1242   :  { %v1603_v21 = vpop.f32.mrb[52].mxu1 }
0x1243   :  { %v1609_v24 = vadd.f32 %v1603_v21, %v1461_v13  ;;  %v5293_v25 = vpop.f32.mrb[53].mxu1  ;;  %v1860_v21 = vmul.u32 8, %v6201_v8 }
0x1244   :  { %v1606_v26 = vpop.f32.mrb[54].mxu1 }
0x1245   :  { %v1618_v27 = vadd.f32 %v4672_v5, %v1609_v24  ;;  %v5294_v31 = vpop.f32.mrb[55].mxu1  ;;  %v1647_v5 = vmul.f32 %v5843_v44, %v1631_v4  ;;  %v4675_v4 = vld [vmem:[%s6735_s10] ss:$0 sm:$0xff]  ;;  %v1862_v25 = vadd.s32 8, %v1860_v21  ;;  %vm1861_vm5 = vcmp.ge.s32.totalorder %v6203_v9, %v1860_v21  ;;  %v1981_v21 = vld [vmem:[%s6740_s15 + $0x50] sm:$0xff] }
0x1246   :  { %v4679_v24 = vld [vmem:[%s6737_s12] ss:$0 sm:$0xff] }
0x1247   :  { %v6419_v29 = vadd.f32 %v5877_v28, %v1618_v27  ;;  %v1655_v52 = vmul.f32 %v4673_v47, %v1647_v5  ;;  %vm1863_vm6 = vcmp.lt.s32.totalorder %v6203_v9, %v1862_v25  ;;  %v5407_v25 = vld [vmem:[#allocation2 + $0x4c] ss:$16 sps:$4 sm:$0xff]  }
0x1248   :  { %vm1864_vm7 = vmand %vm1861_vm5, %vm1863_vm6 }
0x1249   :  { %v1626_v30 = vsel %vm94_vm0, %v6419_v29, 0.0  ;;  %v1663_v56 = vadd.f32 %v4674_v54, %v1655_v52  ;;  %v1982_v52 = vld [vmem:[%s6740_s15 + $0x58] sm:$0xff] }
0x124a   :  { %1627 = vadd.xlane.f32.xlu1 %v1626_v30 }
0x12d7   :  { %v1628_v32 = vpop.xlane.xlu1 %1627 }
0x12d8   :  { %v1630_v33 = vmul.f32 0.03125, %v1628_v32 }
0x12da   :  { %v1632_v34 = vsub.f32 %v6419_v29, %v1630_v33 }
0x12dc   :  { %v1634_v35 = vmul.f32 %v1632_v34, %v1632_v34 }
0x12de   :  { %v1638_v36 = vsel %vm94_vm0, %v1634_v35, 0.0 }
0x12df   :  { %1639 = vadd.xlane.f32.xlu1 %v1638_v36  ;;  %v1865_v36 = vsel %vm1864_vm7, 0.125, %v5953_v16 }
0x136c   :  { %v1640_v41 = vpop.xlane.xlu1 %1639 }
0x136d   :  { %v1642_v42 = vmul.f32 0.03125, %v1640_v41 }
0x136f   :  { %v1644_v43 = vadd.f32 1e-05, %v1642_v42  ;;  %v1978_v42 = vld [vmem:[%s6740_s15 + $0x38] sm:$0xff] }
0x1370   :  { %v4697_v44 = vcombine.low %v1974_v40, %v1978_v42  ;;  %v4698_v5 = vcombine.high %v1974_v40, %v1978_v42  ;;  %v5408_v40 = vld [vmem:[#allocation2 + $0x60] ss:$16 sps:$4 sm:$0xff]   ;;  %v5435_v42 = vld [vmem:[#allocation2 + $0xe8] ss:$16 sps:$4 sm:$0xff]  }
0x1371   :  { %5844 = vrsqrt.f32 %v1644_v43 }
0x1372   :  { %2235 = vmatprep.subr.bf16.mxu1 %v4698_v5  ;;  %v5422_v5 = vld [vmem:[#allocation2 + $0xa4] ss:$16 sps:$4 sm:$0xff]  }
0x137b   :  { %v5845_v49 = vpop.eup %5844 }
0x137c   :  { %v1648_v53 = vmul.f32 %v5845_v49, %v1632_v34  ;;  %v1983_v49 = vld [vmem:[%s6740_s15 + $0x60] sm:$0xff] }
0x137e   :  { %v1656_v55 = vmul.f32 %v4673_v47, %v1648_v53  ;;  %v1979_v47 = vld [vmem:[%s6740_s15 + $0x40] sm:$0xff] }
0x137f   :  { %v4699_v53 = vcombine.low %v1979_v47, %v1983_v49 }
0x1380   :  { %v1664_v59 = vadd.f32 %v4674_v54, %v1656_v55  ;;  %v4700_v54 = vcombine.high %v1979_v47, %v1983_v49  ;;  %v1986_v55 = vld [vmem:[%s6740_s15 + $0x78] sm:$0xff] }
0x1381   :  { %v5441_v47 = vld [vmem:[#allocation2 + $0x108] ss:$16 sps:$4 sm:$0xff]   ;;  %v5449_v49 = vld [vmem:[#allocation2 + $0x12c] ss:$16 sps:$4 sm:$0xff]  }
0x1382   :  { %v1665_v61 = vpack.c.bf16 %v1664_v59, %v1663_v56  ;;  %v5956_v56 = vmov 0   ;;  %v4705_v59 = vcombine.low %v1982_v52, %v1986_v55 }
0x1384   :  { %5300 = vmatmul.mubr.msk.bf16.vlgmr.msra.gmra.mrb[56].mxu0 %vm94_vm0, %v1665_v61  ;;  %v4706_v61 = vcombine.high %v1982_v52, %v1986_v55  ;;  %v5420_v52 = vld [vmem:[#allocation2 + $0xa0] ss:$16 sps:$4 sm:$0xff]   ;;  %v5455_v55 = vld [vmem:[#allocation2 + $0x14c] ss:$16 sps:$4 sm:$0xff]  }
0x1385   :  { %5327 = vmatprep.mubr.msk.f32.mxu0 %vm5954_vm1, %v5953_v16  ;;  %v1975_v16 = vld [vmem:[%s6740_s15 + $0x20] sm:$0xff] }
0x1457   :  { %v1726_v6 = vpop.f32.mrb[56].mxu0 }
0x1458   :  { %v1727_v7 = vadd.f32 %v4675_v4, %v1726_v6  ;;  %v5301_v10 = vpop.f32.mrb[57].mxu0 }
0x1459   :  { %v1729_v12 = vpop.f32.mrb[58].mxu0  ;;  %v4689_v10 = vld [vmem:[%s6738_s13] ss:$0 sm:$0xff] }
0x145a   :  { %v1735_v46 = vmul.f32 0.70710677, %v1727_v7  ;;  %v1730_v13 = vadd.f32 %v4675_v4, %v1729_v12  ;;  %v5302_v14 = vpop.f32.mrb[59].mxu0  ;;  %v1733_v17 = vmul.f32 0.5, %v1727_v7 }
0x145b   :  { %v1980_v14 = vld [vmem:[%s6740_s15 + $0x48] sm:$0xff] }
0x145c   :  { %5846 = verf.f32 %v1735_v46  ;;  %v1736_v15 = vmul.f32 0.70710677, %v1730_v13  ;;  %v1734_v18 = vmul.f32 0.5, %v1730_v13  ;;  %v4690_v46 = vld [vmem:[%s6739_s14] ss:$0 sm:$0xff] }
0x145e   :  { %5848 = verf.f32 %v1736_v15  ;;  %v1984_v15 = vld [vmem:[%s6740_s15 + $0x68] sm:$0xff] }
0x1466   :  { %v5847_v2 = vpop.eup %5846 }
0x1467   :  { %v1739_v50 = vadd.f32 1.0, %v5847_v2 }
0x1468   :  { %v5849_v51 = vpop.eup %5848 }
0x1469   :  { %v1740_v19 = vadd.f32 1.0, %v5849_v51  ;;  %v1741_v20 = vmul.f32 %v1739_v50, %v1733_v17  ;;  %v4702_v51 = vcombine.high %v1980_v14, %v1984_v15  ;;  %v5393_v17 = vld [vmem:[#allocation2 + $0x8] ss:$16 sps:$4 sm:$0xff]  }
0x146b   :  { %v1742_v48 = vmul.f32 %v1740_v19, %v1734_v18  ;;  %v1973_v18 = vld [vmem:[%s6740_s15 + $0x10] sm:$0xff] }
0x146c   :  { %v1977_v19 = vld [vmem:[%s6740_s15 + $0x30] sm:$0xff] }
0x146d   :  { %v1743_v22 = vpack.c.bf16 %v1742_v48, %v1741_v20  ;;  %v5401_v20 = vld [vmem:[#allocation2 + $0x2c] ss:$16 sps:$4 sm:$0xff]   ;;  %v4701_v48 = vcombine.low %v1980_v14, %v1984_v15  ;;  %v5462_v14 = vld [vmem:[#allocation2 + $0x180] ss:$16 sps:$4 sm:$0xff]   ;;  %v5465_v15 = vld [vmem:[#allocation2 + $0x188] ss:$16 sps:$4 sm:$0xff]  }
0x146f   :  { %5320 = vmatmul.mubr.bf16.vlgmr.msra.gmra.mrb[56].mxu1 %v1743_v22  ;;  %v4696_v22 = vcombine.high %v1973_v18, %v1977_v19 }
0x1470   :  { %2236 = vmatpush1.bf16.msra.mxu1 %v4697_v44  ;;  %2267 = vmatprep.mubr.bf16.mxu1 %v5956_v56  ;;  %v5414_v44 = vld [vmem:[#allocation2 + $0x80] ss:$16 sps:$4 sm:$0xff]  }
0x1471   :  { %2237 = vmatprep.subr.bf16.mxu1 %v4706_v61  ;;  %v5453_v61 = vld [vmem:[#allocation2 + $0x148] ss:$16 sps:$4 sm:$0xff]  }
0x1474   :  { %2238 = vmatpush1.bf16.msra.mxu1 %v4705_v59  ;;  %v5434_v59 = vld [vmem:[#allocation2 + $0xe4] ss:$16 sps:$4 sm:$0xff]  }
0x1475   :  { %4046 = vmatprep.subr.bf16.mxu1 %v5395_v62  ;;  %v5444_v62 = vld [vmem:[#allocation2 + $0x120] ss:$16 sps:$4 sm:$0xff]  }
0x1542   :  { %v1849_v26 = vpop.f32.mrb[56].mxu1 }
0x1543   :  { %v1850_v27 = vadd.f32 %v4679_v24, %v1849_v26  ;;  %v5321_v31 = vpop.f32.mrb[57].mxu1  ;;  %v4695_v26 = vcombine.low %v1973_v18, %v1977_v19  ;;  %v5476_v18 = vld [vmem:[#allocation2 + $0x1c4] ss:$16 sps:$4 sm:$0xff]   ;;  %v5479_v19 = vld [vmem:[#allocation2 + $0x1cc] ss:$16 sps:$4 sm:$0xff]  }
0x1544   :  { %v1852_v28 = vpop.f32.mrb[58].mxu1  ;;  %v5405_v31 = vld [vmem:[#allocation2 + $0x48] ss:$16 sps:$4 sm:$0xff]  }
0x1545   :  { %v1856_v30 = vadd.f32 %v1850_v27, %v6401_v60  ;;  %v1853_v32 = vadd.f32 %v4679_v24, %v1852_v28  ;;  %v5322_v33 = vpop.f32.mrb[59].mxu1  ;;  %v1985_v24 = vld [vmem:[%s6740_s15 + $0x70] sm:$0xff]  ;;  %v5413_v28 = vld [vmem:[#allocation2 + $0x6c] ss:$16 sps:$4 sm:$0xff]  }
0x1546   :  { %v4704_v27 = vcombine.high %v1981_v21, %v1985_v24  ;;  %v5411_v33 = vld [vmem:[#allocation2 + $0x68] ss:$16 sps:$4 sm:$0xff]  }
0x1547   :  { %1858 = vst.msk [vmem:[#allocation5] sm:$0xff] %vm94_vm0, %v1856_v30  ;;  %v1857_v34 = vadd.f32 %v1853_v32, %v6419_v29  ;;  %v1971_v29 = vld [vmem:[%s6740_s15] sm:$0xff] }
0x1548   :  { %v4692_v41 = vcombine.high %v1971_v29, %v1975_v16  ;;  %v4691_v43 = vcombine.low %v1971_v29, %v1975_v16  ;;  %v5392_v32 = vld [vmem:[#allocation2 + $0x4] ss:$16 sps:$4 sm:$0xff]   ;;  %v5429_v29 = vld [vmem:[#allocation2 + $0xc8] ss:$16 sps:$4 sm:$0xff]   ;;  %v5437_v16 = vld [vmem:[#allocation2 + $0xec] ss:$16 sps:$4 sm:$0xff]  }
0x1549   :  { %1859 = vst.msk [vmem:[#allocation5 + $0x8] sm:$0xff] %vm94_vm0, %v1857_v34  ;;  %v5331_v35 = vpack.c.bf16 %v1857_v34, %v1856_v30  ;;  %v4703_v30 = vcombine.low %v1981_v21, %v1985_v24  ;;  %v5419_v34 = vld [vmem:[#allocation2 + $0x8c] ss:$16 sps:$4 sm:$0xff]   ;;  %v5480_v21 = vld [vmem:[#allocation2 + $0x1e0] ss:$16 sps:$4 sm:$0xff]  }
0x154a   :  { %v5483_v24 = vld [vmem:[#allocation2 + $0x1e8] ss:$16 sps:$4 sm:$0xff]  }
0x154b   :  { %5332 = vmatpush3.bf16.msra.mxu0 %v5331_v35  ;;  %v5390_v35 = vld [vmem:[#allocation2] ss:$16 sps:$4 sm:$0xff]  }
0x154c   :  { %2112 = vmatprep.subr.bf16.mxu0 %v4692_v41  ;;  %v5416_v41 = vld [vmem:[#allocation2 + $0x84] ss:$16 sps:$4 sm:$0xff]  }
0x154e   :  { %5328 = vmatmul.mubr.msk.f32.vlgmr.msra.gmra.mrb[60].mxu0 %vm1866_vm8, %v1865_v36  ;;  %v5398_v36 = vld [vmem:[#allocation2 + $0x24] ss:$16 sps:$4 sm:$0xff]  }
0x154f   :  { %2113 = vmatpush1.bf16.msra.mxu0 %v4691_v43  ;;  %2144 = vmatprep.mubr.bf16.mxu0 %v5956_v56  ;;  %v5443_v43 = vld [vmem:[#allocation2 + $0x10c] ss:$16 sps:$4 sm:$0xff]  }
0x1550   :  { %2114 = vmatprep.subr.bf16.mxu0 %v4700_v54  ;;  %v5447_v54 = vld [vmem:[#allocation2 + $0x128] ss:$16 sps:$4 sm:$0xff]  }
0x1553   :  { %2115 = vmatpush1.bf16.msra.mxu0 %v4699_v53  ;;  %v5428_v53 = vld [vmem:[#allocation2 + $0xc4] ss:$16 sps:$4 sm:$0xff]  }
0x1554   :  { %2153 = vmatprep.subr.bf16.mxu0 %v4694_v1  ;;  %v5438_v1 = vld [vmem:[#allocation2 + $0x100] ss:$16 sps:$4 sm:$0xff]  }
0x1621   :  { %v1936_v60 = vpop.f32.mrb[60].mxu0 }
0x1622   :  { %v1943_v37 = vsel %vm1942_vm9, %v1936_v60, 0.0  ;;  %v5329_v38 = vpop.f32.mrb[61].mxu0 }
0x1623   :  { %1944 = vadd.xlane.f32.xlu0 %v1943_v37  ;;  %v5425_v37 = vld [vmem:[#allocation2 + $0xac] ss:$16 sps:$4 sm:$0xff]   ;;  %v5396_v38 = vld [vmem:[#allocation2 + $0x20] ss:$16 sps:$4 sm:$0xff]  }
0x16b0   :  { %v1945_v58 = vpop.xlane.xlu0 %1944 }
0x16b1   :  { %v1946_v9 = vmul.f32 0.03125, %v1945_v58  ;;  %v5404_v58 = vld [vmem:[#allocation2 + $0x44] ss:$16 sps:$4 sm:$0xff]  }
0x16b3   :  { %v1947_v63 = vsub.f32 %v1936_v60, %v1946_v9  ;;  %v5417_v60 = vld [vmem:[#allocation2 + $0x88] ss:$16 sps:$4 sm:$0xff]  }
0x16b4   :  { %v5423_v9 = vld [vmem:[#allocation2 + $0xa8] ss:$16 sps:$4 sm:$0xff]  }
0x16b5   :  { %v1948_v39 = vmul.f32 %v1947_v63, %v1947_v63 }
0x16b7   :  { %v1949_v3 = vsel %vm1942_vm9, %v1948_v39, 0.0  ;;  %v5402_v39 = vld [vmem:[#allocation2 + $0x40] ss:$16 sps:$4 sm:$0xff]  }
0x16b8   :  { %1950 = vadd.xlane.f32.xlu1 %v1949_v3  ;;  %v5410_v3 = vld [vmem:[#allocation2 + $0x64] ss:$16 sps:$4 sm:$0xff]  }
0x1745   :  { %v1951_v11 = vpop.xlane.xlu1 %1950 }
0x1746   :  { %v1952_v4 = vmul.f32 0.03125, %v1951_v11  ;;  %v5452_v11 = vld [vmem:[#allocation2 + $0x144] ss:$16 sps:$4 sm:$0xff]  }
0x1748   :  { %v1953_v6 = vadd.f32 1e-05, %v1952_v4  ;;  %v5450_v4 = vld [vmem:[#allocation2 + $0x140] ss:$16 sps:$4 sm:$0xff]  }
0x174a   :  { %5850 = vrsqrt.f32 %v1953_v6  ;;  %v5458_v6 = vld [vmem:[#allocation2 + $0x164] ss:$16 sps:$4 sm:$0xff]  }
0x1754   :  { %v5851_v7 = vpop.eup %5850 }
0x1755   :  { %v1955_v12 = vmul.f32 %v5851_v7, %v1947_v63  ;;  %v5431_v63 = vld [vmem:[#allocation2 + $0xcc] ss:$16 sps:$4 sm:$0xff]  }
0x1756   :  { %v5461_v7 = vld [vmem:[#allocation2 + $0x16c] ss:$16 sps:$4 sm:$0xff]  }
0x1757   :  { %v1962_v13 = vmul.f32 %v4689_v10, %v1955_v12  ;;  %v5456_v10 = vld [vmem:[#allocation2 + $0x160] ss:$16 sps:$4 sm:$0xff]   ;;  %v5459_v12 = vld [vmem:[#allocation2 + $0x168] ss:$16 sps:$4 sm:$0xff]  }
0x1759   :  { %v1969_v2 = vadd.f32 %v4690_v46, %v1962_v13  ;;  %v5464_v46 = vld [vmem:[#allocation2 + $0x184] ss:$16 sps:$4 sm:$0xff]   ;;  %v5467_v13 = vld [vmem:[#allocation2 + $0x18c] ss:$16 sps:$4 sm:$0xff]  }
0x175b   :  { %v1970_v50 = vpack.c.bf16 %v1969_v2, %v1969_v2  ;;  %v5470_v2 = vld [vmem:[#allocation2 + $0x1a4] ss:$16 sps:$4 sm:$0xff]  }
0x175d   :  { %4707 = vmatmul.mubr.msk.bf16.vlgmr.msra.gmra.mrb[64].mxu0 %vm94_vm0, %v1970_v50  ;;  %4710 = vmatmul.mubr.msk.bf16.vlgmr.msra.gmra.mrb[60].mxu1 %vm94_vm0, %v1970_v50 }
0x175e   :  { %2154 = vmatpush1.bf16.msra.mxu0 %v4693_v57  ;;  %2185 = vmatprep.mubr.bf16.mxu0 %v5956_v56  ;;  %v5446_v57 = vld [vmem:[#allocation2 + $0x124] ss:$16 sps:$4 sm:$0xff]  }
0x175f   :  { %2155 = vmatprep.subr.bf16.mxu0 %v4702_v51  ;;  %4047 = vmatpush1.bf16.msra.mxu1 %v5393_v17  ;;  %v5468_v51 = vld [vmem:[#allocation2 + $0x1a0] ss:$16 sps:$4 sm:$0xff]   ;;  %v5471_v17 = vld [vmem:[#allocation2 + $0x1a8] ss:$16 sps:$4 sm:$0xff]  }
0x1760   :  { %4048 = vmatprep.subr.bf16.mxu1 %v5401_v20  ;;  %v5474_v20 = vld [vmem:[#allocation2 + $0x1c0] ss:$16 sps:$4 sm:$0xff]  }
0x1762   :  { %2156 = vmatpush1.bf16.msra.mxu0 %v4701_v48  ;;  %v5477_v48 = vld [vmem:[#allocation2 + $0x1c8] ss:$16 sps:$4 sm:$0xff]  }
0x1763   :  { %2194 = vmatprep.subr.bf16.mxu0 %v4696_v22  ;;  %4049 = vmatpush1.bf16.msra.mxu1 %v5399_v23  ;;  %v5482_v22 = vld [vmem:[#allocation2 + $0x1e4] ss:$16 sps:$4 sm:$0xff]   ;;  %v5485_v23 = vld [vmem:[#allocation2 + $0x1ec] ss:$16 sps:$4 sm:$0xff]  }
0x1764   :  { %4050 = vmatprep.subr.bf16.mxu1 %v5407_v25  ;;  %v5488_v25 = vld [vmem:[#allocation2 + $0x204] ss:$16 sps:$4 sm:$0xff]  }
0x1765   :  { %4708 = vmatmul.mubr.msk.bf16.vlgmr.msra.gmra.mrb[68].mxu0 %vm94_vm0, %v1970_v50 }
0x1766   :  { %2195 = vmatpush1.bf16.msra.mxu0 %v4695_v26  ;;  %2226 = vmatprep.mubr.bf16.mxu0 %v5956_v56  ;;  %v5426_v56 = vld [vmem:[#allocation2 + $0xc0] ss:$16 sps:$4 sm:$0xff]   ;;  %v5491_v26 = vld [vmem:[#allocation2 + $0x20c] ss:$16 sps:$4 sm:$0xff]  }
0x1767   :  { %2196 = vmatprep.subr.bf16.mxu0 %v4704_v27  ;;  %4051 = vmatpush1.bf16.msra.mxu1 %v5405_v31  ;;  %v1991_v27 = vsub.s32 0, %v6201_v8  ;;  %v6548_v31 = vld [vmem:[%s6741_s16] sm:$0xff] }
0x1768   :  { %4052 = vmatprep.subr.bf16.mxu1 %v5413_v28  ;;  %v1995_v28 = vsub.s32 1, %v6201_v8 }
0x176a   :  { %2197 = vmatpush1.bf16.msra.mxu0 %v4703_v30  ;;  %v1992_v30 = vrot.slane %v6548_v31, %v1991_v27 }
0x176b   :  { %3882 = vmatprep.subr.bf16.mxu0 %v5392_v32  ;;  %4053 = vmatpush1.bf16.msra.mxu1 %v5411_v33  ;;  %v1996_v32 = vrot.slane %v6548_v31, %v1995_v28 }
0x176c   :  { %4054 = vmatprep.subr.bf16.mxu1 %v5419_v34 }
0x176d   :  { %4709 = vmatmul.mubr.msk.bf16.vlgmr.msra.gmra.mrb[72].mxu0 %vm94_vm0, %v1970_v50  ;;  %v5473_v50 = vld [vmem:[#allocation2 + $0x1ac] ss:$16 sps:$4 sm:$0xff]  }
0x176e   :  { %3883 = vmatpush1.bf16.msra.mxu0 %v5390_v35 }
0x176f   :  { %3884 = vmatprep.subr.bf16.mxu0 %v5398_v36  ;;  %4055 = vmatpush1.bf16.msra.mxu1 %v5417_v60 }
0x1770   :  { %4056 = vmatprep.subr.bf16.mxu1 %v5425_v37 }
0x1772   :  { %3885 = vmatpush1.bf16.msra.mxu0 %v5396_v38 }
0x1773   :  { %3886 = vmatprep.subr.bf16.mxu0 %v5404_v58  ;;  %4057 = vmatpush1.bf16.msra.mxu1 %v5423_v9  ;;  %v2003_v9 = vsub.s32 3, %v6201_v8 }
0x1774   :  { %4058 = vmatprep.subr.bf16.mxu1 %v5431_v63 }
0x1776   :  { %3887 = vmatpush1.bf16.msra.mxu0 %v5402_v39 }
0x1777   :  { %3888 = vmatprep.subr.bf16.mxu0 %v5410_v3  ;;  %4059 = vmatpush1.bf16.msra.mxu1 %v5429_v29 }
0x1778   :  { %4060 = vmatprep.subr.bf16.mxu1 %v5437_v16  ;;  %v2004_v16 = vrot.slane %v6548_v31, %v2003_v9 }
0x177a   :  { %3889 = vmatpush1.bf16.msra.mxu0 %v5408_v40 }
0x177b   :  { %3890 = vmatprep.subr.bf16.mxu0 %v5416_v41  ;;  %4061 = vmatpush1.bf16.msra.mxu1 %v5435_v42 }
0x177c   :  { %4062 = vmatprep.subr.bf16.mxu1 %v5443_v43 }
0x177e   :  { %3891 = vmatpush1.bf16.msra.mxu0 %v5414_v44 }
0x177f   :  { %3892 = vmatprep.subr.bf16.mxu0 %v5422_v5  ;;  %4063 = vmatpush1.bf16.msra.mxu1 %v5441_v47 }
0x1780   :  { %4064 = vmatprep.subr.bf16.mxu1 %v5449_v49 }
0x1782   :  { %3893 = vmatpush1.bf16.msra.mxu0 %v5420_v52 }
0x1783   :  { %3894 = vmatprep.subr.bf16.mxu0 %v5428_v53  ;;  %4065 = vmatpush1.bf16.msra.mxu1 %v5447_v54 }
0x1784   :  { %4066 = vmatprep.subr.bf16.mxu1 %v5455_v55 }
0x1786   :  { %3895 = vmatpush1.bf16.msra.mxu0 %v5426_v56 }
0x1787   :  { %3896 = vmatprep.subr.bf16.mxu0 %v5434_v59  ;;  %4067 = vmatpush1.bf16.msra.mxu1 %v5453_v61 }
0x1788   :  { %4068 = vmatprep.subr.bf16.mxu1 %v5461_v7  ;;  %v5497_v7 = vld [vmem:[#allocation2 + $0x22c] ss:$16 sps:$4 sm:$0xff]  }
0x178a   :  { %3897 = vmatpush1.bf16.msra.mxu0 %v5432_v45 }
0x178b   :  { %3898 = vmatprep.subr.bf16.mxu0 %v5440_v0  ;;  %4069 = vmatpush1.bf16.msra.mxu1 %v5459_v12 }
0x178c   :  { %4070 = vmatprep.subr.bf16.mxu1 %v5467_v13  ;;  %v5492_v13 = vld [vmem:[#allocation2 + $0x220] ss:$16 sps:$4 sm:$0xff]  }
0x178e   :  { %3899 = vmatpush1.bf16.msra.mxu0 %v5438_v1 }
0x178f   :  { %3900 = vmatprep.subr.bf16.mxu0 %v5446_v57  ;;  %4071 = vmatpush1.bf16.msra.mxu1 %v5465_v15  ;;  %v5500_v15 = vld [vmem:[#allocation2 + $0x244] ss:$16 sps:$4 sm:$0xff]  }
0x1790   :  { %4072 = vmatprep.subr.bf16.mxu1 %v5473_v50  ;;  %v5503_v50 = vld [vmem:[#allocation2 + $0x24c] ss:$16 sps:$4 sm:$0xff]  }
0x1792   :  { %3901 = vmatpush1.bf16.msra.mxu0 %v5444_v62  ;;  %v5486_v62 = vld [vmem:[#allocation2 + $0x200] ss:$16 sps:$4 sm:$0xff]  }
0x1793   :  { %3902 = vmatprep.subr.bf16.mxu0 %v5452_v11  ;;  %4073 = vmatpush1.bf16.msra.mxu1 %v5471_v17  ;;  %v5489_v11 = vld [vmem:[#allocation2 + $0x208] ss:$16 sps:$4 sm:$0xff]   ;;  %v5498_v17 = vld [vmem:[#allocation2 + $0x240] ss:$16 sps:$4 sm:$0xff]  }
0x1794   :  { %4074 = vmatprep.subr.bf16.mxu1 %v5479_v19  ;;  %v5506_v19 = vld [vmem:[#allocation2 + $0x264] ss:$16 sps:$4 sm:$0xff]  }
0x1796   :  { %3903 = vmatpush1.bf16.msra.mxu0 %v5450_v4 }
0x1797   :  { %3904 = vmatprep.subr.bf16.mxu0 %v5458_v6  ;;  %4075 = vmatpush1.bf16.msra.mxu1 %v5477_v48  ;;  %v5494_v6 = vld [vmem:[#allocation2 + $0x224] ss:$16 sps:$4 sm:$0xff]   ;;  %v5504_v48 = vld [vmem:[#allocation2 + $0x260] ss:$16 sps:$4 sm:$0xff]  }
0x1798   :  { %4076 = vmatprep.subr.bf16.mxu1 %v5485_v23  ;;  %v5512_v23 = vld [vmem:[#allocation2 + $0x284] ss:$16 sps:$4 sm:$0xff]  }
0x179a   :  { %3905 = vmatpush1.bf16.msra.mxu0 %v5456_v10 }
0x179b   :  { %3906 = vmatprep.subr.bf16.mxu0 %v5464_v46  ;;  %4077 = vmatpush1.bf16.msra.mxu1 %v5483_v24  ;;  %v5510_v24 = vld [vmem:[#allocation2 + $0x280] ss:$16 sps:$4 sm:$0xff]  }
0x179c   :  { %4087 = vmatprep.subr.bf16.mxu1 %v5491_v26  ;;  %v5518_v26 = vld [vmem:[#allocation2 + $0x2a4] ss:$16 sps:$4 sm:$0xff]  }
0x179e   :  { %3907 = vmatpush1.bf16.msra.mxu0 %v5462_v14  ;;  %v5495_v14 = vld [vmem:[#allocation2 + $0x228] ss:$16 sps:$4 sm:$0xff]  }
0x179f   :  { %3908 = vmatprep.subr.bf16.mxu0 %v5470_v2 }
0x17a2   :  { %3909 = vmatpush1.bf16.msra.mxu0 %v5468_v51 }
0x17a3   :  { %3910 = vmatprep.subr.bf16.mxu0 %v5476_v18  ;;  %v5501_v18 = vld [vmem:[#allocation2 + $0x248] ss:$16 sps:$4 sm:$0xff]  }
0x17a6   :  { %3911 = vmatpush1.bf16.msra.mxu0 %v5474_v20  ;;  %v5509_v20 = vld [vmem:[#allocation2 + $0x26c] ss:$16 sps:$4 sm:$0xff]  }
0x17a7   :  { %3912 = vmatprep.subr.bf16.mxu0 %v5482_v22  ;;  %v5507_v22 = vld [vmem:[#allocation2 + $0x268] ss:$16 sps:$4 sm:$0xff]  }
0x17aa   :  { %3913 = vmatpush1.bf16.msra.mxu0 %v5480_v21  ;;  %v5515_v21 = vld [vmem:[#allocation2 + $0x28c] ss:$16 sps:$4 sm:$0xff]  }
0x17ab   :  { %3923 = vmatprep.subr.bf16.mxu0 %v5488_v25  ;;  %v5513_v25 = vld [vmem:[#allocation2 + $0x288] ss:$16 sps:$4 sm:$0xff]  }
0x1830   :  { %v2146_v33 = vpop.f32.mrb[64].mxu0  ;;  %v6557_v34 = vpop.f32.mrb[60].mxu1 }
0x1831   :  { %v2147_v35 = vadd.f32 %v2146_v33, %v1992_v30  ;;  %v2148_v36 = vpop.f32.mrb[65].mxu0  ;;  %v6559_v60 = vpop.f32.mrb[61].mxu1  ;;  %v5521_v30 = vld [vmem:[#allocation2 + $0x2ac] ss:$16 sps:$4 sm:$0xff]   ;;  %v5519_v33 = vld [vmem:[#allocation2 + $0x2a8] ss:$16 sps:$4 sm:$0xff]  }
0x1832   :  { %v2149_v37 = vadd.f32 %v2148_v36, %v1996_v32  ;;  %v2150_v38 = vpop.f32.mrb[66].mxu0  ;;  %v2273_v58 = vpop.f32.mrb[62].mxu1  ;;  %v5516_v32 = vld [vmem:[#allocation2 + $0x2a0] ss:$16 sps:$4 sm:$0xff]   ;;  %v5527_v36 = vld [vmem:[#allocation2 + $0x2cc] ss:$16 sps:$4 sm:$0xff]  }
0x1833   :  { %v2284_v63 = vmul.f32 0.70710677, %v2147_v35  ;;  %v2151_v3 = vpop.f32.mrb[67].mxu0  ;;  %v2274_v29 = vpop.f32.mrb[63].mxu1  ;;  %v2276_v54 = vmul.f32 0.5, %v2147_v35 }
0x1834   :  { %v2285_v39 = vmul.f32 0.70710677, %v2149_v37  ;;  %v2277_v56 = vmul.f32 0.5, %v2149_v37  ;;  %v5524_v35 = vld [vmem:[#allocation2 + $0x2c4] ss:$16 sps:$4 sm:$0xff]  }
0x1835   :  { %5852 = verf.f32 %v2284_v63  ;;  %v5522_v37 = vld [vmem:[#allocation2 + $0x2c0] ss:$16 sps:$4 sm:$0xff]   ;;  %v5525_v38 = vld [vmem:[#allocation2 + $0x2c8] ss:$16 sps:$4 sm:$0xff]   ;;  %v5530_v58 = vld [vmem:[#allocation2 + $0x2e4] ss:$16 sps:$4 sm:$0xff]  }
0x1836   :  { %5854 = verf.f32 %v2285_v39  ;;  %v5533_v63 = vld [vmem:[#allocation2 + $0x2ec] ss:$16 sps:$4 sm:$0xff]   ;;  %v1999_v39 = vsub.s32 2, %v6201_v8  ;;  %v5528_v3 = vld [vmem:[#allocation2 + $0x2e0] ss:$16 sps:$4 sm:$0xff]  }
0x1837   :  { %v5531_v29 = vld [vmem:[#allocation2 + $0x2e8] ss:$16 sps:$4 sm:$0xff]  }
0x1838   :  { %v6565_v40 = vpop.f32.mrb[68].mxu0 }
0x1839   :  { %v2189_v41 = vpop.f32.mrb[69].mxu0 }
0x183a   :  { %v2190_v42 = vadd.f32 %v2189_v41, %v2004_v16  ;;  %v2191_v43 = vpop.f32.mrb[70].mxu0  ;;  %v2011_v16 = vsub.s32 5, %v6201_v8  ;;  %v5536_v41 = vld [vmem:[#allocation2 + $0x304] ss:$16 sps:$4 sm:$0xff]  }
0x183b   :  { %v2192_v44 = vpop.f32.mrb[71].mxu0  ;;  %v2000_v43 = vrot.slane %v6548_v31, %v1999_v39 }
0x183c   :  { %v2287_v5 = vmul.f32 0.70710677, %v2190_v42  ;;  %v2279_v12 = vmul.f32 0.5, %v2190_v42  ;;  %v5539_v42 = vld [vmem:[#allocation2 + $0x30c] ss:$16 sps:$4 sm:$0xff]  }
0x183d   :  { %v5534_v44 = vld [vmem:[#allocation2 + $0x300] ss:$16 sps:$4 sm:$0xff]  }
0x183e   :  { %5856 = verf.f32 %v2287_v5  ;;  %v5537_v5 = vld [vmem:[#allocation2 + $0x308] ss:$16 sps:$4 sm:$0xff]  }
0x183f   :  { %v5853_v47 = vpop.eup %5852 }
0x1840   :  { %v2300_v49 = vadd.f32 1.0, %v5853_v47  ;;  %v6567_v52 = vpop.f32.mrb[72].mxu0  ;;  %v5855_v53 = vpop.eup %5854  ;;  %v2012_v47 = vrot.slane %v6548_v31, %v2011_v16  ;;  %v5588_v16 = vld [vmem:[#allocation2 + $0x420] ss:$16 sps:$4 sm:$0xff]  }
0x1841   :  { %v6569_v55 = vpop.f32.mrb[73].mxu0  ;;  %v2301_v59 = vadd.f32 1.0, %v5855_v53  ;;  %v5545_v53 = vld [vmem:[#allocation2 + $0x32c] ss:$16 sps:$4 sm:$0xff]  }
0x1842   :  { %v2232_v61 = vpop.f32.mrb[74].mxu0  ;;  %v2308_v45 = vmul.f32 %v2300_v49, %v2276_v54  ;;  %v5542_v49 = vld [vmem:[#allocation2 + $0x324] ss:$16 sps:$4 sm:$0xff]   ;;  %v2188_v54 = vadd.f32 %v6565_v40, %v2000_v43  ;;  %v5557_v40 = vld [vmem:[#allocation2 + $0x36c] ss:$16 sps:$4 sm:$0xff]  }
0x1843   :  { %v2233_v0 = vpop.f32.mrb[75].mxu0  ;;  %v2309_v1 = vmul.f32 %v2301_v59, %v2277_v56  ;;  %v5540_v56 = vld [vmem:[#allocation2 + $0x320] ss:$16 sps:$4 sm:$0xff]   ;;  %v5543_v59 = vld [vmem:[#allocation2 + $0x328] ss:$16 sps:$4 sm:$0xff]   ;;  %v2231_v61 = vadd.f32 %v6569_v55, %v2012_v47 }
0x1844   :  { %v2316_v4 = vpack.c.bf16 %v2308_v45, %v2308_v45  ;;  %v5548_v45 = vld [vmem:[#allocation2 + $0x344] ss:$16 sps:$4 sm:$0xff]   ;;  %v5551_v0 = vld [vmem:[#allocation2 + $0x34c] ss:$16 sps:$4 sm:$0xff]  }
0x1845   :  { %v2317_v57 = vpack.c.bf16 %v2309_v1, %v2309_v1  ;;  %v2286_v1 = vmul.f32 0.70710677, %v2188_v54  ;;  %v5560_v55 = vld [vmem:[#allocation2 + $0x384] ss:$16 sps:$4 sm:$0xff]   ;;  %v5599_v43 = vld [vmem:[#allocation2 + $0x44c] ss:$16 sps:$4 sm:$0xff]  }
0x1846   :  { %v5602_v47 = vld [vmem:[#allocation2 + $0x464] ss:$16 sps:$4 sm:$0xff]  }
0x1847   :  { %3914 = vmatprep.mubr.bf16.mxu0 %v2317_v57  ;;  %4078 = vmatprep.mubr.bf16.mxu1 %v2317_v57  ;;  %v5546_v57 = vld [vmem:[#allocation2 + $0x340] ss:$16 sps:$4 sm:$0xff]   ;;  %5858 = verf.f32 %v2286_v1  ;;  %v5617_v1 = vld [vmem:[#allocation2 + $0x4ac] ss:$16 sps:$4 sm:$0xff]  }
0x1848   :  { %v5857_v10 = vpop.eup %5856  ;;  %3915 = vmatmul.mubr.bf16.vlgmr.msra.gmra.mrb[76].mxu0 %v2316_v4  ;;  %4079 = vmatmul.mubr.bf16.vlgmr.msra.gmra.mrb[64].mxu1 %v2316_v4  ;;  %v5554_v4 = vld [vmem:[#allocation2 + $0x364] ss:$16 sps:$4 sm:$0xff]  }
0x1849   :  { %v2303_v46 = vadd.f32 1.0, %v5857_v10  ;;  %3924 = vmatpush1.bf16.msra.mxu0 %v5486_v62  ;;  %4088 = vmatpush1.bf16.msra.mxu1 %v5489_v11  ;;  %v5549_v62 = vld [vmem:[#allocation2 + $0x348] ss:$16 sps:$4 sm:$0xff]   ;;  %v2289_v11 = vmul.f32 0.70710677, %v2231_v61 }
0x184a   :  { %3925 = vmatprep.subr.bf16.mxu0 %v5494_v6  ;;  %4089 = vmatprep.subr.bf16.mxu1 %v5497_v7  ;;  %v5552_v6 = vld [vmem:[#allocation2 + $0x360] ss:$16 sps:$4 sm:$0xff]   ;;  %v5555_v7 = vld [vmem:[#allocation2 + $0x368] ss:$16 sps:$4 sm:$0xff]   ;;  %v5563_v10 = vld [vmem:[#allocation2 + $0x38c] ss:$16 sps:$4 sm:$0xff]  }
0x184b   :  { %v2311_v2 = vmul.f32 %v2303_v46, %v2279_v12  ;;  %5860 = verf.f32 %v2289_v11  ;;  %v5558_v12 = vld [vmem:[#allocation2 + $0x380] ss:$16 sps:$4 sm:$0xff]   ;;  %v5561_v46 = vld [vmem:[#allocation2 + $0x388] ss:$16 sps:$4 sm:$0xff]   ;;  %v5620_v11 = vld [vmem:[#allocation2 + $0x4c4] ss:$16 sps:$4 sm:$0xff]  }
0x184d   :  { %v2319_v51 = vpack.c.bf16 %v2311_v2, %v2311_v2  ;;  %3926 = vmatpush1.bf16.msra.mxu0 %v5492_v13  ;;  %4090 = vmatpush1.bf16.msra.mxu1 %v5495_v14  ;;  %v5566_v13 = vld [vmem:[#allocation2 + $0x3a4] ss:$16 sps:$4 sm:$0xff]   ;;  %v5569_v14 = vld [vmem:[#allocation2 + $0x3ac] ss:$16 sps:$4 sm:$0xff]   ;;  %v5567_v2 = vld [vmem:[#allocation2 + $0x3a8] ss:$16 sps:$4 sm:$0xff]  }
0x184e   :  { %3927 = vmatprep.subr.bf16.mxu0 %v5500_v15  ;;  %4091 = vmatprep.subr.bf16.mxu1 %v5503_v50  ;;  %v5564_v15 = vld [vmem:[#allocation2 + $0x3a0] ss:$16 sps:$4 sm:$0xff]   ;;  %v5572_v50 = vld [vmem:[#allocation2 + $0x3c4] ss:$16 sps:$4 sm:$0xff]  }
0x184f   :  { %3955 = vmatprep.mubr.bf16.mxu0 %v2319_v51  ;;  %4119 = vmatprep.mubr.bf16.mxu1 %v2319_v51  ;;  %v5575_v51 = vld [vmem:[#allocation2 + $0x3cc] ss:$16 sps:$4 sm:$0xff]  }
0x1851   :  { %3928 = vmatpush1.bf16.msra.mxu0 %v5498_v17  ;;  %4092 = vmatpush1.bf16.msra.mxu1 %v5501_v18  ;;  %v5859_v17 = vpop.eup %5858 }
0x1852   :  { %3929 = vmatprep.subr.bf16.mxu0 %v5506_v19  ;;  %4093 = vmatprep.subr.bf16.mxu1 %v5509_v20  ;;  %v5570_v19 = vld [vmem:[#allocation2 + $0x3c0] ss:$16 sps:$4 sm:$0xff]   ;;  %v5573_v20 = vld [vmem:[#allocation2 + $0x3c8] ss:$16 sps:$4 sm:$0xff]  }
0x1855   :  { %3930 = vmatpush1.bf16.msra.mxu0 %v5504_v48  ;;  %4094 = vmatpush1.bf16.msra.mxu1 %v5507_v22  ;;  %v5861_v18 = vpop.eup %5860  ;;  %v2302_v48 = vadd.f32 1.0, %v5859_v17  ;;  %v5578_v22 = vld [vmem:[#allocation2 + $0x3e4] ss:$16 sps:$4 sm:$0xff]  }
0x1856   :  { %3931 = vmatprep.subr.bf16.mxu0 %v5512_v23  ;;  %4095 = vmatprep.subr.bf16.mxu1 %v5515_v21  ;;  %v5581_v23 = vld [vmem:[#allocation2 + $0x3ec] ss:$16 sps:$4 sm:$0xff]   ;;  %v2305_v21 = vadd.f32 1.0, %v5861_v18  ;;  %v5638_v17 = vld [vmem:[#allocation2 + $0x524] ss:$16 sps:$4 sm:$0xff]  }
0x1859   :  { %3932 = vmatpush1.bf16.msra.mxu0 %v5510_v24  ;;  %4096 = vmatpush1.bf16.msra.mxu1 %v5513_v25  ;;  %v2278_v24 = vmul.f32 0.5, %v2188_v54  ;;  %v2281_v25 = vmul.f32 0.5, %v2231_v61  ;;  %v5603_v54 = vld [vmem:[#allocation2 + $0x468] ss:$16 sps:$4 sm:$0xff]   ;;  %v5606_v61 = vld [vmem:[#allocation2 + $0x480] ss:$16 sps:$4 sm:$0xff]  }
0x185a   :  { %3933 = vmatprep.subr.bf16.mxu0 %v5518_v26  ;;  %4097 = vmatprep.subr.bf16.mxu1 %v5521_v30  ;;  %v5576_v26 = vld [vmem:[#allocation2 + $0x3e0] ss:$16 sps:$4 sm:$0xff]   ;;  %v5579_v30 = vld [vmem:[#allocation2 + $0x3e8] ss:$16 sps:$4 sm:$0xff]  }
0x185d   :  { %3934 = vmatpush1.bf16.msra.mxu0 %v5516_v32  ;;  %4098 = vmatpush1.bf16.msra.mxu1 %v5519_v33  ;;  %v2310_v32 = vmul.f32 %v2302_v48, %v2278_v24  ;;  %v5584_v33 = vld [vmem:[#allocation2 + $0x404] ss:$16 sps:$4 sm:$0xff]   ;;  %v5636_v48 = vld [vmem:[#allocation2 + $0x520] ss:$16 sps:$4 sm:$0xff]   ;;  %v5647_v24 = vld [vmem:[#allocation2 + $0x54c] ss:$16 sps:$4 sm:$0xff]  }
0x185e   :  { %3935 = vmatprep.subr.bf16.mxu0 %v5524_v35  ;;  %4099 = vmatprep.subr.bf16.mxu1 %v5527_v36  ;;  %v5587_v35 = vld [vmem:[#allocation2 + $0x40c] ss:$16 sps:$4 sm:$0xff]   ;;  %v2313_v36 = vmul.f32 %v2305_v21, %v2281_v25 }
0x1861   :  { %3936 = vmatpush1.bf16.msra.mxu0 %v5522_v37  ;;  %4100 = vmatpush1.bf16.msra.mxu1 %v5525_v38  ;;  %v5582_v37 = vld [vmem:[#allocation2 + $0x400] ss:$16 sps:$4 sm:$0xff]   ;;  %v2318_v38 = vpack.c.bf16 %v2310_v32, %v2310_v32  ;;  %v5650_v32 = vld [vmem:[#allocation2 + $0x564] ss:$16 sps:$4 sm:$0xff]  }
0x1862   :  { %3937 = vmatprep.subr.bf16.mxu0 %v5530_v58  ;;  %4101 = vmatprep.subr.bf16.mxu1 %v5533_v63  ;;  %v5585_v58 = vld [vmem:[#allocation2 + $0x408] ss:$16 sps:$4 sm:$0xff]   ;;  %v2321_v63 = vpack.c.bf16 %v2313_v36, %v2313_v36 }
0x1863   :  { %v5651_v36 = vld [vmem:[#allocation2 + $0x568] ss:$16 sps:$4 sm:$0xff]  }
0x1865   :  { %3938 = vmatpush1.bf16.msra.mxu0 %v5528_v3  ;;  %4102 = vmatpush1.bf16.msra.mxu1 %v5531_v29  ;;  %v5590_v3 = vld [vmem:[#allocation2 + $0x424] ss:$16 sps:$4 sm:$0xff]   ;;  %v5593_v29 = vld [vmem:[#allocation2 + $0x42c] ss:$16 sps:$4 sm:$0xff]  }
0x1866   :  { %3939 = vmatprep.subr.bf16.mxu0 %v5536_v41  ;;  %4103 = vmatprep.subr.bf16.mxu1 %v5539_v42  ;;  %v5591_v41 = vld [vmem:[#allocation2 + $0x428] ss:$16 sps:$4 sm:$0xff]   ;;  %v5596_v42 = vld [vmem:[#allocation2 + $0x444] ss:$16 sps:$4 sm:$0xff]  }
0x1869   :  { %3940 = vmatpush1.bf16.msra.mxu0 %v5534_v44  ;;  %4104 = vmatpush1.bf16.msra.mxu1 %v5537_v5  ;;  %v5594_v44 = vld [vmem:[#allocation2 + $0x440] ss:$16 sps:$4 sm:$0xff]   ;;  %v5597_v5 = vld [vmem:[#allocation2 + $0x448] ss:$16 sps:$4 sm:$0xff]  }
0x186a   :  { %3941 = vmatprep.subr.bf16.mxu0 %v5542_v49  ;;  %4105 = vmatprep.subr.bf16.mxu1 %v5545_v53  ;;  %v5605_v49 = vld [vmem:[#allocation2 + $0x46c] ss:$16 sps:$4 sm:$0xff]   ;;  %v5600_v53 = vld [vmem:[#allocation2 + $0x460] ss:$16 sps:$4 sm:$0xff]  }
0x186d   :  { %3942 = vmatpush1.bf16.msra.mxu0 %v5540_v56  ;;  %4106 = vmatpush1.bf16.msra.mxu1 %v5543_v59  ;;  %v5608_v56 = vld [vmem:[#allocation2 + $0x484] ss:$16 sps:$4 sm:$0xff]   ;;  %v5611_v59 = vld [vmem:[#allocation2 + $0x48c] ss:$16 sps:$4 sm:$0xff]  }
0x186e   :  { %3943 = vmatprep.subr.bf16.mxu0 %v5548_v45  ;;  %4107 = vmatprep.subr.bf16.mxu1 %v5551_v0  ;;  %v5609_v45 = vld [vmem:[#allocation2 + $0x488] ss:$16 sps:$4 sm:$0xff]   ;;  %v5614_v0 = vld [vmem:[#allocation2 + $0x4a4] ss:$16 sps:$4 sm:$0xff]  }
0x1871   :  { %3944 = vmatpush1.bf16.msra.mxu0 %v5546_v57  ;;  %4108 = vmatpush1.bf16.msra.mxu1 %v5549_v62  ;;  %v5612_v57 = vld [vmem:[#allocation2 + $0x4a0] ss:$16 sps:$4 sm:$0xff]   ;;  %v5615_v62 = vld [vmem:[#allocation2 + $0x4a8] ss:$16 sps:$4 sm:$0xff]  }
0x1872   :  { %3945 = vmatprep.subr.bf16.mxu0 %v5554_v4  ;;  %4109 = vmatprep.subr.bf16.mxu1 %v5557_v40  ;;  %v5623_v4 = vld [vmem:[#allocation2 + $0x4cc] ss:$16 sps:$4 sm:$0xff]   ;;  %v5618_v40 = vld [vmem:[#allocation2 + $0x4c0] ss:$16 sps:$4 sm:$0xff]  }
0x1875   :  { %3946 = vmatpush1.bf16.msra.mxu0 %v5552_v6  ;;  %4110 = vmatpush1.bf16.msra.mxu1 %v5555_v7  ;;  %v5621_v6 = vld [vmem:[#allocation2 + $0x4c8] ss:$16 sps:$4 sm:$0xff]   ;;  %v5626_v7 = vld [vmem:[#allocation2 + $0x4e4] ss:$16 sps:$4 sm:$0xff]  }
0x1876   :  { %3947 = vmatprep.subr.bf16.mxu0 %v5560_v55  ;;  %4111 = vmatprep.subr.bf16.mxu1 %v5563_v10  ;;  %v5629_v55 = vld [vmem:[#allocation2 + $0x4ec] ss:$16 sps:$4 sm:$0xff]   ;;  %v2007_v10 = vsub.s32 4, %v6201_v8 }
0x1879   :  { %3948 = vmatpush1.bf16.msra.mxu0 %v5558_v12  ;;  %4112 = vmatpush1.bf16.msra.mxu1 %v5561_v46  ;;  %v5624_v12 = vld [vmem:[#allocation2 + $0x4e0] ss:$16 sps:$4 sm:$0xff]   ;;  %v5627_v46 = vld [vmem:[#allocation2 + $0x4e8] ss:$16 sps:$4 sm:$0xff]  }
0x187a   :  { %3949 = vmatprep.subr.bf16.mxu0 %v5566_v13  ;;  %4113 = vmatprep.subr.bf16.mxu1 %v5569_v14  ;;  %v5632_v13 = vld [vmem:[#allocation2 + $0x504] ss:$16 sps:$4 sm:$0xff]   ;;  %v2019_v14 = vsub.s32 7, %v6201_v8 }
0x187c   :  { %v2020_v18 = vrot.slane %v6548_v31, %v2019_v14  ;;  %v5695_v14 = vld [vmem:[#allocation2 + $0x64c] ss:$16 sps:$4 sm:$0xff]  }
0x187d   :  { %3950 = vmatpush1.bf16.msra.mxu0 %v5564_v15  ;;  %4114 = vmatpush1.bf16.msra.mxu1 %v5567_v2  ;;  %v5635_v15 = vld [vmem:[#allocation2 + $0x50c] ss:$16 sps:$4 sm:$0xff]   ;;  %v2008_v2 = vrot.slane %v6548_v31, %v2007_v10 }
0x187e   :  { %3951 = vmatprep.subr.bf16.mxu0 %v5572_v50  ;;  %4115 = vmatprep.subr.bf16.mxu1 %v5575_v51  ;;  %v5630_v50 = vld [vmem:[#allocation2 + $0x500] ss:$16 sps:$4 sm:$0xff]   ;;  %v5633_v51 = vld [vmem:[#allocation2 + $0x508] ss:$16 sps:$4 sm:$0xff]   ;;  %v2272_v21 = vadd.f32 %v6559_v60, %v2020_v18  ;;  %v5659_v60 = vld [vmem:[#allocation2 + $0x58c] ss:$16 sps:$4 sm:$0xff]  }
0x187f   :  { %v5689_v10 = vld [vmem:[#allocation2 + $0x62c] ss:$16 sps:$4 sm:$0xff]   ;;  %v5699_v18 = vld [vmem:[#allocation2 + $0x668] ss:$16 sps:$4 sm:$0xff]  }
0x1881   :  { %3952 = vmatpush1.bf16.msra.mxu0 %v5570_v19  ;;  %4116 = vmatpush1.bf16.msra.mxu1 %v5573_v20  ;;  %v5641_v19 = vld [vmem:[#allocation2 + $0x52c] ss:$16 sps:$4 sm:$0xff]   ;;  %v2229_v20 = vadd.f32 %v6567_v52, %v2008_v2  ;;  %v5693_v2 = vld [vmem:[#allocation2 + $0x648] ss:$16 sps:$4 sm:$0xff]  }
0x1882   :  { %3953 = vmatprep.subr.bf16.mxu0 %v5578_v22  ;;  %4117 = vmatprep.subr.bf16.mxu1 %v5581_v23  ;;  %v5639_v22 = vld [vmem:[#allocation2 + $0x528] ss:$16 sps:$4 sm:$0xff]   ;;  %v5644_v23 = vld [vmem:[#allocation2 + $0x544] ss:$16 sps:$4 sm:$0xff]   ;;  %v5653_v52 = vld [vmem:[#allocation2 + $0x56c] ss:$16 sps:$4 sm:$0xff]  }
0x1883   :  { %v2288_v25 = vmul.f32 0.70710677, %v2229_v20 }
0x1885   :  { %3954 = vmatpush1.bf16.msra.mxu0 %v5576_v26  ;;  %4118 = vmatpush1.bf16.msra.mxu1 %v5579_v30  ;;  %v5642_v26 = vld [vmem:[#allocation2 + $0x540] ss:$16 sps:$4 sm:$0xff]   ;;  %v5645_v30 = vld [vmem:[#allocation2 + $0x548] ss:$16 sps:$4 sm:$0xff]   ;;  %5862 = verf.f32 %v2288_v25 }
0x1886   :  { %3964 = vmatprep.subr.bf16.mxu0 %v5584_v33  ;;  %4128 = vmatprep.subr.bf16.mxu1 %v5587_v35  ;;  %v2291_v33 = vmul.f32 0.70710677, %v2272_v21  ;;  %v5648_v35 = vld [vmem:[#allocation2 + $0x560] ss:$16 sps:$4 sm:$0xff]   ;;  %v5711_v25 = vld [vmem:[#allocation2 + $0x6a8] ss:$16 sps:$4 sm:$0xff]  }
0x1888   :  { %3956 = vmatmul.mubr.bf16.vlgmr.msra.gmra.mrb[76].mxu0 %v2318_v38  ;;  %4120 = vmatmul.mubr.bf16.vlgmr.msra.gmra.mrb[64].mxu1 %v2318_v38  ;;  %5864 = verf.f32 %v2291_v33  ;;  %v5654_v38 = vld [vmem:[#allocation2 + $0x580] ss:$16 sps:$4 sm:$0xff]   ;;  %v5717_v33 = vld [vmem:[#allocation2 + $0x6c8] ss:$16 sps:$4 sm:$0xff]  }
0x1889   :  { %3965 = vmatpush1.bf16.msra.mxu0 %v5582_v37  ;;  %3996 = vmatprep.mubr.bf16.mxu0 %v2321_v63  ;;  %v5656_v37 = vld [vmem:[#allocation2 + $0x584] ss:$16 sps:$4 sm:$0xff]  }
0x188a   :  { %4129 = vmatpush1.bf16.msra.mxu1 %v5585_v58  ;;  %4160 = vmatprep.mubr.bf16.mxu1 %v2321_v63  ;;  %v5657_v58 = vld [vmem:[#allocation2 + $0x588] ss:$16 sps:$4 sm:$0xff]   ;;  %v5662_v63 = vld [vmem:[#allocation2 + $0x5a4] ss:$16 sps:$4 sm:$0xff]  }
0x188b   :  { %3966 = vmatprep.subr.bf16.mxu0 %v5590_v3  ;;  %4130 = vmatprep.subr.bf16.mxu1 %v5593_v29  ;;  %v5665_v3 = vld [vmem:[#allocation2 + $0x5ac] ss:$16 sps:$4 sm:$0xff]   ;;  %v5660_v29 = vld [vmem:[#allocation2 + $0x5a0] ss:$16 sps:$4 sm:$0xff]  }
0x188d   :  { %3967 = vmatpush1.bf16.msra.mxu0 %v5588_v16  ;;  %v5663_v16 = vld [vmem:[#allocation2 + $0x5a8] ss:$16 sps:$4 sm:$0xff]  }
0x188e   :  { %4131 = vmatpush1.bf16.msra.mxu1 %v5591_v41  ;;  %3968 = vmatprep.subr.bf16.mxu0 %v5596_v42  ;;  %v5668_v41 = vld [vmem:[#allocation2 + $0x5c4] ss:$16 sps:$4 sm:$0xff]  }
0x188f   :  { %4132 = vmatprep.subr.bf16.mxu1 %v5599_v43  ;;  %v5863_v42 = vpop.eup %5862  ;;  %v5671_v43 = vld [vmem:[#allocation2 + $0x5cc] ss:$16 sps:$4 sm:$0xff]  }
0x1891   :  { %3969 = vmatpush1.bf16.msra.mxu0 %v5594_v44 }
0x1892   :  { %4133 = vmatpush1.bf16.msra.mxu1 %v5597_v5  ;;  %3970 = vmatprep.subr.bf16.mxu0 %v5602_v47  ;;  %v5865_v44 = vpop.eup %5864  ;;  %v5666_v5 = vld [vmem:[#allocation2 + $0x5c0] ss:$16 sps:$4 sm:$0xff]   ;;  %v2304_v47 = vadd.f32 1.0, %v5863_v42 }
0x1893   :  { %4134 = vmatprep.subr.bf16.mxu1 %v5605_v49  ;;  %v5669_v49 = vld [vmem:[#allocation2 + $0x5c8] ss:$16 sps:$4 sm:$0xff]  }
0x1895   :  { %3971 = vmatpush1.bf16.msra.mxu0 %v5600_v53  ;;  %v5674_v53 = vld [vmem:[#allocation2 + $0x5e4] ss:$16 sps:$4 sm:$0xff]  }
0x1896   :  { %4135 = vmatpush1.bf16.msra.mxu1 %v5603_v54  ;;  %3972 = vmatprep.subr.bf16.mxu0 %v5608_v56  ;;  %v5677_v54 = vld [vmem:[#allocation2 + $0x5ec] ss:$16 sps:$4 sm:$0xff]   ;;  %v2307_v56 = vadd.f32 1.0, %v5865_v44  ;;  %v5735_v44 = vld [vmem:[#allocation2 + $0x728] ss:$16 sps:$4 sm:$0xff]  }
0x1897   :  { %4136 = vmatprep.subr.bf16.mxu1 %v5611_v59  ;;  %v2280_v59 = vmul.f32 0.5, %v2229_v20  ;;  %v5707_v20 = vld [vmem:[#allocation2 + $0x68c] ss:$16 sps:$4 sm:$0xff]  }
0x1899   :  { %3973 = vmatpush1.bf16.msra.mxu0 %v5606_v61  ;;  %v5672_v61 = vld [vmem:[#allocation2 + $0x5e0] ss:$16 sps:$4 sm:$0xff]  }
0x189a   :  { %4137 = vmatpush1.bf16.msra.mxu1 %v5609_v45  ;;  %3974 = vmatprep.subr.bf16.mxu0 %v5614_v0  ;;  %v2283_v45 = vmul.f32 0.5, %v2272_v21  ;;  %v2312_v0 = vmul.f32 %v2304_v47, %v2280_v59  ;;  %v5713_v21 = vld [vmem:[#allocation2 + $0x6ac] ss:$16 sps:$4 sm:$0xff]   ;;  %v5747_v59 = vld [vmem:[#allocation2 + $0x768] ss:$16 sps:$4 sm:$0xff]  }
0x189b   :  { %4138 = vmatprep.subr.bf16.mxu1 %v5617_v1  ;;  %v5675_v1 = vld [vmem:[#allocation2 + $0x5e8] ss:$16 sps:$4 sm:$0xff]   ;;  %v5743_v47 = vld [vmem:[#allocation2 + $0x74c] ss:$16 sps:$4 sm:$0xff]  }
0x189d   :  { %3975 = vmatpush1.bf16.msra.mxu0 %v5612_v57  ;;  %v5680_v57 = vld [vmem:[#allocation2 + $0x604] ss:$16 sps:$4 sm:$0xff]  }
0x189e   :  { %4139 = vmatpush1.bf16.msra.mxu1 %v5615_v62  ;;  %3976 = vmatprep.subr.bf16.mxu0 %v5620_v11  ;;  %v5683_v62 = vld [vmem:[#allocation2 + $0x60c] ss:$16 sps:$4 sm:$0xff]   ;;  %v2315_v11 = vmul.f32 %v2307_v56, %v2283_v45 }
0x189f   :  { %4140 = vmatprep.subr.bf16.mxu1 %v5623_v4  ;;  %v5678_v4 = vld [vmem:[#allocation2 + $0x600] ss:$16 sps:$4 sm:$0xff]   ;;  %v5749_v56 = vld [vmem:[#allocation2 + $0x76c] ss:$16 sps:$4 sm:$0xff]  }
0x18a0   :  { %v5755_v45 = vld [vmem:[#allocation2 + $0x78c] ss:$16 sps:$4 sm:$0xff]  }
0x18a1   :  { %3977 = vmatpush1.bf16.msra.mxu0 %v5618_v40  ;;  %v2320_v40 = vpack.c.bf16 %v2312_v0, %v2312_v0  ;;  %v5750_v0 = vld [vmem:[#allocation2 + $0x780] ss:$16 sps:$4 sm:$0xff]  }
0x18a2   :  { %4141 = vmatpush1.bf16.msra.mxu1 %v5621_v6  ;;  %3978 = vmatprep.subr.bf16.mxu0 %v5626_v7  ;;  %v5681_v6 = vld [vmem:[#allocation2 + $0x608] ss:$16 sps:$4 sm:$0xff]   ;;  %v5686_v7 = vld [vmem:[#allocation2 + $0x624] ss:$16 sps:$4 sm:$0xff]  }
0x18a3   :  { %4142 = vmatprep.subr.bf16.mxu1 %v5629_v55  ;;  %v2323_v55 = vpack.c.bf16 %v2315_v11, %v2315_v11  ;;  %v5756_v11 = vld [vmem:[#allocation2 + $0x7a0] ss:$16 sps:$4 sm:$0xff]  }
0x18a5   :  { %3979 = vmatpush1.bf16.msra.mxu0 %v5624_v12  ;;  %v5684_v12 = vld [vmem:[#allocation2 + $0x620] ss:$16 sps:$4 sm:$0xff]  }
0x18a6   :  { %4143 = vmatpush1.bf16.msra.mxu1 %v5627_v46  ;;  %3980 = vmatprep.subr.bf16.mxu0 %v5632_v13  ;;  %v5687_v46 = vld [vmem:[#allocation2 + $0x628] ss:$16 sps:$4 sm:$0xff]   ;;  %v5692_v13 = vld [vmem:[#allocation2 + $0x644] ss:$16 sps:$4 sm:$0xff]  }
0x18a7   :  { %4144 = vmatprep.subr.bf16.mxu1 %v5635_v15  ;;  %v5690_v15 = vld [vmem:[#allocation2 + $0x640] ss:$16 sps:$4 sm:$0xff]  }
0x18a9   :  { %3981 = vmatpush1.bf16.msra.mxu0 %v5630_v50  ;;  %v5698_v50 = vld [vmem:[#allocation2 + $0x664] ss:$16 sps:$4 sm:$0xff]  }
0x18aa   :  { %4145 = vmatpush1.bf16.msra.mxu1 %v5633_v51  ;;  %3982 = vmatprep.subr.bf16.mxu0 %v5638_v17  ;;  %v5701_v51 = vld [vmem:[#allocation2 + $0x66c] ss:$16 sps:$4 sm:$0xff]   ;;  %v5696_v17 = vld [vmem:[#allocation2 + $0x660] ss:$16 sps:$4 sm:$0xff]  }
0x18ab   :  { %4146 = vmatprep.subr.bf16.mxu1 %v5641_v19  ;;  %v5704_v19 = vld [vmem:[#allocation2 + $0x684] ss:$16 sps:$4 sm:$0xff]  }
0x18ad   :  { %3983 = vmatpush1.bf16.msra.mxu0 %v5636_v48  ;;  %v5702_v48 = vld [vmem:[#allocation2 + $0x680] ss:$16 sps:$4 sm:$0xff]  }
0x18ae   :  { %4147 = vmatpush1.bf16.msra.mxu1 %v5639_v22  ;;  %3984 = vmatprep.subr.bf16.mxu0 %v5644_v23  ;;  %v5705_v22 = vld [vmem:[#allocation2 + $0x688] ss:$16 sps:$4 sm:$0xff]   ;;  %v5710_v23 = vld [vmem:[#allocation2 + $0x6a4] ss:$16 sps:$4 sm:$0xff]  }
0x18af   :  { %4148 = vmatprep.subr.bf16.mxu1 %v5647_v24  ;;  %v5708_v24 = vld [vmem:[#allocation2 + $0x6a0] ss:$16 sps:$4 sm:$0xff]  }
0x18b1   :  { %3985 = vmatpush1.bf16.msra.mxu0 %v5642_v26  ;;  %v5716_v26 = vld [vmem:[#allocation2 + $0x6c4] ss:$16 sps:$4 sm:$0xff]  }
0x18b2   :  { %4149 = vmatpush1.bf16.msra.mxu1 %v5645_v30  ;;  %3986 = vmatprep.subr.bf16.mxu0 %v5650_v32  ;;  %v5719_v30 = vld [vmem:[#allocation2 + $0x6cc] ss:$16 sps:$4 sm:$0xff]   ;;  %v5714_v32 = vld [vmem:[#allocation2 + $0x6c0] ss:$16 sps:$4 sm:$0xff]  }
0x18b3   :  { %4150 = vmatprep.subr.bf16.mxu1 %v5653_v52  ;;  %v5722_v52 = vld [vmem:[#allocation2 + $0x6e4] ss:$16 sps:$4 sm:$0xff]  }
0x18b5   :  { %3987 = vmatpush1.bf16.msra.mxu0 %v5648_v35  ;;  %v5725_v35 = vld [vmem:[#allocation2 + $0x6ec] ss:$16 sps:$4 sm:$0xff]  }
0x18b6   :  { %4151 = vmatpush1.bf16.msra.mxu1 %v5651_v36  ;;  %3988 = vmatprep.subr.bf16.mxu0 %v5656_v37  ;;  %v2015_v36 = vsub.s32 6, %v6201_v8  ;;  %v5720_v37 = vld [vmem:[#allocation2 + $0x6e0] ss:$16 sps:$4 sm:$0xff]  }
0x18b7   :  { %4152 = vmatprep.subr.bf16.mxu1 %v5659_v60  ;;  %v5723_v60 = vld [vmem:[#allocation2 + $0x6e8] ss:$16 sps:$4 sm:$0xff]  }
0x18b9   :  { %3989 = vmatpush1.bf16.msra.mxu0 %v5654_v38  ;;  %v5728_v38 = vld [vmem:[#allocation2 + $0x704] ss:$16 sps:$4 sm:$0xff]  }
0x18ba   :  { %4153 = vmatpush1.bf16.msra.mxu1 %v5657_v58  ;;  %3990 = vmatprep.subr.bf16.mxu0 %v5662_v63  ;;  %v5731_v58 = vld [vmem:[#allocation2 + $0x70c] ss:$16 sps:$4 sm:$0xff]   ;;  %v2016_v63 = vrot.slane %v6548_v31, %v2015_v36  ;;  %v5738_v31 = vld [vmem:[#allocation2 + $0x740] ss:$16 sps:$4 sm:$0xff]  }
0x18bb   :  { %4154 = vmatprep.subr.bf16.mxu1 %v5665_v3  ;;  %v5726_v3 = vld [vmem:[#allocation2 + $0x700] ss:$16 sps:$4 sm:$0xff]  }
0x18bc   :  { %v2270_v42 = vadd.f32 %v6557_v34, %v2016_v63  ;;  %v5744_v34 = vld [vmem:[#allocation2 + $0x760] ss:$16 sps:$4 sm:$0xff]   ;;  %v5795_v63 = vld [vmem:[%s6744_s19 + $0xe8] sm:$0xff]  }
0x18bd   :  { %3991 = vmatpush1.bf16.msra.mxu0 %v5660_v29  ;;  %v5729_v29 = vld [vmem:[#allocation2 + $0x708] ss:$16 sps:$4 sm:$0xff]   ;;  %v5790_v36 = vld [vmem:[%s6744_s19 + $0x60] sm:$0xff]  }
0x18be   :  { %4155 = vmatpush1.bf16.msra.mxu1 %v5663_v16  ;;  %3992 = vmatprep.subr.bf16.mxu0 %v5668_v41  ;;  %v5734_v16 = vld [vmem:[#allocation2 + $0x724] ss:$16 sps:$4 sm:$0xff]   ;;  %v5737_v41 = vld [vmem:[#allocation2 + $0x72c] ss:$16 sps:$4 sm:$0xff]  }
0x18bf   :  { %4156 = vmatprep.subr.bf16.mxu1 %v5671_v43  ;;  %v5732_v43 = vld [vmem:[#allocation2 + $0x720] ss:$16 sps:$4 sm:$0xff]  }
0x18c1   :  { %3993 = vmatpush1.bf16.msra.mxu0 %v5666_v5  ;;  %v5740_v5 = vld [vmem:[#allocation2 + $0x744] ss:$16 sps:$4 sm:$0xff]  }
0x18c2   :  { %4157 = vmatpush1.bf16.msra.mxu1 %v5669_v49  ;;  %3994 = vmatprep.subr.bf16.mxu0 %v5674_v53  ;;  %v2290_v49 = vmul.f32 0.70710677, %v2270_v42  ;;  %v5741_v53 = vld [vmem:[#allocation2 + $0x748] ss:$16 sps:$4 sm:$0xff]  }
0x18c3   :  { %4158 = vmatprep.subr.bf16.mxu1 %v5677_v54  ;;  %v5746_v54 = vld [vmem:[#allocation2 + $0x764] ss:$16 sps:$4 sm:$0xff]  }
0x18c4   :  { %5866 = verf.f32 %v2290_v49  ;;  %v5805_v49 = vld [vmem:[%s6744_s19 + $0xb8] sm:$0xff]  }
0x18c5   :  { %3995 = vmatpush1.bf16.msra.mxu0 %v5672_v61  ;;  %v5752_v61 = vld [vmem:[#allocation2 + $0x784] ss:$16 sps:$4 sm:$0xff]  }
0x18c6   :  { %4159 = vmatpush1.bf16.msra.mxu1 %v5675_v1  ;;  %4005 = vmatprep.subr.bf16.mxu0 %v5680_v57  ;;  %v5753_v1 = vld [vmem:[#allocation2 + $0x788] ss:$16 sps:$4 sm:$0xff]   ;;  %v5758_v57 = vld [vmem:[#allocation2 + $0x7a4] ss:$16 sps:$4 sm:$0xff]  }
0x18c7   :  { %4169 = vmatprep.subr.bf16.mxu1 %v5683_v62  ;;  %v5761_v62 = vld [vmem:[#allocation2 + $0x7ac] ss:$16 sps:$4 sm:$0xff]  }
0x18c8   :  { %3997 = vmatmul.mubr.bf16.vlgmr.msra.gmra.mrb[76].mxu0 %v2320_v40 }
0x18c9   :  { %4161 = vmatmul.mubr.bf16.vlgmr.msra.gmra.mrb[64].mxu1 %v2320_v40  ;;  %4006 = vmatpush1.bf16.msra.mxu0 %v5678_v4  ;;  %v5759_v4 = vld [vmem:[#allocation2 + $0x7a8] ss:$16 sps:$4 sm:$0xff]   ;;  %v5764_v40 = vld [vmem:[#allocation2 + $0x7c4] ss:$16 sps:$4 sm:$0xff]  }
0x18ca   :  { %4037 = vmatprep.mubr.bf16.mxu0 %v2323_v55  ;;  %4170 = vmatpush1.bf16.msra.mxu1 %v5681_v6 }
0x18cb   :  { %4201 = vmatprep.mubr.bf16.mxu1 %v2323_v55  ;;  %4007 = vmatprep.subr.bf16.mxu0 %v5686_v7  ;;  %v5767_v7 = vld [vmem:[#allocation2 + $0x7cc] ss:$16 sps:$4 sm:$0xff]   ;;  %v5762_v55 = vld [vmem:[#allocation2 + $0x7c0] ss:$16 sps:$4 sm:$0xff]  }
0x18cc   :  { %4171 = vmatprep.subr.bf16.mxu1 %v5689_v10 }
0x18cd   :  { %4008 = vmatpush1.bf16.msra.mxu0 %v5684_v12  ;;  %v5765_v12 = vld [vmem:[#allocation2 + $0x7c8] ss:$16 sps:$4 sm:$0xff]  }
0x18ce   :  { %4172 = vmatpush1.bf16.msra.mxu1 %v5687_v46  ;;  %4009 = vmatprep.subr.bf16.mxu0 %v5692_v13  ;;  %v5867_v6 = vpop.eup %5866  ;;  %v5770_v46 = vld [vmem:[#allocation2 + $0x7e4] ss:$16 sps:$4 sm:$0xff]   ;;  %v5773_v13 = vld [vmem:[#allocation2 + $0x7ec] ss:$16 sps:$4 sm:$0xff]  }
0x18cf   :  { %4173 = vmatprep.subr.bf16.mxu1 %v5695_v14  ;;  %v2306_v10 = vadd.f32 1.0, %v5867_v6  ;;  %v2282_v14 = vmul.f32 0.5, %v2270_v42  ;;  %v5800_v42 = vld [vmem:[%s6744_s19 + $0x30] sm:$0xff]  }
0x18d1   :  { %4010 = vmatpush1.bf16.msra.mxu0 %v5690_v15  ;;  %v5768_v15 = vld [vmem:[#allocation2 + $0x7e0] ss:$16 sps:$4 sm:$0xff]  }
0x18d2   :  { %4174 = vmatpush1.bf16.msra.mxu1 %v5693_v2  ;;  %4011 = vmatprep.subr.bf16.mxu0 %v5698_v50  ;;  %v2314_v2 = vmul.f32 %v2306_v10, %v2282_v14  ;;  %v5771_v50 = vld [vmem:[#allocation2 + $0x7e8] ss:$16 sps:$4 sm:$0xff]  }
0x18d3   :  { %4175 = vmatprep.subr.bf16.mxu1 %v5701_v51  ;;  %v5774_v51 = vld [vmem:[%s6744_s19 + $0x40] sm:$0xff]  }
0x18d5   :  { %4012 = vmatpush1.bf16.msra.mxu0 %v5696_v17  ;;  %v5775_v17 = vld [vmem:[%s6744_s19 + $0xc0] sm:$0xff]  }
0x18d6   :  { %4176 = vmatpush1.bf16.msra.mxu1 %v5699_v18  ;;  %4013 = vmatprep.subr.bf16.mxu0 %v5704_v19  ;;  %v5776_v18 = vld [vmem:[%s6744_s19] sm:$0xff]   ;;  %v2322_v19 = vpack.c.bf16 %v2314_v2, %v2314_v2 }
0x18d7   :  { %4177 = vmatprep.subr.bf16.mxu1 %v5707_v20  ;;  %v5777_v20 = vld [vmem:[%s6744_s19 + $0x80] sm:$0xff]  }
0x18d9   :  { %4014 = vmatpush1.bf16.msra.mxu0 %v5702_v48  ;;  %v5778_v48 = vld [vmem:[%s6744_s19 + $0x48] sm:$0xff]  }
0x18da   :  { %4178 = vmatpush1.bf16.msra.mxu1 %v5705_v22  ;;  %4015 = vmatprep.subr.bf16.mxu0 %v5710_v23  ;;  %v5779_v22 = vld [vmem:[%s6744_s19 + $0xc8] sm:$0xff]  }
0x18db   :  { %4179 = vmatprep.subr.bf16.mxu1 %v5713_v21  ;;  %v5780_v23 = vld [vmem:[%s6744_s19 + $0x8] sm:$0xff]  }
0x18dc   :  { %v5781_v21 = vld [vmem:[%s6744_s19 + $0x88] sm:$0xff]  }
0x18dd   :  { %4016 = vmatpush1.bf16.msra.mxu0 %v5708_v24  ;;  %v5782_v24 = vld [vmem:[%s6744_s19 + $0x50] sm:$0xff]  }
0x18de   :  { %4180 = vmatpush1.bf16.msra.mxu1 %v5711_v25  ;;  %4017 = vmatprep.subr.bf16.mxu0 %v5716_v26  ;;  %v5783_v25 = vld [vmem:[%s6744_s19 + $0xd0] sm:$0xff]  }
0x18df   :  { %4181 = vmatprep.subr.bf16.mxu1 %v5719_v30  ;;  %v5784_v26 = vld [vmem:[%s6744_s19 + $0x10] sm:$0xff]  }
0x18e0   :  { %v5785_v30 = vld [vmem:[%s6744_s19 + $0x90] sm:$0xff]  }
0x18e1   :  { %4018 = vmatpush1.bf16.msra.mxu0 %v5714_v32  ;;  %v5786_v32 = vld [vmem:[%s6744_s19 + $0x58] sm:$0xff]  }
0x18e2   :  { %4182 = vmatpush1.bf16.msra.mxu1 %v5717_v33  ;;  %4019 = vmatprep.subr.bf16.mxu0 %v5722_v52  ;;  %v5787_v33 = vld [vmem:[%s6744_s19 + $0xd8] sm:$0xff]  }
0x18e3   :  { %4183 = vmatprep.subr.bf16.mxu1 %v5725_v35  ;;  %v5788_v52 = vld [vmem:[%s6744_s19 + $0x18] sm:$0xff]  }
0x18e4   :  { %v5789_v35 = vld [vmem:[%s6744_s19 + $0x98] sm:$0xff]  }
0x18e5   :  { %4020 = vmatpush1.bf16.msra.mxu0 %v5720_v37  ;;  %v5791_v37 = vld [vmem:[%s6744_s19 + $0xe0] sm:$0xff]  }
0x18e6   :  { %4184 = vmatpush1.bf16.msra.mxu1 %v5723_v60  ;;  %4021 = vmatprep.subr.bf16.mxu0 %v5728_v38  ;;  %v5792_v60 = vld [vmem:[%s6744_s19 + $0x20] sm:$0xff]  }
0x18e7   :  { %4185 = vmatprep.subr.bf16.mxu1 %v5731_v58  ;;  %v5793_v38 = vld [vmem:[%s6744_s19 + $0xa0] sm:$0xff]   ;;  %v5794_v58 = vld [vmem:[%s6744_s19 + $0x68] sm:$0xff]  }
0x18e9   :  { %4022 = vmatpush1.bf16.msra.mxu0 %v5726_v3  ;;  %v5796_v3 = vld [vmem:[%s6744_s19 + $0x28] sm:$0xff]  }
0x18ea   :  { %4186 = vmatpush1.bf16.msra.mxu1 %v5729_v29  ;;  %4023 = vmatprep.subr.bf16.mxu0 %v5734_v16  ;;  %v5797_v29 = vld [vmem:[%s6744_s19 + $0xa8] sm:$0xff]   ;;  %v5798_v16 = vld [vmem:[%s6744_s19 + $0x70] sm:$0xff]  }
0x18eb   :  { %4187 = vmatprep.subr.bf16.mxu1 %v5737_v41  ;;  %v5799_v41 = vld [vmem:[%s6744_s19 + $0xf0] sm:$0xff]  }
0x18ed   :  { %4024 = vmatpush1.bf16.msra.mxu0 %v5732_v43  ;;  %v5801_v43 = vld [vmem:[%s6744_s19 + $0xb0] sm:$0xff]  }
0x18ee   :  { %4188 = vmatpush1.bf16.msra.mxu1 %v5735_v44  ;;  %4025 = vmatprep.subr.bf16.mxu0 %v5740_v5  ;;  %v5802_v44 = vld [vmem:[%s6744_s19 + $0x78] sm:$0xff]  }
0x18ef   :  { %4189 = vmatprep.subr.bf16.mxu1 %v5743_v47  ;;  %v5803_v5 = vld [vmem:[%s6744_s19 + $0xf8] sm:$0xff]  }
0x18f0   :  { %v5804_v47 = vld [vmem:[%s6744_s19 + $0x38] sm:$0xff]  }
0x18f1   :  { %4026 = vmatpush1.bf16.msra.mxu0 %v5738_v31  ;;  %v2580_v31 = vld [vmem:[%s6743_s18] sm:$0xf]  ;;  %s5957_s18 = smov [#allocation5]  }
0x18f2   :  { %4190 = vmatpush1.bf16.msra.mxu1 %v5741_v53  ;;  %4027 = vmatprep.subr.bf16.mxu0 %v5746_v54  ;;  %v2585_v53 = vrot.slane %v2580_v31, %v1991_v27  ;;  %v2593_v54 = vrot.slane %v2580_v31, %v1999_v39  ;;  %s4586_s19 = sshll.u32 %s5957_s18, 4  ;;  %s4587_s19 = int_to_ptr.vmem [resolvable:$true] %s4586_s19 }
0x18f3   :  { %4191 = vmatprep.subr.bf16.mxu1 %v5749_v56  ;;  %v2589_v56 = vrot.slane %v2580_v31, %v1995_v28  ;;  %s5900_s13 = scalar_lea.vmem %s4587_s19, 256  ;;  %p5905_p9 = scmp.lt.s32.totalorder %s4587_s19, %s4587_s19 }
0x18f4   :  { %p5901_p8 = scmp.ne.s32.totalorder %s4587_s19, %s5900_s13  ;;  %p5906_p10 = scmp.lt.s32.totalorder %s5900_s13, %s5900_s13 }
0x18f5   :  { %4028 = vmatpush1.bf16.msra.mxu0 %v5744_v34  ;;  %v2597_v34 = vrot.slane %v2580_v31, %v2003_v9 }
0x18f6   :  { %4192 = vmatpush1.bf16.msra.mxu1 %v5747_v59  ;;  %4029 = vmatprep.subr.bf16.mxu0 %v5752_v61  ;;  %p5907_p11 = por %p5906_p10, %p5905_p9 }
0x18f7   :  { %4193 = vmatprep.subr.bf16.mxu1 %v5755_v45 }
0x18f8   :  { %p5908_p12 = pnand %p5907_p11, %p5901_p8 }
0x18f9   :  { %4030 = vmatpush1.bf16.msra.mxu0 %v5750_v0 }
0x18fa   :  { %4194 = vmatpush1.bf16.msra.mxu1 %v5753_v1  ;;  %4031 = vmatprep.subr.bf16.mxu0 %v5758_v57 }
0x18fb   :  { %4195 = vmatprep.subr.bf16.mxu1 %v5761_v62 }
0x18fd   :  { %4032 = vmatpush1.bf16.msra.mxu0 %v5756_v11 }
0x18fe   :  { %4196 = vmatpush1.bf16.msra.mxu1 %v5759_v4  ;;  %4033 = vmatprep.subr.bf16.mxu0 %v5764_v40 }
0x18ff   :  { %4197 = vmatprep.subr.bf16.mxu1 %v5767_v7 }
0x1901   :  { %4034 = vmatpush1.bf16.msra.mxu0 %v5762_v55 }
0x1902   :  { %4198 = vmatpush1.bf16.msra.mxu1 %v5765_v12  ;;  %4035 = vmatprep.subr.bf16.mxu0 %v5770_v46 }
0x1903   :  { %4199 = vmatprep.subr.bf16.mxu1 %v5773_v13 }
0x1905   :  { %4036 = vmatpush1.bf16.msra.mxu0 %v5768_v15 }
0x1906   :  { %4200 = vmatpush1.bf16.msra.mxu1 %v5771_v50  ;;  %5075 = vmatprep.subr.bf16.mxu0 %v5774_v51 }
0x1907   :  { %5097 = vmatprep.subr.bf16.mxu1 %v5775_v17 }
0x1908   :  { %4038 = vmatmul.mubr.bf16.vlgmr.msra.gmra.mrb[76].mxu0 %v2322_v19 }
0x1909   :  { %4202 = vmatmul.mubr.bf16.vlgmr.msra.gmra.mrb[64].mxu1 %v2322_v19  ;;  %5076 = vmatpush3.bf16.msra.mxu0 %v5776_v18 }
0x190a   :  { %5098 = vmatpush3.bf16.msra.mxu1 %v5777_v20  ;;  %5077 = vmatprep.subr.bf16.mxu0 %v5778_v48 }
0x190b   :  { %5099 = vmatprep.subr.bf16.mxu1 %v5779_v22 }
0x190d   :  { %5078 = vmatpush3.bf16.msra.mxu0 %v5780_v23 }
0x190e   :  { %5100 = vmatpush3.bf16.msra.mxu1 %v5781_v21  ;;  %5079 = vmatprep.subr.bf16.mxu0 %v5782_v24 }
0x190f   :  { %5101 = vmatprep.subr.bf16.mxu1 %v5783_v25 }
0x1911   :  { %5080 = vmatpush3.bf16.msra.mxu0 %v5784_v26 }
0x1912   :  { %5102 = vmatpush3.bf16.msra.mxu1 %v5785_v30  ;;  %5081 = vmatprep.subr.bf16.mxu0 %v5786_v32 }
0x1913   :  { %5103 = vmatprep.subr.bf16.mxu1 %v5787_v33 }
0x1915   :  { %5082 = vmatpush3.bf16.msra.mxu0 %v5788_v52 }
0x1916   :  { %5104 = vmatpush3.bf16.msra.mxu1 %v5789_v35  ;;  %5083 = vmatprep.subr.bf16.mxu0 %v5790_v36 }
0x1917   :  { %5105 = vmatprep.subr.bf16.mxu1 %v5791_v37 }
0x1919   :  { %5084 = vmatpush3.bf16.msra.mxu0 %v5792_v60 }
0x191a   :  { %5106 = vmatpush3.bf16.msra.mxu1 %v5793_v38  ;;  %5085 = vmatprep.subr.bf16.mxu0 %v5794_v58 }
0x191b   :  { %5107 = vmatprep.subr.bf16.mxu1 %v5795_v63 }
0x191d   :  { %5086 = vmatpush3.bf16.msra.mxu0 %v5796_v3 }
0x191e   :  { %5108 = vmatpush3.bf16.msra.mxu1 %v5797_v29  ;;  %5087 = vmatprep.subr.bf16.mxu0 %v5798_v16 }
0x191f   :  { %5109 = vmatprep.subr.bf16.mxu1 %v5799_v41 }
0x1921   :  { %5088 = vmatpush3.bf16.msra.mxu0 %v5800_v42 }
0x1922   :  { %5110 = vmatpush3.bf16.msra.mxu1 %v5801_v43  ;;  %5089 = vmatprep.subr.bf16.mxu0 %v5802_v44 }
0x1923   :  { %5111 = vmatprep.subr.bf16.mxu1 %v5803_v5 }
0x1925   :  { %5090 = vmatpush3.bf16.msra.mxu0 %v5804_v47 }
0x1926   :  { %5112 = vmatpush3.bf16.msra.mxu1 %v5805_v49 }
0x19db   :  { %v4039_v59 = vpop.f32.mrb[76].mxu0 }
0x19dc   :  { %v5333_v61 = vadd.f32 %v4039_v59, %v2585_v53  ;;  %v4203_v45 = vpop.f32.mrb[64].mxu1  ;;  %v4041_v0 = vpop.f32.mrb[77].mxu0 }
0x19dd   :  { %v5335_v1 = vadd.f32 %v4203_v45, %v2593_v54  ;;  %v5334_v57 = vadd.f32 %v4041_v0, %v2589_v56  ;;  %v4205_v62 = vpop.f32.mrb[65].mxu1  ;;  %v4043_v11 = vpop.f32.mrb[78].mxu0 }
0x19de   :  { %v4214_v4 = vmul.f32 0.70710677, %v5333_v61  ;;  %v5336_v40 = vadd.f32 %v4205_v62, %v2597_v34  ;;  %v4207_v27 = vpop.f32.mrb[66].mxu1  ;;  %v4044_v6 = vpop.f32.mrb[79].mxu0  ;;  %v4210_v46 = vmul.f32 0.5, %v5333_v61 }
0x19df   :  { %v4216_v7 = vmul.f32 0.70710677, %v5335_v1  ;;  %v4215_v39 = vmul.f32 0.70710677, %v5334_v57  ;;  %v4208_v28 = vpop.f32.mrb[67].mxu1  ;;  %v4212_v15 = vmul.f32 0.5, %v5335_v1 }
0x19e0   :  { %5868 = verf.f32 %v4214_v4  ;;  %v4217_v55 = vmul.f32 0.70710677, %v5336_v40  ;;  %v4211_v2 = vmul.f32 0.5, %v5334_v57  ;;  %v4213_v17 = vmul.f32 0.5, %v5336_v40 }
0x19e1   :  { %5870 = verf.f32 %v4216_v7 }
0x19e2   :  { %5872 = verf.f32 %v4215_v39 }
0x19e3   :  { %5874 = verf.f32 %v4217_v55 }
0x19ea   :  { %v5869_v8 = vpop.eup %5868 }
0x19eb   :  { %v5871_v9 = vpop.eup %5870  ;;  %v4222_v10 = vadd.f32 1.0, %v5869_v8 }
0x19ec   :  { %v5873_v12 = vpop.eup %5872  ;;  %v4224_v13 = vadd.f32 1.0, %v5871_v9 }
0x19ed   :  { %v5875_v14 = vpop.eup %5874  ;;  %v4223_v50 = vadd.f32 1.0, %v5873_v12  ;;  %v4226_v51 = vmul.f32 %v4222_v10, %v4210_v46 }
0x19ee   :  { %v4225_v18 = vadd.f32 1.0, %v5875_v14  ;;  %v4228_v19 = vmul.f32 %v4224_v13, %v4212_v15 }
0x19ef   :  { %v4227_v20 = vmul.f32 %v4223_v50, %v4211_v2  ;;  %v4230_v23 = vpack.c.bf16 %v4226_v51, %v4226_v51 }
0x19f0   :  { %v4229_v48 = vmul.f32 %v4225_v18, %v4213_v17  ;;  %v4232_v24 = vpack.c.bf16 %v4228_v19, %v4228_v19 }
0x19f1   :  { %v4231_v22 = vpack.c.bf16 %v4227_v20, %v4227_v20 }
0x19f2   :  { %v4233_v21 = vpack.c.bf16 %v4229_v48, %v4229_v48 }
0x19f3   :  { %4529 = vmatprep.mubr.bf16.mxu0 %v4231_v22 }
0x19f4   :  { %4569 = vmatprep.mubr.bf16.mxu1 %v4233_v21  ;;  %4530 = vmatmul.mubr.bf16.vlgmr.msra.gmra.mrb[80].mxu0 %v4230_v23 }
0x19f5   :  { %4570 = vmatmul.mubr.bf16.vlgmr.msra.gmra.mrb[68].mxu1 %v4232_v24 }
0x19f6   :  { %5911 = shalt.err (!%p5908_p12)
}
0x19f7   :  { %s5912_s14 = scalar_lea.hbm %s6747_s22, 256 }
0x19f8   :  { %p5913_p13 = scmp.ne.s32.totalorder %s6747_s22, %s5912_s14  ;;  %p5916_p0 = scmp.lt.u32.totalorder %s5912_s14, %s6747_s22 }
0x19fa   :  { %p5918_p1 = pnand %p5916_p0, %p5913_p13 }
0x19fc   :  { %5921 = shalt.err (!%p5918_p1)
}
0x19fd   :  { %s5958_s27 = smov 128   ;;  %s5959_s16 = smov 8   ;;  %v4967_v30 = vld [vmem:[%s6745_s20] ss:$0 sm:$0xff]  ;;  %vm4579_vm10 = vcmask 58368  }
0x19fe   :  { %4592 = dma.vmem_to_hbm [thread:$0]  %s4587_s19, 256, %s6747_s22, [#allocation4], %s5958_s27, %s5958_s27, %s5959_s16  }
0x19ff   :  { %v4577_v63 = vld [vmem:[%s6746_s21] sm:$0x3]  ;;  %s5960_s22 = smov [#allocation6]  }
0x1a00   :  { %s4599_s11 = sshll.u32 %s5960_s22, 4  ;;  %s4600_s11 = int_to_ptr.vmem [resolvable:$true] %s4599_s11 }
0x1a01   :  { %s5922_s20 = scalar_lea.vmem %s4600_s11, 32  ;;  %p5927_p3 = scmp.lt.s32.totalorder %s4600_s11, %s4600_s11 }
0x1a02   :  { %p5923_p2 = scmp.ne.s32.totalorder %s4600_s11, %s5922_s20  ;;  %p5928_p4 = scmp.lt.s32.totalorder %s5922_s20, %s5922_s20 }
0x1a04   :  { %p5929_p5 = por %p5928_p4, %p5927_p3 }
0x1a06   :  { %p5930_p6 = pnand %p5929_p5, %p5923_p2 }
0x1ac7   :  { %v5091_v25 = vpop.f32.mrb[80].mxu0 }
0x1ac8   :  { %v5113_v26 = vpop.f32.mrb[68].mxu1  ;;  %v5092_v32 = vpop.f32.mrb[81].mxu0 }
0x1ac9   :  { %v5093_v33 = vadd.f32 %v5092_v32, %v5091_v25  ;;  %v5114_v52 = vpop.f32.mrb[69].mxu1  ;;  %v5094_v35 = vpop.f32.mrb[82].mxu0 }
0x1aca   :  { %v5115_v36 = vadd.f32 %v5114_v52, %v5113_v26  ;;  %v5116_v37 = vpop.f32.mrb[70].mxu1  ;;  %v5095_v60 = vpop.f32.mrb[83].mxu0 }
0x1acb   :  { %v4532_v38 = vadd.f32 %v5093_v33, %v4967_v30  ;;  %v5117_v58 = vpop.f32.mrb[71].mxu1 }
0x1acd   :  { %v4572_v3 = vadd.f32 %v5115_v36, %v4532_v38 }
0x1acf   :  { %v4578_v29 = vadd.f32 %v4577_v63, %v4572_v3 }
0x1ad1   :  { %4580 = vst.msk [vmem:[#allocation6] sm:$0x3] %vm4579_vm10, %v4578_v29 }
0x1ad2   :  { %5933 = shalt.err (!%p5930_p6)
}
0x1ad3   :  { %s5934_s0 = scalar_lea.hbm %s6748_s23, 32 }
0x1ad4   :  { %p5935_p7 = scmp.ne.s32.totalorder %s6748_s23, %s5934_s0  ;;  %p5938_p8 = scmp.lt.u32.totalorder %s5934_s0, %s6748_s23 }
0x1ad6   :  { %p5940_p9 = pnand %p5938_p8, %p5935_p7 }
0x1ad8   :  { %5943 = shalt.err (!%p5940_p9)
}
0x1ad9   :  { %4602 = dma.vmem_to_hbm [thread:$0]  %s4600_s11, 32, %s6748_s23, [#allocation7]  }
0x1ada   :  { %5946 = dma.done.wait [#allocation4], 256  }
0x1adb   :  { %5947 = vsyncadd [#allocation4], 4294967040 }
0x1adc   :  { %5948 = dma.done.wait [#allocation7], 32  }
0x1add   :  { %5949 = vsyncadd [#allocation7], 4294967264 }
0x1ade   :  { %4609 = vsyncpa [#allocation3], 1 }
0x1adf   :  { %4610 = vsyncpa [#allocation4], 1 }
0x1ae0   :  { %4611 = vsyncpa [#allocation7], 1 }

</bundles_post_ra>
